<compile_context>
chip_gen: v5e
topology: v5e:2x2
jax: 0.10.0
libtpu: 0.0.40
codegen_flags: <defaults>
</compile_context>

<pallas_src>
import functools
import math

import jax
import jax.numpy as jnp
from jax.experimental import pallas as pl
from jax.experimental.pallas import tpu as pltpu


_LN_EPS = 1e-5        # torch.nn.LayerNorm default eps
_NORM_EPS = 1e-12     # torch.nn.functional.normalize default eps
_MAX_ROWS_PER_STEP = 1024   # cap on B_TILE*N rows per grid step (VMEM-friendly on v5e..v7x)


# ---------------------------------------------------------------------------
# shared in-kernel helpers
# ---------------------------------------------------------------------------
def _layer_norm(h, gamma, beta):
    mu = jnp.mean(h, axis=-1, keepdims=True)
    var = jnp.mean(jnp.square(h - mu), axis=-1, keepdims=True)
    return (h - mu) * jax.lax.rsqrt(var + _LN_EPS) * gamma + beta


def _mm_ln_relu(h_f32, w_bf16, bgb_f32):
    """bf16 MXU matmul (f32 accumulate) + bias + LayerNorm + ReLU (stats in f32)."""
    b, g, e = bgb_f32[0:1, :], bgb_f32[1:2, :], bgb_f32[2:3, :]
    z = jnp.dot(h_f32.astype(jnp.bfloat16), w_bf16,
                preferred_element_type=jnp.float32) + b
    return jnp.maximum(_layer_norm(z, g, e), 0.0)


# ---------------------------------------------------------------------------
# Fused PC_Encoder kernel: per-point MLP -> per-item max over points
#   grid = (encoder index, batch tile); both axes "parallel".
# ---------------------------------------------------------------------------
def _pc_encoder_kernel(x_ref,
                       w1_ref, bgb1_ref,
                       w2_ref, bgb2_ref,
                       w3_ref, bgb3_ref,
                       w4_ref, bgb4_ref,
                       out_ref, *, n_pts):
    m, n_ch = x_ref.shape[1], x_ref.shape[2]          # rows = B_TILE * n_pts
    b_tile = m // n_pts
    x = x_ref[0]                                      # (M, C) f32, C == 3

    # Layer 1 (K == channels == 3): VPU broadcast-FMAs -- no MXU pass on a zero-padded K.
    w1, bgb1 = w1_ref[0], bgb1_ref[0]
    h = x[:, 0:1] * w1[0:1, :] + bgb1[0:1, :]
    for c in range(1, n_ch):                          # tiny static loop
        h = h + x[:, c:c + 1] * w1[c:c + 1, :]
    h = jnp.maximum(_layer_norm(h, bgb1[1:2, :], bgb1[2:3, :]), 0.0)   # (M, 64)

    h = _mm_ln_relu(h, w2_ref[0], bgb2_ref[0])        # (M, 128)
    h = _mm_ln_relu(h, w3_ref[0], bgb3_ref[0])        # (M, 256)
    h = _mm_ln_relu(h, w4_ref[0], bgb4_ref[0])        # (M, out_dim)

    # torch.max(x, 1)[0]: per-item max over the point axis (static, sublane-aligned slices).
    pooled = [jnp.max(h[i * n_pts:(i + 1) * n_pts, :], axis=0, keepdims=True)
              for i in range(b_tile)]
    out_ref[0] = jnp.concatenate(pooled, axis=0) if b_tile > 1 else pooled[0]


def _choose_b_tile(batch, n_pts):
    if batch * n_pts <= _MAX_ROWS_PER_STEP:
        return batch
    for t in range(batch, 0, -1):
        # t must divide the batch and (for the output BlockSpec) be B or a multiple of 8.
        if batch % t == 0 and t * n_pts <= _MAX_ROWS_PER_STEP and (t == batch or t % 8 == 0):
            return t
    return batch


def fused_pc_encoders_forward(scene_pc, qr_obj_pc, scene_params, qr_params):
    """Runs both PC_Encoders in a single pallas_call."""
    B, N, C = scene_pc.shape
    b_tile = _choose_b_tile(B, N)
    n_btiles = B // b_tile
    out_dim = scene_params[12].shape[1]   # W4 columns == pc_ft_dim

    # Stack scene/qr inputs along a new leading "encoder" axis and fold (B, N) -> rows.
    pc = jnp.stack([scene_pc, qr_obj_pc], axis=0).astype(jnp.float32)   # (2, B, N, C)
    pc = pc.reshape(2, B * N, C)

    def stack_layer(i, to_bf16):
        w = jnp.stack([scene_params[4 * i], qr_params[4 * i]], axis=0)
        if to_bf16:
            w = w.astype(jnp.bfloat16)
        bgb = jnp.stack(
            [jnp.concatenate([scene_params[4 * i + 1], scene_params[4 * i + 2],
                              scene_params[4 * i + 3]], axis=0),
             jnp.concatenate([qr_params[4 * i + 1], qr_params[4 * i + 2],
                              qr_params[4 * i + 3]], axis=0)], axis=0)
        return w, bgb

    w1, bgb1 = stack_layer(0, to_bf16=False)   # layer 1 stays f32 (VPU path)
    w2, bgb2 = stack_layer(1, to_bf16=True)
    w3, bgb3 = stack_layer(2, to_bf16=True)
    w4, bgb4 = stack_layer(3, to_bf16=True)
    weights = [w1, bgb1, w2, bgb2, w3, bgb3, w4, bgb4]

    def w_spec(p):
        nd = p.ndim
        return pl.BlockSpec((1,) + p.shape[1:],
                            lambda e, b, _nd=nd: (e,) + (0,) * (_nd - 1))

    in_specs = [pl.BlockSpec((1, b_tile * N, C), lambda e, b: (e, b, 0))]
    in_specs += [w_spec(p) for p in weights]
    out_specs = pl.BlockSpec((1, b_tile, out_dim), lambda e, b: (e, b, 0))

    out = pl.pallas_call(
        functools.partial(_pc_encoder_kernel, n_pts=N),
        out_shape=jax.ShapeDtypeStruct((2, B, out_dim), jnp.float32),
        grid_spec=pltpu.PrefetchScalarGridSpec(
            num_scalar_prefetch=0,
            grid=(2, n_btiles),
            in_specs=in_specs,
            out_specs=out_specs,
        ),
        compiler_params=pltpu.CompilerParams(
            dimension_semantics=("parallel", "parallel"),
        ),
    )(pc, *weights)
    return out[0], out[1]


# ---------------------------------------------------------------------------
# Base_Actor + deterministic pose head (fused)
# ---------------------------------------------------------------------------
def _actor_head_kernel(sf_ref, qf_ref,
                       w1s_ref, w1q_ref, bgb1_ref,
                       w2_ref, bgb2_ref,
                       w3_ref, bgb3_ref,
                       w4_ref, b4_ref,
                       out_ref):
    sf = sf_ref[...].astype(jnp.bfloat16)
    qf = qf_ref[...].astype(jnp.bfloat16)
    bgb1 = bgb1_ref[...]
    # cat([scene_f, qr_f], dim=1) @ W1  ==  scene_f @ W1[:D] + qr_f @ W1[D:]
    h = (jnp.dot(sf, w1s_ref[...], preferred_element_type=jnp.float32)
         + jnp.dot(qf, w1q_ref[...], preferred_element_type=jnp.float32)
         + bgb1[0:1, :])
    h = jnp.maximum(_layer_norm(h, bgb1[1:2, :], bgb1[2:3, :]), 0.0)   # Dropout(p=0) = id
    h = _mm_ln_relu(h, w2_ref[...], bgb2_ref[...])
    h = _mm_ln_relu(h, w3_ref[...], bgb3_ref[...])
    # Final projection is tiny (64 x 4): keep it in f32 for accuracy.
    action = jnp.dot(h, w4_ref[...], preferred_element_type=jnp.float32) + b4_ref[...]

    pred_pos = action[:, 0:3]
    rotz = action[:, 3:4]
    half = 0.5 * rotz
    sz, cz = jnp.sin(half), jnp.cos(half)
    # quat_from_euler_xyz(0, 0, rotz) in (x, y, z, w) order -> (0, 0, sin, cos); F.normalize(p=2).
    inv = jax.lax.rsqrt(jnp.maximum(sz * sz + cz * cz, _NORM_EPS * _NORM_EPS))
    zero = jnp.zeros_like(sz)
    # Lane-padded (B, 8) store; the wrapper slices the 7 real columns.
    out_ref[...] = jnp.concatenate(
        [pred_pos, zero, zero, sz * inv, cz * inv, zero], axis=1)


def actor_head_forward(scene_f, qr_f, actor_params):
    B, D = scene_f.shape
    (w1, b1, g1, e1, w2, b2, g2, e2, w3, b3, g3, e3, w4, b4) = actor_params
    w1s = w1[:D, :].astype(jnp.bfloat16)
    w1q = w1[D:, :].astype(jnp.bfloat16)
    bgb1 = jnp.concatenate([b1, g1, e1], axis=0)
    bgb2 = jnp.concatenate([b2, g2, e2], axis=0)
    bgb3 = jnp.concatenate([b3, g3, e3], axis=0)
    kernel_params = [w1s, w1q, bgb1,
                     w2.astype(jnp.bfloat16), bgb2,
                     w3.astype(jnp.bfloat16), bgb3,
                     w4, b4]

    def full_spec(shape):
        nd = len(shape)
        return pl.BlockSpec(shape, lambda i, _nd=nd: (0,) * _nd)

    in_specs = [full_spec(scene_f.shape), full_spec(qr_f.shape)]
    in_specs += [full_spec(p.shape) for p in kernel_params]

    out = pl.pallas_call(
        _actor_head_kernel,
        out_shape=jax.ShapeDtypeStruct((B, 8), jnp.float32),
        grid_spec=pltpu.PrefetchScalarGridSpec(
            num_scalar_prefetch=0,
            grid=(1,),
            in_specs=in_specs,
            out_specs=full_spec((B, 8)),
        ),
        compiler_params=pltpu.CompilerParams(
            dimension_semantics=("arbitrary",),
        ),
    )(scene_f, qr_f, *kernel_params)
    return out[:, :7]


# ---------------------------------------------------------------------------
# Full module forward (jit so the small param stacking / casts fuse with the kernels)
# ---------------------------------------------------------------------------
@jax.jit
def stable_placement_policy_determ_forward(scene_pc, qr_obj_pc, params):
    scene_f, qr_f = fused_pc_encoders_forward(
        scene_pc, qr_obj_pc, params["scene_encoder"], params["qr_obj_encoder"])
    pred_pose = actor_head_forward(scene_f, qr_f, params["actor"])
    return pred_pose, None


# ---------------------------------------------------------------------------
# Parameter construction (forward semantics do not depend on the exact init;
# layer_init's orthogonal init is an init-time detail, so scaled normal is used)
# ---------------------------------------------------------------------------
def _init_linear(key, fan_in, fan_out):
    w = jax.random.normal(key, (fan_in, fan_out), jnp.float32) * (1.0 / math.sqrt(fan_in))
    b = jnp.zeros((1, fan_out), jnp.float32)
    return w, b


def init_pc_encoder_params(key, channels, out_dim):
    dims = [channels, 64, 128, 256, out_dim]
    params = []
    for i in range(4):
        key, sub = jax.random.split(key)
        w, b = _init_linear(sub, dims[i], dims[i + 1])
        params += [w, b,
                   jnp.ones((1, dims[i + 1]), jnp.float32),
                   jnp.zeros((1, dims[i + 1]), jnp.float32)]
    return params


def init_actor_params(key, mlp_input, action_dim):
    dims = [mlp_input, 256, 128, 64]
    params = []
    for i in range(3):
        key, sub = jax.random.split(key)
        w, b = _init_linear(sub, dims[i], dims[i + 1])
        params += [w, b,
                   jnp.ones((1, dims[i + 1]), jnp.float32),
                   jnp.zeros((1, dims[i + 1]), jnp.float32)]
    key, sub = jax.random.split(key)
    w4, b4 = _init_linear(sub, dims[3], action_dim)
    params += [w4, b4]
    return params


# ---------------------------------------------------------------------------
# Pure-JAX f32 reference (mirrors the PyTorch module)
# ---------------------------------------------------------------------------
def _ref_pc_encoder(x, params):
    h = x
    for i in range(4):
        w, b, g, e = params[4 * i:4 * i + 4]
        h = jnp.dot(h, w) + b
        mu = h.mean(-1, keepdims=True)
        var = ((h - mu) ** 2).mean(-1, keepdims=True)
        h = jnp.maximum((h - mu) * jax.lax.rsqrt(var + _LN_EPS) * g + e, 0.0)
    return jnp.max(h, axis=1)


def _ref_forward(scene_pc, qr_obj_pc, params):
    sf = _ref_pc_encoder(scene_pc, params["scene_encoder"])
    qf = _ref_pc_encoder(qr_obj_pc, params["qr_obj_encoder"])
    f = jnp.concatenate([sf, qf], axis=1)
    (w1, b1, g1, e1, w2, b2, g2, e2, w3, b3, g3, e3, w4, b4) = params["actor"]
    h = f
    for (w, b, g, e) in ((w1, b1, g1, e1), (w2, b2, g2, e2), (w3, b3, g3, e3)):
        h = jnp.dot(h, w) + b
        mu = h.mean(-1, keepdims=True)
        var = ((h - mu) ** 2).mean(-1, keepdims=True)
        h = jnp.maximum((h - mu) * jax.lax.rsqrt(var + _LN_EPS) * g + e, 0.0)
    action = jnp.dot(h, w4) + b4
    pos = action[:, :3]
    rotz = action[:, 3]
    qz, qw = jnp.sin(0.5 * rotz), jnp.cos(0.5 * rotz)
    raw = jnp.stack([jnp.zeros_like(qz), jnp.zeros_like(qz), qz, qw], axis=1)
    quat = raw / jnp.maximum(jnp.linalg.norm(raw, axis=1, keepdims=True), _NORM_EPS)
    return jnp.concatenate([pos, quat], axis=1)


# ---------------------------------------------------------------------------
if __name__ == "__main__":
    key = jax.random.PRNGKey(0)
    B, N_PTS, CH = 2, 64, 3
    PC_FT_DIM = 128            # => mlp_input = 256 (small demo-sized model)
    ACTION_DIM = 4

    k_scene, k_qr, k_enc_s, k_enc_q, k_actor = jax.random.split(key, 5)
    scene_pc = jax.random.normal(k_scene, (B, N_PTS, CH), jnp.float32)
    qr_obj_pc = jax.random.normal(k_qr, (B, N_PTS, CH), jnp.float32)

    params = {
        "scene_encoder": init_pc_encoder_params(k_enc_s, CH, PC_FT_DIM),
        "qr_obj_encoder": init_pc_encoder_params(k_enc_q, CH, PC_FT_DIM),
        "actor": init_actor_params(k_actor, 2 * PC_FT_DIM, ACTION_DIM),
    }

    pred_pose, aux = stable_placement_policy_determ_forward(scene_pc, qr_obj_pc, params)
    pred_pose = jax.block_until_ready(pred_pose)

    assert aux is None
    assert pred_pose.shape == (B, 7), pred_pose.shape

    ref = _ref_forward(scene_pc, qr_obj_pc, params)
    max_err = float(jnp.max(jnp.abs(pred_pose - ref)))
    # bf16 matmuls (f32 accumulate) vs. the f32 reference -> slightly loosened tolerance.
    assert jnp.allclose(pred_pose, ref, rtol=3e-2, atol=3e-2), max_err
    quat_norm = jnp.linalg.norm(pred_pose[:, 3:], axis=1)
    assert jnp.allclose(quat_norm, 1.0, atol=1e-4), quat_norm

    print("KERNEL_OK")
</pallas_src>

<mosaic_0001>
module attributes {stable_mosaic.version = 11 : i64} {
  func.func @_pc_encoder_kernel(%arg0: i32, %arg1: i32, %arg2: memref<1x128x3xf32, #tpu.memory_space<vmem>>, %arg3: memref<1x3x64xf32, #tpu.memory_space<vmem>>, %arg4: memref<1x3x64xf32, #tpu.memory_space<vmem>>, %arg5: memref<1x64x128xbf16, #tpu.memory_space<vmem>>, %arg6: memref<1x3x128xf32, #tpu.memory_space<vmem>>, %arg7: memref<1x128x256xbf16, #tpu.memory_space<vmem>>, %arg8: memref<1x3x256xf32, #tpu.memory_space<vmem>>, %arg9: memref<1x256x128xbf16, #tpu.memory_space<vmem>>, %arg10: memref<1x3x128xf32, #tpu.memory_space<vmem>>, %arg11: memref<1x2x128xf32, #tpu.memory_space<vmem>>) attributes {dimension_semantics = [#tpu.dimension_semantics<parallel>, #tpu.dimension_semantics<parallel>], iteration_bounds = array<i64: 2, 1>, scalar_prefetch = 0 : i64, scratch_operands = 0 : i64, tpu.core_type = #tpu.core_type<tc>, window_params = [{transform_indices = @transform_0, window_bounds = array<i64: 1, 128, 3>}, {transform_indices = @transform_1, window_bounds = array<i64: 1, 3, 64>}, {transform_indices = @transform_2, window_bounds = array<i64: 1, 3, 64>}, {transform_indices = @transform_3, window_bounds = array<i64: 1, 64, 128>}, {transform_indices = @transform_4, window_bounds = array<i64: 1, 3, 128>}, {transform_indices = @transform_5, window_bounds = array<i64: 1, 128, 256>}, {transform_indices = @transform_6, window_bounds = array<i64: 1, 3, 256>}, {transform_indices = @transform_7, window_bounds = array<i64: 1, 256, 128>}, {transform_indices = @transform_8, window_bounds = array<i64: 1, 3, 128>}, {transform_indices = @transform_9, window_bounds = array<i64: 1, 2, 128>}]} {
    %c0 = arith.constant 0 : index
    %c0_0 = arith.constant 0 : index
    %c0_1 = arith.constant 0 : index
    %0 = vector.load %arg2[%c0, %c0_0, %c0_1] : memref<1x128x3xf32, #tpu.memory_space<vmem>>, vector<1x128x3xf32>
    %1 = vector.shape_cast %0 : vector<1x128x3xf32> to vector<128x3xf32>
    %c0_2 = arith.constant 0 : index
    %c0_3 = arith.constant 0 : index
    %c0_4 = arith.constant 0 : index
    %2 = vector.load %arg3[%c0_2, %c0_3, %c0_4] : memref<1x3x64xf32, #tpu.memory_space<vmem>>, vector<1x3x64xf32>
    %3 = vector.shape_cast %2 : vector<1x3x64xf32> to vector<3x64xf32>
    %c0_5 = arith.constant 0 : index
    %c0_6 = arith.constant 0 : index
    %c0_7 = arith.constant 0 : index
    %4 = vector.load %arg4[%c0_5, %c0_6, %c0_7] : memref<1x3x64xf32, #tpu.memory_space<vmem>>, vector<1x3x64xf32>
    %5 = vector.shape_cast %4 : vector<1x3x64xf32> to vector<3x64xf32>
    %6 = vector.extract_strided_slice %1 {offsets = [0, 0], sizes = [128, 1], strides = [1, 1]} : vector<128x3xf32> to vector<128x1xf32>
    %7 = vector.extract_strided_slice %3 {offsets = [0, 0], sizes = [1, 64], strides = [1, 1]} : vector<3x64xf32> to vector<1x64xf32>
    %8 = vector.broadcast %6 : vector<128x1xf32> to vector<128x64xf32>
    %9 = vector.broadcast %7 : vector<1x64xf32> to vector<128x64xf32>
    %10 = arith.mulf %8, %9 : vector<128x64xf32>
    %11 = vector.extract_strided_slice %5 {offsets = [0, 0], sizes = [1, 64], strides = [1, 1]} : vector<3x64xf32> to vector<1x64xf32>
    %12 = vector.broadcast %11 : vector<1x64xf32> to vector<128x64xf32>
    %13 = arith.addf %10, %12 : vector<128x64xf32>
    %14 = vector.extract_strided_slice %1 {offsets = [0, 1], sizes = [128, 1], strides = [1, 1]} : vector<128x3xf32> to vector<128x1xf32>
    %15 = vector.extract_strided_slice %3 {offsets = [1, 0], sizes = [1, 64], strides = [1, 1]} : vector<3x64xf32> to vector<1x64xf32>
    %16 = vector.broadcast %14 : vector<128x1xf32> to vector<128x64xf32>
    %17 = vector.broadcast %15 : vector<1x64xf32> to vector<128x64xf32>
    %18 = arith.mulf %16, %17 : vector<128x64xf32>
    %19 = arith.addf %13, %18 : vector<128x64xf32>
    %20 = vector.extract_strided_slice %1 {offsets = [0, 2], sizes = [128, 1], strides = [1, 1]} : vector<128x3xf32> to vector<128x1xf32>
    %21 = vector.extract_strided_slice %3 {offsets = [2, 0], sizes = [1, 64], strides = [1, 1]} : vector<3x64xf32> to vector<1x64xf32>
    %22 = vector.broadcast %20 : vector<128x1xf32> to vector<128x64xf32>
    %23 = vector.broadcast %21 : vector<1x64xf32> to vector<128x64xf32>
    %24 = arith.mulf %22, %23 : vector<128x64xf32>
    %25 = arith.addf %19, %24 : vector<128x64xf32>
    %26 = vector.extract_strided_slice %5 {offsets = [1, 0], sizes = [1, 64], strides = [1, 1]} : vector<3x64xf32> to vector<1x64xf32>
    %27 = vector.extract_strided_slice %5 {offsets = [2, 0], sizes = [1, 64], strides = [1, 1]} : vector<3x64xf32> to vector<1x64xf32>
    %cst = arith.constant dense<0.000000e+00> : vector<128xf32>
    %28 = vector.multi_reduction <add>, %25, %cst [1] : vector<128x64xf32> to vector<128xf32>
    %29 = vector.shape_cast %28 : vector<128xf32> to vector<128x1xf32>
    %cst_8 = arith.constant 6.400000e+01 : f32
    %30 = vector.broadcast %cst_8 : f32 to vector<128x1xf32>
    %31 = arith.divf %29, %30 : vector<128x1xf32>
    %32 = vector.broadcast %31 : vector<128x1xf32> to vector<128x64xf32>
    %33 = arith.subf %25, %32 : vector<128x64xf32>
    %34 = arith.mulf %33, %33 : vector<128x64xf32>
    %cst_9 = arith.constant dense<0.000000e+00> : vector<128xf32>
    %35 = vector.multi_reduction <add>, %34, %cst_9 [1] : vector<128x64xf32> to vector<128xf32>
    %36 = vector.shape_cast %35 : vector<128xf32> to vector<128x1xf32>
    %cst_10 = arith.constant 6.400000e+01 : f32
    %37 = vector.broadcast %cst_10 : f32 to vector<128x1xf32>
    %38 = arith.divf %36, %37 : vector<128x1xf32>
    %39 = vector.broadcast %31 : vector<128x1xf32> to vector<128x64xf32>
    %40 = arith.subf %25, %39 : vector<128x64xf32>
    %cst_11 = arith.constant 9.99999974E-6 : f32
    %41 = vector.broadcast %cst_11 : f32 to vector<128x1xf32>
    %42 = arith.addf %38, %41 : vector<128x1xf32>
    %43 = math.rsqrt %42 : vector<128x1xf32>
    %44 = vector.broadcast %43 : vector<128x1xf32> to vector<128x64xf32>
    %45 = arith.mulf %40, %44 : vector<128x64xf32>
    %46 = vector.broadcast %26 : vector<1x64xf32> to vector<128x64xf32>
    %47 = arith.mulf %45, %46 : vector<128x64xf32>
    %48 = vector.broadcast %27 : vector<1x64xf32> to vector<128x64xf32>
    %49 = arith.addf %47, %48 : vector<128x64xf32>
    %cst_12 = arith.constant 0.000000e+00 : f32
    %50 = vector.broadcast %cst_12 : f32 to vector<128x64xf32>
    %51 = arith.maximumf %49, %50 : vector<128x64xf32>
    %c0_13 = arith.constant 0 : index
    %c0_14 = arith.constant 0 : index
    %c0_15 = arith.constant 0 : index
    %52 = vector.load %arg5[%c0_13, %c0_14, %c0_15] : memref<1x64x128xbf16, #tpu.memory_space<vmem>>, vector<1x64x128xbf16>
    %53 = vector.shape_cast %52 : vector<1x64x128xbf16> to vector<64x128xbf16>
    %c0_16 = arith.constant 0 : index
    %c0_17 = arith.constant 0 : index
    %c0_18 = arith.constant 0 : index
    %54 = vector.load %arg6[%c0_16, %c0_17, %c0_18] : memref<1x3x128xf32, #tpu.memory_space<vmem>>, vector<1x3x128xf32>
    %55 = vector.shape_cast %54 : vector<1x3x128xf32> to vector<3x128xf32>
    %56 = vector.extract_strided_slice %55 {offsets = [0, 0], sizes = [1, 128], strides = [1, 1]} : vector<3x128xf32> to vector<1x128xf32>
    %57 = vector.extract_strided_slice %55 {offsets = [1, 0], sizes = [1, 128], strides = [1, 1]} : vector<3x128xf32> to vector<1x128xf32>
    %58 = vector.extract_strided_slice %55 {offsets = [2, 0], sizes = [1, 128], strides = [1, 1]} : vector<3x128xf32> to vector<1x128xf32>
    %59 = arith.truncf %51 : vector<128x64xf32> to vector<128x64xbf16>
    %cst_19 = arith.constant dense<0.000000e+00> : vector<128x128xf32>
    %60 = tpu.matmul %59, %53, %cst_19 {dimension_numbers = #tpu.dot_dimension_numbers<[1], [0], [0], [1], [0, 0, 1, 1], [], []>} : vector<128x64xbf16>, vector<64x128xbf16>, vector<128x128xf32> -> vector<128x128xf32>
    %61 = vector.broadcast %56 : vector<1x128xf32> to vector<128x128xf32>
    %62 = arith.addf %60, %61 : vector<128x128xf32>
    %cst_20 = arith.constant dense<0.000000e+00> : vector<128xf32>
    %63 = vector.multi_reduction <add>, %62, %cst_20 [1] : vector<128x128xf32> to vector<128xf32>
    %64 = vector.shape_cast %63 : vector<128xf32> to vector<128x1xf32>
    %cst_21 = arith.constant 1.280000e+02 : f32
    %65 = vector.broadcast %cst_21 : f32 to vector<128x1xf32>
    %66 = arith.divf %64, %65 : vector<128x1xf32>
    %67 = vector.broadcast %66 : vector<128x1xf32> to vector<128x128xf32>
    %68 = arith.subf %62, %67 : vector<128x128xf32>
    %69 = arith.mulf %68, %68 : vector<128x128xf32>
    %cst_22 = arith.constant dense<0.000000e+00> : vector<128xf32>
    %70 = vector.multi_reduction <add>, %69, %cst_22 [1] : vector<128x128xf32> to vector<128xf32>
    %71 = vector.shape_cast %70 : vector<128xf32> to vector<128x1xf32>
    %cst_23 = arith.constant 1.280000e+02 : f32
    %72 = vector.broadcast %cst_23 : f32 to vector<128x1xf32>
    %73 = arith.divf %71, %72 : vector<128x1xf32>
    %74 = vector.broadcast %66 : vector<128x1xf32> to vector<128x128xf32>
    %75 = arith.subf %62, %74 : vector<128x128xf32>
    %cst_24 = arith.constant 9.99999974E-6 : f32
    %76 = vector.broadcast %cst_24 : f32 to vector<128x1xf32>
    %77 = arith.addf %73, %76 : vector<128x1xf32>
    %78 = math.rsqrt %77 : vector<128x1xf32>
    %79 = vector.broadcast %78 : vector<128x1xf32> to vector<128x128xf32>
    %80 = arith.mulf %75, %79 : vector<128x128xf32>
    %81 = vector.broadcast %57 : vector<1x128xf32> to vector<128x128xf32>
    %82 = arith.mulf %80, %81 : vector<128x128xf32>
    %83 = vector.broadcast %58 : vector<1x128xf32> to vector<128x128xf32>
    %84 = arith.addf %82, %83 : vector<128x128xf32>
    %cst_25 = arith.constant 0.000000e+00 : f32
    %85 = vector.broadcast %cst_25 : f32 to vector<128x128xf32>
    %86 = arith.maximumf %84, %85 : vector<128x128xf32>
    %c0_26 = arith.constant 0 : index
    %c0_27 = arith.constant 0 : index
    %c0_28 = arith.constant 0 : index
    %87 = vector.load %arg7[%c0_26, %c0_27, %c0_28] : memref<1x128x256xbf16, #tpu.memory_space<vmem>>, vector<1x128x256xbf16>
    %88 = vector.shape_cast %87 : vector<1x128x256xbf16> to vector<128x256xbf16>
    %c0_29 = arith.constant 0 : index
    %c0_30 = arith.constant 0 : index
    %c0_31 = arith.constant 0 : index
    %89 = vector.load %arg8[%c0_29, %c0_30, %c0_31] : memref<1x3x256xf32, #tpu.memory_space<vmem>>, vector<1x3x256xf32>
    %90 = vector.shape_cast %89 : vector<1x3x256xf32> to vector<3x256xf32>
    %91 = vector.extract_strided_slice %90 {offsets = [0, 0], sizes = [1, 256], strides = [1, 1]} : vector<3x256xf32> to vector<1x256xf32>
    %92 = vector.extract_strided_slice %90 {offsets = [1, 0], sizes = [1, 256], strides = [1, 1]} : vector<3x256xf32> to vector<1x256xf32>
    %93 = vector.extract_strided_slice %90 {offsets = [2, 0], sizes = [1, 256], strides = [1, 1]} : vector<3x256xf32> to vector<1x256xf32>
    %94 = arith.truncf %86 : vector<128x128xf32> to vector<128x128xbf16>
    %cst_32 = arith.constant dense<0.000000e+00> : vector<128x256xf32>
    %95 = tpu.matmul %94, %88, %cst_32 {dimension_numbers = #tpu.dot_dimension_numbers<[1], [0], [0], [1], [0, 0, 1, 1], [], []>} : vector<128x128xbf16>, vector<128x256xbf16>, vector<128x256xf32> -> vector<128x256xf32>
    %96 = vector.broadcast %91 : vector<1x256xf32> to vector<128x256xf32>
    %97 = arith.addf %95, %96 : vector<128x256xf32>
    %cst_33 = arith.constant dense<0.000000e+00> : vector<128xf32>
    %98 = vector.multi_reduction <add>, %97, %cst_33 [1] : vector<128x256xf32> to vector<128xf32>
    %99 = vector.shape_cast %98 : vector<128xf32> to vector<128x1xf32>
    %cst_34 = arith.constant 2.560000e+02 : f32
    %100 = vector.broadcast %cst_34 : f32 to vector<128x1xf32>
    %101 = arith.divf %99, %100 : vector<128x1xf32>
    %102 = vector.broadcast %101 : vector<128x1xf32> to vector<128x256xf32>
    %103 = arith.subf %97, %102 : vector<128x256xf32>
    %104 = arith.mulf %103, %103 : vector<128x256xf32>
    %cst_35 = arith.constant dense<0.000000e+00> : vector<128xf32>
    %105 = vector.multi_reduction <add>, %104, %cst_35 [1] : vector<128x256xf32> to vector<128xf32>
    %106 = vector.shape_cast %105 : vector<128xf32> to vector<128x1xf32>
    %cst_36 = arith.constant 2.560000e+02 : f32
    %107 = vector.broadcast %cst_36 : f32 to vector<128x1xf32>
    %108 = arith.divf %106, %107 : vector<128x1xf32>
    %109 = vector.broadcast %101 : vector<128x1xf32> to vector<128x256xf32>
    %110 = arith.subf %97, %109 : vector<128x256xf32>
    %cst_37 = arith.constant 9.99999974E-6 : f32
    %111 = vector.broadcast %cst_37 : f32 to vector<128x1xf32>
    %112 = arith.addf %108, %111 : vector<128x1xf32>
    %113 = math.rsqrt %112 : vector<128x1xf32>
    %114 = vector.broadcast %113 : vector<128x1xf32> to vector<128x256xf32>
    %115 = arith.mulf %110, %114 : vector<128x256xf32>
    %116 = vector.broadcast %92 : vector<1x256xf32> to vector<128x256xf32>
    %117 = arith.mulf %115, %116 : vector<128x256xf32>
    %118 = vector.broadcast %93 : vector<1x256xf32> to vector<128x256xf32>
    %119 = arith.addf %117, %118 : vector<128x256xf32>
    %cst_38 = arith.constant 0.000000e+00 : f32
    %120 = vector.broadcast %cst_38 : f32 to vector<128x256xf32>
    %121 = arith.maximumf %119, %120 : vector<128x256xf32>
    %c0_39 = arith.constant 0 : index
    %c0_40 = arith.constant 0 : index
    %c0_41 = arith.constant 0 : index
    %122 = vector.load %arg9[%c0_39, %c0_40, %c0_41] : memref<1x256x128xbf16, #tpu.memory_space<vmem>>, vector<1x256x128xbf16>
    %123 = vector.shape_cast %122 : vector<1x256x128xbf16> to vector<256x128xbf16>
    %c0_42 = arith.constant 0 : index
    %c0_43 = arith.constant 0 : index
    %c0_44 = arith.constant 0 : index
    %124 = vector.load %arg10[%c0_42, %c0_43, %c0_44] : memref<1x3x128xf32, #tpu.memory_space<vmem>>, vector<1x3x128xf32>
    %125 = vector.shape_cast %124 : vector<1x3x128xf32> to vector<3x128xf32>
    %126 = vector.extract_strided_slice %125 {offsets = [0, 0], sizes = [1, 128], strides = [1, 1]} : vector<3x128xf32> to vector<1x128xf32>
    %127 = vector.extract_strided_slice %125 {offsets = [1, 0], sizes = [1, 128], strides = [1, 1]} : vector<3x128xf32> to vector<1x128xf32>
    %128 = vector.extract_strided_slice %125 {offsets = [2, 0], sizes = [1, 128], strides = [1, 1]} : vector<3x128xf32> to vector<1x128xf32>
    %129 = arith.truncf %121 : vector<128x256xf32> to vector<128x256xbf16>
    %cst_45 = arith.constant dense<0.000000e+00> : vector<128x128xf32>
    %130 = tpu.matmul %129, %123, %cst_45 {dimension_numbers = #tpu.dot_dimension_numbers<[1], [0], [0], [1], [0, 0, 1, 1], [], []>} : vector<128x256xbf16>, vector<256x128xbf16>, vector<128x128xf32> -> vector<128x128xf32>
    %131 = vector.broadcast %126 : vector<1x128xf32> to vector<128x128xf32>
    %132 = arith.addf %130, %131 : vector<128x128xf32>
    %cst_46 = arith.constant dense<0.000000e+00> : vector<128xf32>
    %133 = vector.multi_reduction <add>, %132, %cst_46 [1] : vector<128x128xf32> to vector<128xf32>
    %134 = vector.shape_cast %133 : vector<128xf32> to vector<128x1xf32>
    %cst_47 = arith.constant 1.280000e+02 : f32
    %135 = vector.broadcast %cst_47 : f32 to vector<128x1xf32>
    %136 = arith.divf %134, %135 : vector<128x1xf32>
    %137 = vector.broadcast %136 : vector<128x1xf32> to vector<128x128xf32>
    %138 = arith.subf %132, %137 : vector<128x128xf32>
    %139 = arith.mulf %138, %138 : vector<128x128xf32>
    %cst_48 = arith.constant dense<0.000000e+00> : vector<128xf32>
    %140 = vector.multi_reduction <add>, %139, %cst_48 [1] : vector<128x128xf32> to vector<128xf32>
    %141 = vector.shape_cast %140 : vector<128xf32> to vector<128x1xf32>
    %cst_49 = arith.constant 1.280000e+02 : f32
    %142 = vector.broadcast %cst_49 : f32 to vector<128x1xf32>
    %143 = arith.divf %141, %142 : vector<128x1xf32>
    %144 = vector.broadcast %136 : vector<128x1xf32> to vector<128x128xf32>
    %145 = arith.subf %132, %144 : vector<128x128xf32>
    %cst_50 = arith.constant 9.99999974E-6 : f32
    %146 = vector.broadcast %cst_50 : f32 to vector<128x1xf32>
    %147 = arith.addf %143, %146 : vector<128x1xf32>
    %148 = math.rsqrt %147 : vector<128x1xf32>
    %149 = vector.broadcast %148 : vector<128x1xf32> to vector<128x128xf32>
    %150 = arith.mulf %145, %149 : vector<128x128xf32>
    %151 = vector.broadcast %127 : vector<1x128xf32> to vector<128x128xf32>
    %152 = arith.mulf %150, %151 : vector<128x128xf32>
    %153 = vector.broadcast %128 : vector<1x128xf32> to vector<128x128xf32>
    %154 = arith.addf %152, %153 : vector<128x128xf32>
    %cst_51 = arith.constant 0.000000e+00 : f32
    %155 = vector.broadcast %cst_51 : f32 to vector<128x128xf32>
    %156 = arith.maximumf %154, %155 : vector<128x128xf32>
    %157 = vector.extract_strided_slice %156 {offsets = [0, 0], sizes = [64, 128], strides = [1, 1]} : vector<128x128xf32> to vector<64x128xf32>
    %cst_52 = arith.constant dense<0xFF800000> : vector<128xf32>
    %158 = vector.multi_reduction <maximumf>, %157, %cst_52 [0] : vector<64x128xf32> to vector<128xf32>
    %159 = vector.shape_cast %158 : vector<128xf32> to vector<1x128xf32>
    %160 = vector.extract_strided_slice %156 {offsets = [64, 0], sizes = [64, 128], strides = [1, 1]} : vector<128x128xf32> to vector<64x128xf32>
    %cst_53 = arith.constant dense<0xFF800000> : vector<128xf32>
    %161 = vector.multi_reduction <maximumf>, %160, %cst_53 [0] : vector<64x128xf32> to vector<128xf32>
    %162 = vector.shape_cast %161 : vector<128xf32> to vector<1x128xf32>
    %163 = tpu.concatenate %159, %162 in 0 : vector<1x128xf32>, vector<1x128xf32> -> vector<2x128xf32>
    %c0_54 = arith.constant 0 : index
    %c0_55 = arith.constant 0 : index
    %c0_56 = arith.constant 0 : index
    %164 = vector.load %arg11[%c0_54, %c0_55, %c0_56] : memref<1x2x128xf32, #tpu.memory_space<vmem>>, vector<1x2x128xf32>
    %165 = vector.shape_cast %164 : vector<1x2x128xf32> to vector<2x128xf32>
    %166 = vector.shape_cast %163 : vector<2x128xf32> to vector<1x2x128xf32>
    tpu.vector_store %arg11[%c0_54, %c0_55, %c0_56], %166 {strides = array<i32>} : memref<1x2x128xf32, #tpu.memory_space<vmem>>, vector<1x2x128xf32>,
    return
  }
  func.func @transform_0(%arg0: i32, %arg1: i32) -> (i32, i32, i32) {
    %c0_i32 = arith.constant 0 : i32
    %c0_i32_0 = arith.constant 0 : i32
    return %arg0, %arg1, %c0_i32 : i32, i32, i32
  }
  func.func @transform_1(%arg0: i32, %arg1: i32) -> (i32, i32, i32) {
    %c0_i32 = arith.constant 0 : i32
    %c0_i32_0 = arith.constant 0 : i32
    %c0_i32_1 = arith.constant 0 : i32
    return %arg0, %c0_i32, %c0_i32_0 : i32, i32, i32
  }
  func.func @transform_2(%arg0: i32, %arg1: i32) -> (i32, i32, i32) {
    %c0_i32 = arith.constant 0 : i32
    %c0_i32_0 = arith.constant 0 : i32
    %c0_i32_1 = arith.constant 0 : i32
    return %arg0, %c0_i32, %c0_i32_0 : i32, i32, i32
  }
  func.func @transform_3(%arg0: i32, %arg1: i32) -> (i32, i32, i32) {
    %c0_i32 = arith.constant 0 : i32
    %c0_i32_0 = arith.constant 0 : i32
    %c0_i32_1 = arith.constant 0 : i32
    return %arg0, %c0_i32, %c0_i32_0 : i32, i32, i32
  }
  func.func @transform_4(%arg0: i32, %arg1: i32) -> (i32, i32, i32) {
    %c0_i32 = arith.constant 0 : i32
    %c0_i32_0 = arith.constant 0 : i32
    %c0_i32_1 = arith.constant 0 : i32
    return %arg0, %c0_i32, %c0_i32_0 : i32, i32, i32
  }
  func.func @transform_5(%arg0: i32, %arg1: i32) -> (i32, i32, i32) {
    %c0_i32 = arith.constant 0 : i32
    %c0_i32_0 = arith.constant 0 : i32
    %c0_i32_1 = arith.constant 0 : i32
    return %arg0, %c0_i32, %c0_i32_0 : i32, i32, i32
  }
  func.func @transform_6(%arg0: i32, %arg1: i32) -> (i32, i32, i32) {
    %c0_i32 = arith.constant 0 : i32
    %c0_i32_0 = arith.constant 0 : i32
    %c0_i32_1 = arith.constant 0 : i32
    return %arg0, %c0_i32, %c0_i32_0 : i32, i32, i32
  }
  func.func @transform_7(%arg0: i32, %arg1: i32) -> (i32, i32, i32) {
    %c0_i32 = arith.constant 0 : i32
    %c0_i32_0 = arith.constant 0 : i32
    %c0_i32_1 = arith.constant 0 : i32
    return %arg0, %c0_i32, %c0_i32_0 : i32, i32, i32
  }
  func.func @transform_8(%arg0: i32, %arg1: i32) -> (i32, i32, i32) {
    %c0_i32 = arith.constant 0 : i32
    %c0_i32_0 = arith.constant 0 : i32
    %c0_i32_1 = arith.constant 0 : i32
    return %arg0, %c0_i32, %c0_i32_0 : i32, i32, i32
  }
  func.func @transform_9(%arg0: i32, %arg1: i32) -> (i32, i32, i32) {
    %c0_i32 = arith.constant 0 : i32
    %c0_i32_0 = arith.constant 0 : i32
    return %arg0, %arg1, %c0_i32 : i32, i32, i32
  }
}

module attributes {stable_mosaic.version = 11 : i64} {
  func.func @_actor_head_kernel(%arg0: i32, %arg1: memref<2x128xf32, #tpu.memory_space<vmem>>, %arg2: memref<2x128xf32, #tpu.memory_space<vmem>>, %arg3: memref<128x256xbf16, #tpu.memory_space<vmem>>, %arg4: memref<128x256xbf16, #tpu.memory_space<vmem>>, %arg5: memref<3x256xf32, #tpu.memory_space<vmem>>, %arg6: memref<256x128xbf16, #tpu.memory_space<vmem>>, %arg7: memref<3x128xf32, #tpu.memory_space<vmem>>, %arg8: memref<128x64xbf16, #tpu.memory_space<vmem>>, %arg9: memref<3x64xf32, #tpu.memory_space<vmem>>, %arg10: memref<64x4xf32, #tpu.memory_space<vmem>>, %arg11: memref<1x4xf32, #tpu.memory_space<vmem>>, %arg12: memref<2x8xf32, #tpu.memory_space<vmem>>) attributes {dimension_semantics = [#tpu.dimension_semantics<arbitrary>], iteration_bounds = array<i64: 1>, scalar_prefetch = 0 : i64, scratch_operands = 0 : i64, tpu.core_type = #tpu.core_type<tc>, window_params = [{pipeline_mode = #tpu.pipeline_mode<synchronous>, transform_indices = @transform_0, window_bounds = array<i64: 2, 128>}, {pipeline_mode = #tpu.pipeline_mode<synchronous>, transform_indices = @transform_1, window_bounds = array<i64: 2, 128>}, {pipeline_mode = #tpu.pipeline_mode<synchronous>, transform_indices = @transform_2, window_bounds = array<i64: 128, 256>}, {pipeline_mode = #tpu.pipeline_mode<synchronous>, transform_indices = @transform_3, window_bounds = array<i64: 128, 256>}, {pipeline_mode = #tpu.pipeline_mode<synchronous>, transform_indices = @transform_4, window_bounds = array<i64: 3, 256>}, {pipeline_mode = #tpu.pipeline_mode<synchronous>, transform_indices = @transform_5, window_bounds = array<i64: 256, 128>}, {pipeline_mode = #tpu.pipeline_mode<synchronous>, transform_indices = @transform_6, window_bounds = array<i64: 3, 128>}, {pipeline_mode = #tpu.pipeline_mode<synchronous>, transform_indices = @transform_7, window_bounds = array<i64: 128, 64>}, {pipeline_mode = #tpu.pipeline_mode<synchronous>, transform_indices = @transform_8, window_bounds = array<i64: 3, 64>}, {pipeline_mode = #tpu.pipeline_mode<synchronous>, transform_indices = @transform_9, window_bounds = array<i64: 64, 4>}, {pipeline_mode = #tpu.pipeline_mode<synchronous>, transform_indices = @transform_10, window_bounds = array<i64: 1, 4>}, {pipeline_mode = #tpu.pipeline_mode<synchronous>, transform_indices = @transform_11, window_bounds = array<i64: 2, 8>}]} {
    %c0 = arith.constant 0 : index
    %c0_0 = arith.constant 0 : index
    %0 = vector.load %arg1[%c0, %c0_0] : memref<2x128xf32, #tpu.memory_space<vmem>>, vector<2x128xf32>
    %1 = arith.truncf %0 : vector<2x128xf32> to vector<2x128xbf16>
    %c0_1 = arith.constant 0 : index
    %c0_2 = arith.constant 0 : index
    %2 = vector.load %arg2[%c0_1, %c0_2] : memref<2x128xf32, #tpu.memory_space<vmem>>, vector<2x128xf32>
    %3 = arith.truncf %2 : vector<2x128xf32> to vector<2x128xbf16>
    %c0_3 = arith.constant 0 : index
    %c0_4 = arith.constant 0 : index
    %4 = vector.load %arg5[%c0_3, %c0_4] : memref<3x256xf32, #tpu.memory_space<vmem>>, vector<3x256xf32>
    %c0_5 = arith.constant 0 : index
    %c0_6 = arith.constant 0 : index
    %5 = vector.load %arg3[%c0_5, %c0_6] : memref<128x256xbf16, #tpu.memory_space<vmem>>, vector<128x256xbf16>
    %cst = arith.constant dense<0.000000e+00> : vector<2x256xf32>
    %6 = tpu.matmul %1, %5, %cst {dimension_numbers = #tpu.dot_dimension_numbers<[1], [0], [0], [1], [0, 0, 1, 1], [], []>} : vector<2x128xbf16>, vector<128x256xbf16>, vector<2x256xf32> -> vector<2x256xf32>
    %c0_7 = arith.constant 0 : index
    %c0_8 = arith.constant 0 : index
    %7 = vector.load %arg4[%c0_7, %c0_8] : memref<128x256xbf16, #tpu.memory_space<vmem>>, vector<128x256xbf16>
    %cst_9 = arith.constant dense<0.000000e+00> : vector<2x256xf32>
    %8 = tpu.matmul %3, %7, %cst_9 {dimension_numbers = #tpu.dot_dimension_numbers<[1], [0], [0], [1], [0, 0, 1, 1], [], []>} : vector<2x128xbf16>, vector<128x256xbf16>, vector<2x256xf32> -> vector<2x256xf32>
    %9 = arith.addf %6, %8 : vector<2x256xf32>
    %10 = vector.extract_strided_slice %4 {offsets = [0, 0], sizes = [1, 256], strides = [1, 1]} : vector<3x256xf32> to vector<1x256xf32>
    %11 = vector.broadcast %10 : vector<1x256xf32> to vector<2x256xf32>
    %12 = arith.addf %9, %11 : vector<2x256xf32>
    %13 = vector.extract_strided_slice %4 {offsets = [1, 0], sizes = [1, 256], strides = [1, 1]} : vector<3x256xf32> to vector<1x256xf32>
    %14 = vector.extract_strided_slice %4 {offsets = [2, 0], sizes = [1, 256], strides = [1, 1]} : vector<3x256xf32> to vector<1x256xf32>
    %cst_10 = arith.constant dense<0.000000e+00> : vector<2xf32>
    %15 = vector.multi_reduction <add>, %12, %cst_10 [1] : vector<2x256xf32> to vector<2xf32>
    %16 = vector.shape_cast %15 : vector<2xf32> to vector<2x1xf32>
    %cst_11 = arith.constant 2.560000e+02 : f32
    %17 = vector.broadcast %cst_11 : f32 to vector<2x1xf32>
    %18 = arith.divf %16, %17 : vector<2x1xf32>
    %19 = vector.broadcast %18 : vector<2x1xf32> to vector<2x256xf32>
    %20 = arith.subf %12, %19 : vector<2x256xf32>
    %21 = arith.mulf %20, %20 : vector<2x256xf32>
    %cst_12 = arith.constant dense<0.000000e+00> : vector<2xf32>
    %22 = vector.multi_reduction <add>, %21, %cst_12 [1] : vector<2x256xf32> to vector<2xf32>
    %23 = vector.shape_cast %22 : vector<2xf32> to vector<2x1xf32>
    %cst_13 = arith.constant 2.560000e+02 : f32
    %24 = vector.broadcast %cst_13 : f32 to vector<2x1xf32>
    %25 = arith.divf %23, %24 : vector<2x1xf32>
    %26 = vector.broadcast %18 : vector<2x1xf32> to vector<2x256xf32>
    %27 = arith.subf %12, %26 : vector<2x256xf32>
    %cst_14 = arith.constant 9.99999974E-6 : f32
    %28 = vector.broadcast %cst_14 : f32 to vector<2x1xf32>
    %29 = arith.addf %25, %28 : vector<2x1xf32>
    %30 = math.rsqrt %29 : vector<2x1xf32>
    %31 = vector.broadcast %30 : vector<2x1xf32> to vector<2x256xf32>
    %32 = arith.mulf %27, %31 : vector<2x256xf32>
    %33 = vector.broadcast %13 : vector<1x256xf32> to vector<2x256xf32>
    %34 = arith.mulf %32, %33 : vector<2x256xf32>
    %35 = vector.broadcast %14 : vector<1x256xf32> to vector<2x256xf32>
    %36 = arith.addf %34, %35 : vector<2x256xf32>
    %cst_15 = arith.constant 0.000000e+00 : f32
    %37 = vector.broadcast %cst_15 : f32 to vector<2x256xf32>
    %38 = arith.maximumf %36, %37 : vector<2x256xf32>
    %c0_16 = arith.constant 0 : index
    %c0_17 = arith.constant 0 : index
    %39 = vector.load %arg6[%c0_16, %c0_17] : memref<256x128xbf16, #tpu.memory_space<vmem>>, vector<256x128xbf16>
    %c0_18 = arith.constant 0 : index
    %c0_19 = arith.constant 0 : index
    %40 = vector.load %arg7[%c0_18, %c0_19] : memref<3x128xf32, #tpu.memory_space<vmem>>, vector<3x128xf32>
    %41 = vector.extract_strided_slice %40 {offsets = [0, 0], sizes = [1, 128], strides = [1, 1]} : vector<3x128xf32> to vector<1x128xf32>
    %42 = vector.extract_strided_slice %40 {offsets = [1, 0], sizes = [1, 128], strides = [1, 1]} : vector<3x128xf32> to vector<1x128xf32>
    %43 = vector.extract_strided_slice %40 {offsets = [2, 0], sizes = [1, 128], strides = [1, 1]} : vector<3x128xf32> to vector<1x128xf32>
    %44 = arith.truncf %38 : vector<2x256xf32> to vector<2x256xbf16>
    %cst_20 = arith.constant dense<0.000000e+00> : vector<2x128xf32>
    %45 = tpu.matmul %44, %39, %cst_20 {dimension_numbers = #tpu.dot_dimension_numbers<[1], [0], [0], [1], [0, 0, 1, 1], [], []>} : vector<2x256xbf16>, vector<256x128xbf16>, vector<2x128xf32> -> vector<2x128xf32>
    %46 = vector.broadcast %41 : vector<1x128xf32> to vector<2x128xf32>
    %47 = arith.addf %45, %46 : vector<2x128xf32>
    %cst_21 = arith.constant dense<0.000000e+00> : vector<2xf32>
    %48 = vector.multi_reduction <add>, %47, %cst_21 [1] : vector<2x128xf32> to vector<2xf32>
    %49 = vector.shape_cast %48 : vector<2xf32> to vector<2x1xf32>
    %cst_22 = arith.constant 1.280000e+02 : f32
    %50 = vector.broadcast %cst_22 : f32 to vector<2x1xf32>
    %51 = arith.divf %49, %50 : vector<2x1xf32>
    %52 = vector.broadcast %51 : vector<2x1xf32> to vector<2x128xf32>
    %53 = arith.subf %47, %52 : vector<2x128xf32>
    %54 = arith.mulf %53, %53 : vector<2x128xf32>
    %cst_23 = arith.constant dense<0.000000e+00> : vector<2xf32>
    %55 = vector.multi_reduction <add>, %54, %cst_23 [1] : vector<2x128xf32> to vector<2xf32>
    %56 = vector.shape_cast %55 : vector<2xf32> to vector<2x1xf32>
    %cst_24 = arith.constant 1.280000e+02 : f32
    %57 = vector.broadcast %cst_24 : f32 to vector<2x1xf32>
    %58 = arith.divf %56, %57 : vector<2x1xf32>
    %59 = vector.broadcast %51 : vector<2x1xf32> to vector<2x128xf32>
    %60 = arith.subf %47, %59 : vector<2x128xf32>
    %cst_25 = arith.constant 9.99999974E-6 : f32
    %61 = vector.broadcast %cst_25 : f32 to vector<2x1xf32>
    %62 = arith.addf %58, %61 : vector<2x1xf32>
    %63 = math.rsqrt %62 : vector<2x1xf32>
    %64 = vector.broadcast %63 : vector<2x1xf32> to vector<2x128xf32>
    %65 = arith.mulf %60, %64 : vector<2x128xf32>
    %66 = vector.broadcast %42 : vector<1x128xf32> to vector<2x128xf32>
    %67 = arith.mulf %65, %66 : vector<2x128xf32>
    %68 = vector.broadcast %43 : vector<1x128xf32> to vector<2x128xf32>
    %69 = arith.addf %67, %68 : vector<2x128xf32>
    %cst_26 = arith.constant 0.000000e+00 : f32
    %70 = vector.broadcast %cst_26 : f32 to vector<2x128xf32>
    %71 = arith.maximumf %69, %70 : vector<2x128xf32>
    %c0_27 = arith.constant 0 : index
    %c0_28 = arith.constant 0 : index
    %72 = vector.load %arg8[%c0_27, %c0_28] : memref<128x64xbf16, #tpu.memory_space<vmem>>, vector<128x64xbf16>
    %c0_29 = arith.constant 0 : index
    %c0_30 = arith.constant 0 : index
    %73 = vector.load %arg9[%c0_29, %c0_30] : memref<3x64xf32, #tpu.memory_space<vmem>>, vector<3x64xf32>
    %74 = vector.extract_strided_slice %73 {offsets = [0, 0], sizes = [1, 64], strides = [1, 1]} : vector<3x64xf32> to vector<1x64xf32>
    %75 = vector.extract_strided_slice %73 {offsets = [1, 0], sizes = [1, 64], strides = [1, 1]} : vector<3x64xf32> to vector<1x64xf32>
    %76 = vector.extract_strided_slice %73 {offsets = [2, 0], sizes = [1, 64], strides = [1, 1]} : vector<3x64xf32> to vector<1x64xf32>
    %77 = arith.truncf %71 : vector<2x128xf32> to vector<2x128xbf16>
    %cst_31 = arith.constant dense<0.000000e+00> : vector<2x64xf32>
    %78 = tpu.matmul %77, %72, %cst_31 {dimension_numbers = #tpu.dot_dimension_numbers<[1], [0], [0], [1], [0, 0, 1, 1], [], []>} : vector<2x128xbf16>, vector<128x64xbf16>, vector<2x64xf32> -> vector<2x64xf32>
    %79 = vector.broadcast %74 : vector<1x64xf32> to vector<2x64xf32>
    %80 = arith.addf %78, %79 : vector<2x64xf32>
    %cst_32 = arith.constant dense<0.000000e+00> : vector<2xf32>
    %81 = vector.multi_reduction <add>, %80, %cst_32 [1] : vector<2x64xf32> to vector<2xf32>
    %82 = vector.shape_cast %81 : vector<2xf32> to vector<2x1xf32>
    %cst_33 = arith.constant 6.400000e+01 : f32
    %83 = vector.broadcast %cst_33 : f32 to vector<2x1xf32>
    %84 = arith.divf %82, %83 : vector<2x1xf32>
    %85 = vector.broadcast %84 : vector<2x1xf32> to vector<2x64xf32>
    %86 = arith.subf %80, %85 : vector<2x64xf32>
    %87 = arith.mulf %86, %86 : vector<2x64xf32>
    %cst_34 = arith.constant dense<0.000000e+00> : vector<2xf32>
    %88 = vector.multi_reduction <add>, %87, %cst_34 [1] : vector<2x64xf32> to vector<2xf32>
    %89 = vector.shape_cast %88 : vector<2xf32> to vector<2x1xf32>
    %cst_35 = arith.constant 6.400000e+01 : f32
    %90 = vector.broadcast %cst_35 : f32 to vector<2x1xf32>
    %91 = arith.divf %89, %90 : vector<2x1xf32>
    %92 = vector.broadcast %84 : vector<2x1xf32> to vector<2x64xf32>
    %93 = arith.subf %80, %92 : vector<2x64xf32>
    %cst_36 = arith.constant 9.99999974E-6 : f32
    %94 = vector.broadcast %cst_36 : f32 to vector<2x1xf32>
    %95 = arith.addf %91, %94 : vector<2x1xf32>
    %96 = math.rsqrt %95 : vector<2x1xf32>
    %97 = vector.broadcast %96 : vector<2x1xf32> to vector<2x64xf32>
    %98 = arith.mulf %93, %97 : vector<2x64xf32>
    %99 = vector.broadcast %75 : vector<1x64xf32> to vector<2x64xf32>
    %100 = arith.mulf %98, %99 : vector<2x64xf32>
    %101 = vector.broadcast %76 : vector<1x64xf32> to vector<2x64xf32>
    %102 = arith.addf %100, %101 : vector<2x64xf32>
    %cst_37 = arith.constant 0.000000e+00 : f32
    %103 = vector.broadcast %cst_37 : f32 to vector<2x64xf32>
    %104 = arith.maximumf %102, %103 : vector<2x64xf32>
    %c0_38 = arith.constant 0 : index
    %c0_39 = arith.constant 0 : index
    %105 = vector.load %arg10[%c0_38, %c0_39] : memref<64x4xf32, #tpu.memory_space<vmem>>, vector<64x4xf32>
    %cst_40 = arith.constant dense<0.000000e+00> : vector<2x4xf32>
    %106 = tpu.matmul %104, %105, %cst_40 {dimension_numbers = #tpu.dot_dimension_numbers<[1], [0], [0], [1], [0, 0, 1, 1], [], []>} : vector<2x64xf32>, vector<64x4xf32>, vector<2x4xf32> -> vector<2x4xf32>
    %c0_41 = arith.constant 0 : index
    %c0_42 = arith.constant 0 : index
    %107 = vector.load %arg11[%c0_41, %c0_42] : memref<1x4xf32, #tpu.memory_space<vmem>>, vector<1x4xf32>
    %108 = vector.broadcast %107 : vector<1x4xf32> to vector<2x4xf32>
    %109 = arith.addf %106, %108 : vector<2x4xf32>
    %110 = vector.extract_strided_slice %109 {offsets = [0, 0], sizes = [2, 3], strides = [1, 1]} : vector<2x4xf32> to vector<2x3xf32>
    %111 = vector.extract_strided_slice %109 {offsets = [0, 3], sizes = [2, 1], strides = [1, 1]} : vector<2x4xf32> to vector<2x1xf32>
    %cst_43 = arith.constant 5.000000e-01 : f32
    %112 = vector.broadcast %cst_43 : f32 to vector<2x1xf32>
    %113 = arith.mulf %112, %111 : vector<2x1xf32>
    %114 = math.sin %113 : vector<2x1xf32>
    %115 = math.cos %113 : vector<2x1xf32>
    %116 = arith.mulf %114, %114 : vector<2x1xf32>
    %117 = arith.mulf %115, %115 : vector<2x1xf32>
    %118 = arith.addf %116, %117 : vector<2x1xf32>
    %cst_44 = arith.constant 1.000000e-24 : f32
    %119 = vector.broadcast %cst_44 : f32 to vector<2x1xf32>
    %120 = arith.maximumf %118, %119 : vector<2x1xf32>
    %121 = math.rsqrt %120 : vector<2x1xf32>
    %cst_45 = arith.constant 0.000000e+00 : f32
    %122 = vector.broadcast %cst_45 : f32 to vector<2x1xf32>
    %123 = arith.mulf %114, %121 : vector<2x1xf32>
    %124 = arith.mulf %115, %121 : vector<2x1xf32>
    %125 = tpu.concatenate %110, %122, %122, %123, %124, %122 in 1 : vector<2x3xf32>, vector<2x1xf32>, vector<2x1xf32>, vector<2x1xf32>, vector<2x1xf32>, vector<2x1xf32> -> vector<2x8xf32>
    %c0_46 = arith.constant 0 : index
    %c0_47 = arith.constant 0 : index
    %126 = vector.load %arg12[%c0_46, %c0_47] : memref<2x8xf32, #tpu.memory_space<vmem>>, vector<2x8xf32>
    tpu.vector_store %arg12[%c0_46, %c0_47], %125 {strides = array<i32>} : memref<2x8xf32, #tpu.memory_space<vmem>>, vector<2x8xf32>,
    return
  }
  func.func @transform_0(%arg0: i32) -> (i32, i32) {
    %c0_i32 = arith.constant 0 : i32
    %c0_i32_0 = arith.constant 0 : i32
    %c0_i32_1 = arith.constant 0 : i32
    return %c0_i32, %c0_i32_0 : i32, i32
  }
  func.func @transform_1(%arg0: i32) -> (i32, i32) {
    %c0_i32 = arith.constant 0 : i32
    %c0_i32_0 = arith.constant 0 : i32
    %c0_i32_1 = arith.constant 0 : i32
    return %c0_i32, %c0_i32_0 : i32, i32
  }
  func.func @transform_2(%arg0: i32) -> (i32, i32) {
    %c0_i32 = arith.constant 0 : i32
    %c0_i32_0 = arith.constant 0 : i32
    %c0_i32_1 = arith.constant 0 : i32
    return %c0_i32, %c0_i32_0 : i32, i32
  }
  func.func @transform_3(%arg0: i32) -> (i32, i32) {
    %c0_i32 = arith.constant 0 : i32
    %c0_i32_0 = arith.constant 0 : i32
    %c0_i32_1 = arith.constant 0 : i32
    return %c0_i32, %c0_i32_0 : i32, i32
  }
  func.func @transform_4(%arg0: i32) -> (i32, i32) {
    %c0_i32 = arith.constant 0 : i32
    %c0_i32_0 = arith.constant 0 : i32
    %c0_i32_1 = arith.constant 0 : i32
    return %c0_i32, %c0_i32_0 : i32, i32
  }
  func.func @transform_5(%arg0: i32) -> (i32, i32) {
    %c0_i32 = arith.constant 0 : i32
    %c0_i32_0 = arith.constant 0 : i32
    %c0_i32_1 = arith.constant 0 : i32
    return %c0_i32, %c0_i32_0 : i32, i32
  }
  func.func @transform_6(%arg0: i32) -> (i32, i32) {
    %c0_i32 = arith.constant 0 : i32
    %c0_i32_0 = arith.constant 0 : i32
    %c0_i32_1 = arith.constant 0 : i32
    return %c0_i32, %c0_i32_0 : i32, i32
  }
  func.func @transform_7(%arg0: i32) -> (i32, i32) {
    %c0_i32 = arith.constant 0 : i32
    %c0_i32_0 = arith.constant 0 : i32
    %c0_i32_1 = arith.constant 0 : i32
    return %c0_i32, %c0_i32_0 : i32, i32
  }
  func.func @transform_8(%arg0: i32) -> (i32, i32) {
    %c0_i32 = arith.constant 0 : i32
    %c0_i32_0 = arith.constant 0 : i32
    %c0_i32_1 = arith.constant 0 : i32
    return %c0_i32, %c0_i32_0 : i32, i32
  }
  func.func @transform_9(%arg0: i32) -> (i32, i32) {
    %c0_i32 = arith.constant 0 : i32
    %c0_i32_0 = arith.constant 0 : i32
    %c0_i32_1 = arith.constant 0 : i32
    return %c0_i32, %c0_i32_0 : i32, i32
  }
  func.func @transform_10(%arg0: i32) -> (i32, i32) {
    %c0_i32 = arith.constant 0 : i32
    %c0_i32_0 = arith.constant 0 : i32
    %c0_i32_1 = arith.constant 0 : i32
    return %c0_i32, %c0_i32_0 : i32, i32
  }
  func.func @transform_11(%arg0: i32) -> (i32, i32) {
    %c0_i32 = arith.constant 0 : i32
    %c0_i32_0 = arith.constant 0 : i32
    %c0_i32_1 = arith.constant 0 : i32
    return %c0_i32, %c0_i32_0 : i32, i32
  }
}

</mosaic_0001>

<bundles_post_ra>
// kernel: stable_placement_policy_determ_forward.3
= control target key start
LH: loop header
LB: loop body
LE: loop exit
PB: predicated region body
PF: predicated region fallthrough
CT: control target
= control target key end

     0   :  { %s1856_s0 = inlined_call_operand.vmem [shape: f32[2,128], index: 0, kind: input, shape index: {}]   ;;  %s1857_s1 = inlined_call_operand.vmem [shape: f32[2,128], index: 1, kind: input, shape index: {}]   ;;  %s1858_s2 = inlined_call_operand.vmem [shape: bf16[128,256], index: 2, kind: input, shape index: {}]   ;;  %s1859_s3 = inlined_call_operand.vmem [shape: bf16[128,256], index: 3, kind: input, shape index: {}]   ;;  %s1860_s4 = inlined_call_operand.vmem [shape: f32[3,256], index: 4, kind: input, shape index: {}]   ;;  %s1861_s5 = inlined_call_operand.vmem [shape: bf16[256,128], index: 5, kind: input, shape index: {}]   ;;  %s1862_s6 = inlined_call_operand.vmem [shape: f32[3,128], index: 6, kind: input, shape index: {}]   ;;  %s1863_s7 = inlined_call_operand.vmem [shape: bf16[128,64], index: 7, kind: input, shape index: {}]   ;;  %s1864_s8 = inlined_call_operand.vmem [shape: f32[3,64], index: 8, kind: input, shape index: {}]   ;;  %s1865_s9 = inlined_call_operand.vmem [shape: f32[64,4], index: 9, kind: input, shape index: {}]   ;;  %s1866_s10 = inlined_call_operand.vmem [shape: f32[1,4], index: 10, kind: input, shape index: {}]   ;;  %s1867_s11 = inlined_call_operand.hbm [shape: f32[2,8], index: 11, kind: output, shape index: {}]  }
   0x1   :  { %v1115_v0 = vld [vmem:[%s1859_s3 + $0x70] sm:$0xf]  ;;  %v1319_v1 = vld [vmem:[%s1859_s3 + $0x74] sm:$0xf0]  ;;  %v1318_v2 = vld [vmem:[%s1859_s3 + $0x74] sm:$0xf] }
   0x2   :  { %v1116_v3 = vor.u32 %v1319_v1, %v1115_v0  ;;  %v1117_v4 = vld [vmem:[%s1859_s3 + $0x78] sm:$0xf0]  ;;  %v1179_v5 = vld [vmem:[%s1858_s2 + $0x70] sm:$0xf]  ;;  %v1303_v6 = vld [vmem:[%s1858_s2 + $0x74] sm:$0xf0] }
   0x3   :  { %v1120_v7 = vor.u32 %v1318_v2, %v1117_v4  ;;  %v1180_v8 = vor.u32 %v1303_v6, %v1179_v5  ;;  %v1302_v9 = vld [vmem:[%s1858_s2 + $0x74] sm:$0xf]  ;;  %v1181_v10 = vld [vmem:[%s1858_s2 + $0x78] sm:$0xf0]  ;;  %v1107_v11 = vld [vmem:[%s1859_s3 + $0x60] sm:$0xf] }
   0x4   :  { %156 = vmatpush.bf16.msra.mxu0 %v1116_v3  ;;  %v1184_v12 = vor.u32 %v1302_v9, %v1181_v10  ;;  %v1317_v13 = vld [vmem:[%s1859_s3 + $0x64] sm:$0xf0]  ;;  %v1316_v14 = vld [vmem:[%s1859_s3 + $0x64] sm:$0xf]  ;;  %v1109_v15 = vld [vmem:[%s1859_s3 + $0x68] sm:$0xf0] }
   0x5   :  { %169 = vmatpush.bf16.msra.mxu1 %v1120_v7  ;;  %262 = vmatpush.bf16.msra.mxu2 %v1180_v8  ;;  %v1108_v16 = vor.u32 %v1317_v13, %v1107_v11  ;;  %v1112_v17 = vor.u32 %v1316_v14, %v1109_v15  ;;  %v1171_v18 = vld [vmem:[%s1858_s2 + $0x60] sm:$0xf]  ;;  %v1301_v19 = vld [vmem:[%s1858_s2 + $0x64] sm:$0xf0]  ;;  %v1300_v20 = vld [vmem:[%s1858_s2 + $0x64] sm:$0xf] }
   0x6   :  { %275 = vmatpush.bf16.msra.mxu3 %v1184_v12  ;;  %v1172_v21 = vor.u32 %v1301_v19, %v1171_v18  ;;  %v1173_v22 = vld [vmem:[%s1858_s2 + $0x68] sm:$0xf0]  ;;  %v1099_v23 = vld [vmem:[%s1859_s3 + $0x50] sm:$0xf]  ;;  %v1315_v24 = vld [vmem:[%s1859_s3 + $0x54] sm:$0xf0] }
   0x7   :  { %v1176_v25 = vor.u32 %v1300_v20, %v1173_v22  ;;  %v1314_v26 = vld [vmem:[%s1859_s3 + $0x54] sm:$0xf]  ;;  %v1101_v27 = vld [vmem:[%s1859_s3 + $0x58] sm:$0xf0]  ;;  %v1163_v28 = vld [vmem:[%s1858_s2 + $0x50] sm:$0xf]  ;;  %v1100_v29 = vor.u32 %v1315_v24, %v1099_v23 }
   0x8   :  { %157 = vmatpush.bf16.msra.mxu0 %v1108_v16  ;;  %v1299_v30 = vld [vmem:[%s1858_s2 + $0x54] sm:$0xf0]  ;;  %v1298_v31 = vld [vmem:[%s1858_s2 + $0x54] sm:$0xf]  ;;  %v1165_v32 = vld [vmem:[%s1858_s2 + $0x58] sm:$0xf0]  ;;  %v1104_v33 = vor.u32 %v1314_v26, %v1101_v27 }
   0x9   :  { %170 = vmatpush.bf16.msra.mxu1 %v1112_v17  ;;  %263 = vmatpush.bf16.msra.mxu2 %v1172_v21  ;;  %v1164_v34 = vor.u32 %v1299_v30, %v1163_v28  ;;  %v1091_v35 = vld [vmem:[%s1859_s3 + $0x40] sm:$0xf]  ;;  %v1313_v36 = vld [vmem:[%s1859_s3 + $0x44] sm:$0xf0]  ;;  %v1312_v37 = vld [vmem:[%s1859_s3 + $0x44] sm:$0xf]  ;;  %v1168_v38 = vor.u32 %v1298_v31, %v1165_v32 }
   0xa   :  { %276 = vmatpush.bf16.msra.mxu3 %v1176_v25  ;;  %v1093_v39 = vld [vmem:[%s1859_s3 + $0x48] sm:$0xf0]  ;;  %v1155_v40 = vld [vmem:[%s1858_s2 + $0x40] sm:$0xf]  ;;  %v1297_v41 = vld [vmem:[%s1858_s2 + $0x44] sm:$0xf0]  ;;  %v1092_v44 = vor.u32 %v1313_v36, %v1091_v35 }
   0xb   :  { %v1296_v42 = vld [vmem:[%s1858_s2 + $0x44] sm:$0xf]  ;;  %v1157_v43 = vld [vmem:[%s1858_s2 + $0x48] sm:$0xf0]  ;;  %v1096_v45 = vor.u32 %v1312_v37, %v1093_v39  ;;  %v1156_v46 = vor.u32 %v1297_v41, %v1155_v40  ;;  %v1083_v47 = vld [vmem:[%s1859_s3 + $0x30] sm:$0xf] }
   0xc   :  { %158 = vmatpush.bf16.msra.mxu0 %v1100_v29  ;;  %v1311_v48 = vld [vmem:[%s1859_s3 + $0x34] sm:$0xf0]  ;;  %v1310_v49 = vld [vmem:[%s1859_s3 + $0x34] sm:$0xf]  ;;  %v1160_v50 = vor.u32 %v1296_v42, %v1157_v43  ;;  %v1085_v51 = vld [vmem:[%s1859_s3 + $0x38] sm:$0xf0] }
   0xd   :  { %171 = vmatpush.bf16.msra.mxu1 %v1104_v33  ;;  %264 = vmatpush.bf16.msra.mxu2 %v1164_v34  ;;  %v1147_v52 = vld [vmem:[%s1858_s2 + $0x30] sm:$0xf]  ;;  %v1295_v53 = vld [vmem:[%s1858_s2 + $0x34] sm:$0xf0]  ;;  %v1294_v54 = vld [vmem:[%s1858_s2 + $0x34] sm:$0xf]  ;;  %v1084_v56 = vor.u32 %v1311_v48, %v1083_v47  ;;  %v1088_v57 = vor.u32 %v1310_v49, %v1085_v51 }
   0xe   :  { %277 = vmatpush.bf16.msra.mxu3 %v1168_v38  ;;  %v1149_v55 = vld [vmem:[%s1858_s2 + $0x38] sm:$0xf0]  ;;  %v1148_v58 = vor.u32 %v1295_v53, %v1147_v52  ;;  %v1075_v59 = vld [vmem:[%s1859_s3 + $0x20] sm:$0xf]  ;;  %v1309_v60 = vld [vmem:[%s1859_s3 + $0x24] sm:$0xf0] }
   0xf   :  { %v1308_v61 = vld [vmem:[%s1859_s3 + $0x24] sm:$0xf]  ;;  %v1152_v62 = vor.u32 %v1294_v54, %v1149_v55  ;;  %v1077_v63 = vld [vmem:[%s1859_s3 + $0x28] sm:$0xf0]  ;;  %v1139_v0 = vld [vmem:[%s1858_s2 + $0x20] sm:$0xf]  ;;  %v1076_v4 = vor.u32 %v1309_v60, %v1075_v59 }
  0x10   :  { %159 = vmatpush.bf16.msra.mxu0 %v1092_v44  ;;  %v1293_v1 = vld [vmem:[%s1858_s2 + $0x24] sm:$0xf0]  ;;  %v1292_v2 = vld [vmem:[%s1858_s2 + $0x24] sm:$0xf]  ;;  %v1141_v3 = vld [vmem:[%s1858_s2 + $0x28] sm:$0xf0]  ;;  %v1080_v6 = vor.u32 %v1308_v61, %v1077_v63 }
  0x11   :  { %172 = vmatpush.bf16.msra.mxu1 %v1096_v45  ;;  %265 = vmatpush.bf16.msra.mxu2 %v1156_v46  ;;  %v1067_v5 = vld [vmem:[%s1859_s3 + $0x10] sm:$0xf]  ;;  %v1140_v7 = vor.u32 %v1293_v1, %v1139_v0  ;;  %v1307_v8 = vld [vmem:[%s1859_s3 + $0x14] sm:$0xf0]  ;;  %v1306_v9 = vld [vmem:[%s1859_s3 + $0x14] sm:$0xf]  ;;  %v1144_v11 = vor.u32 %v1292_v2, %v1141_v3 }
  0x12   :  { %278 = vmatpush.bf16.msra.mxu3 %v1160_v50  ;;  %v1069_v10 = vld [vmem:[%s1859_s3 + $0x18] sm:$0xf0]  ;;  %v1131_v12 = vld [vmem:[%s1858_s2 + $0x10] sm:$0xf]  ;;  %v1291_v13 = vld [vmem:[%s1858_s2 + $0x14] sm:$0xf0] }
  0x13   :  { %v1290_v14 = vld [vmem:[%s1858_s2 + $0x14] sm:$0xf]  ;;  %v1133_v15 = vld [vmem:[%s1858_s2 + $0x18] sm:$0xf0] }
  0x14   :  { %160 = vmatpush.bf16.msra.mxu0 %v1084_v56 }
  0x15   :  { %173 = vmatpush.bf16.msra.mxu1 %v1088_v57  ;;  %266 = vmatpush.bf16.msra.mxu2 %v1148_v58 }
  0x16   :  { %279 = vmatpush.bf16.msra.mxu3 %v1152_v62 }
  0x17   :  { %16 = vsyncpa [#allocation3], 0  ;;  %v1068_v16 = vor.u32 %v1307_v8, %v1067_v5  ;;  %v1072_v17 = vor.u32 %v1306_v9, %v1069_v10  ;;  %v1132_v18 = vor.u32 %v1291_v13, %v1131_v12  ;;  %v1059_v19 = vld [vmem:[%s1859_s3] sm:$0xf]  ;;  %v1305_v20 = vld [vmem:[%s1859_s3 + $0x4] sm:$0xf0]  ;;  %v1136_v22 = vor.u32 %v1290_v14, %v1133_v15 }
  0x18   :  { %161 = vmatpush.bf16.msra.mxu0 %v1076_v4  ;;  %v1304_v21 = vld [vmem:[%s1859_s3 + $0x4] sm:$0xf]  ;;  %v1061_v23 = vld [vmem:[%s1859_s3 + $0x8] sm:$0xf0]  ;;  %v1123_v24 = vld [vmem:[%s1858_s2] sm:$0xf]  ;;  %v1060_v28 = vor.u32 %v1305_v20, %v1059_v19 }
  0x19   :  { %174 = vmatpush.bf16.msra.mxu1 %v1080_v6  ;;  %267 = vmatpush.bf16.msra.mxu2 %v1140_v7  ;;  %v1289_v25 = vld [vmem:[%s1858_s2 + $0x4] sm:$0xf0]  ;;  %v1288_v26 = vld [vmem:[%s1858_s2 + $0x4] sm:$0xf]  ;;  %v1125_v27 = vld [vmem:[%s1858_s2 + $0x8] sm:$0xf0]  ;;  %v1064_v30 = vor.u32 %v1304_v21, %v1061_v23 }
  0x1a   :  { %280 = vmatpush.bf16.msra.mxu3 %v1144_v11  ;;  %v41_v29 = vld [vmem:[%s1857_s1] sm:$0x3]  ;;  %v1124_v31 = vor.u32 %v1289_v25, %v1123_v24  ;;  %v1128_v33 = vor.u32 %v1288_v26, %v1125_v27  ;;  %vm297_vm0 = vcmask 1041408   ;;  %v1398_v56 = vmov 256.0   ;;  %v1327_v8 = vld [vmem:[%s1861_s5 + $0x38] sm:$0xff]  ;;  %v1326_v10 = vld [vmem:[%s1861_s5 + $0x30] sm:$0xff] }
  0x1b   :  { %v39_v32 = vld [vmem:[%s1856_s0] sm:$0x3]  ;;  %v42_v34 = vpack.c.bf16 %v41_v29, %v41_v29  ;;  %1358 = vrcp.f32 %v1398_v56  ;;  %v1335_v9 = vld [vmem:[%s1861_s5 + $0x78] sm:$0xff]  ;;  %v1334_v11 = vld [vmem:[%s1861_s5 + $0x70] sm:$0xff]  ;;  %vm624_vm9 = vcmask 517120   ;;  %vm671_vm14 = vcmask 523264  }
  0x1c   :  { %162 = vmatpush.bf16.msra.mxu0 %v1068_v16  ;;  %v40_v35 = vpack.c.bf16 %v39_v32, %v39_v32  ;;  %v1672_v36 = vld [vmem:[%s1860_s4] sm:$0x77]  ;;  %v1325_v12 = vld [vmem:[%s1861_s5 + $0x28] sm:$0xff]  ;;  %v1323_v16 = vld [vmem:[%s1861_s5 + $0x18] sm:$0xff]  ;;  %s1409_s28 = smov 2   ;;  %s1410_s29 = smov [#allocation2]  }
  0x1d   :  { %175 = vmatpush.bf16.msra.mxu1 %v1072_v17  ;;  %268 = vmatpush.bf16.msra.mxu2 %v1132_v18  ;;  %v289_v39 = vperm.slane %v1672_v36, 0  ;;  %v290_v40 = vperm.slane %v1672_v36, 4  ;;  %v1333_v13 = vld [vmem:[%s1861_s5 + $0x68] sm:$0xff]  ;;  %v1324_v14 = vld [vmem:[%s1861_s5 + $0x20] sm:$0xff]  ;;  %v1331_v17 = vld [vmem:[%s1861_s5 + $0x58] sm:$0xff]  ;;  %v335_v32 = vperm.slane %v1672_v36, 5 }
  0x1e   :  { %281 = vmatpush.bf16.msra.mxu3 %v1136_v22  ;;  %v1332_v15 = vld [vmem:[%s1861_s5 + $0x60] sm:$0xff]  ;;  %v1322_v18 = vld [vmem:[%s1861_s5 + $0x10] sm:$0xff]  ;;  %v1321_v20 = vld [vmem:[%s1861_s5 + $0x8] sm:$0xff]  ;;  %s1046_s30 = sshll.u32 %s1410_s29, 4  ;;  %s1048_s13 = sshll.u32 %s1867_s11, 4  ;;  %s1047_s30 = int_to_ptr.vmem [resolvable:$true] %s1046_s30  ;;  %s1049_s13 = int_to_ptr.hbm [resolvable:$true] %s1048_s13 }
  0x1f   :  { %v293_v41 = vperm.slane %v289_v39, 0  ;;  %v294_v43 = vperm.slane %v290_v40, 0  ;;  %v1330_v19 = vld [vmem:[%s1861_s5 + $0x50] sm:$0xff]  ;;  %v1329_v21 = vld [vmem:[%s1861_s5 + $0x48] sm:$0xff]  ;;  %v1320_v22 = vld [vmem:[%s1861_s5] sm:$0xff]  ;;  %v339_v39 = vperm.slane %v335_v32, 1 }
  0x20   :  { %163 = vmatpush.bf16.msra.mxu0 %v1060_v28  ;;  %v1328_v23 = vld [vmem:[%s1861_s5 + $0x40] sm:$0xff] }
  0x21   :  { %176 = vmatpush.bf16.msra.mxu1 %v1064_v30  ;;  %269 = vmatpush.bf16.msra.mxu2 %v1124_v31  ;;  %v1359_v57 = vpop.eup %1358  ;;  %v334_v31 = vperm.slane %v1672_v36, 1 }
  0x22   :  { %282 = vmatpush.bf16.msra.mxu3 %v1128_v33  ;;  %v304_v58 = vmul.f32 256.0, %v1359_v57  ;;  %vm308_vm1 = vweird.f32 %v1359_v57 }
  0x23   :  { %164 = vmatmul.bf16.vlgmr.msra.gmra.mxu0 %v42_v34 }
  0x24   :  { %177 = vmatmul.bf16.vlgmr.msra.gmra.mxu1 %v42_v34  ;;  %270 = vmatmul.bf16.vlgmr.msra.gmra.mxu2 %v40_v35  ;;  %v305_v59 = vsub.f32 1.0, %v304_v58  ;;  %v342_v34 = vperm.slane %v1672_v36, 2 }
  0x25   :  { %283 = vmatmul.bf16.vlgmr.msra.gmra.mxu3 %v40_v35  ;;  %484 = vmatpush.bf16.msrb.mxu0 %v1327_v8  ;;  %v343_v35 = vperm.slane %v1672_v36, 6  ;;  %v384_v36 = vld [vmem:[%s1862_s6] sm:$0x7] }
  0x26   :  { %v306_v60 = vmul.f32 %v1359_v57, %v305_v59  ;;  %497 = vmatpush.bf16.msrb.mxu1 %v1335_v9  ;;  %v1343_v9 = vld [vmem:[%s1863_s7 + $0x38] sm:$0xff] }
  0x27   :  { %611 = vmatpush.bf16.msrb.mxu2 %v1343_v9 }
  0x28   :  { %v307_v61 = vadd.f32 %v1359_v57, %v306_v60 }
  0x29   :  { %485 = vmatpush.bf16.msrb.mxu0 %v1326_v10  ;;  %v1342_v10 = vld [vmem:[%s1863_s7 + $0x30] sm:$0xff] }
  0x2a   :  { %v309_v62 = vsel %vm308_vm1, %v1359_v57, %v307_v61  ;;  %498 = vmatpush.bf16.msrb.mxu1 %v1334_v11  ;;  %v1399_v61 = vmov 128.0   ;;  %v1341_v11 = vld [vmem:[%s1863_s7 + $0x28] sm:$0xff] }
  0x2b   :  { %612 = vmatpush.bf16.msrb.mxu2 %v1342_v10 }
  0x2d   :  { %486 = vmatpush.bf16.msrb.mxu0 %v1325_v12  ;;  %v1340_v12 = vld [vmem:[%s1863_s7 + $0x20] sm:$0xff] }
  0x2e   :  { %499 = vmatpush.bf16.msrb.mxu1 %v1333_v13  ;;  %v1339_v13 = vld [vmem:[%s1863_s7 + $0x18] sm:$0xff] }
  0x2f   :  { %613 = vmatpush.bf16.msrb.mxu2 %v1341_v11 }
  0x31   :  { %487 = vmatpush.bf16.msrb.mxu0 %v1324_v14  ;;  %v1338_v14 = vld [vmem:[%s1863_s7 + $0x10] sm:$0xff] }
  0x32   :  { %500 = vmatpush.bf16.msrb.mxu1 %v1332_v15  ;;  %v1337_v15 = vld [vmem:[%s1863_s7 + $0x8] sm:$0xff] }
  0x33   :  { %614 = vmatpush.bf16.msrb.mxu2 %v1340_v12  ;;  %v1357_v12 = vld [vmem:[%s1866_s10] ss:$0 sm:$0xff]  ;;  %s1408_s10 = smov 3  }
  0x35   :  { %488 = vmatpush.bf16.msrb.mxu0 %v1323_v16  ;;  %v1336_v16 = vld [vmem:[%s1863_s7] sm:$0xff] }
  0x36   :  { %501 = vmatpush.bf16.msrb.mxu1 %v1331_v17 }
  0x37   :  { %615 = vmatpush.bf16.msrb.mxu2 %v1339_v13 }
  0x39   :  { %489 = vmatpush.bf16.msrb.mxu0 %v1322_v18 }
  0x3a   :  { %502 = vmatpush.bf16.msrb.mxu1 %v1330_v19 }
  0x3b   :  { %616 = vmatpush.bf16.msrb.mxu2 %v1338_v14 }
  0x3d   :  { %490 = vmatpush.bf16.msrb.mxu0 %v1321_v20 }
  0x3e   :  { %503 = vmatpush.bf16.msrb.mxu1 %v1329_v21 }
  0x3f   :  { %617 = vmatpush.bf16.msrb.mxu2 %v1337_v15 }
  0x41   :  { %491 = vmatpush.bf16.msrb.mxu0 %v1320_v22 }
  0x42   :  { %504 = vmatpush.bf16.msrb.mxu1 %v1328_v23 }
  0x43   :  { %618 = vmatpush.bf16.msrb.mxu2 %v1336_v16 }
  0xa0   :  { %v165_v37 = vpop.f32.mrf.mxu0 }
  0xa1   :  { %v178_v38 = vpop.f32.mrf.mxu1 }
  0xa7   :  { %v271_v42 = vpop.f32.mrf.mxu2 }
  0xa8   :  { %v272_v44 = vadd.f32 %v271_v42, %v165_v37  ;;  %v284_v45 = vpop.f32.mrf.mxu3  ;;  %v167_v46 = vpop.f32.mrf.mxu0  ;;  %v346_v42 = vperm.slane %v342_v34, 2  ;;  %v560_v34 = vld [vmem:[%s1864_s8] sm:$0x7] }
  0xa9   :  { %v285_v47 = vadd.f32 %v284_v45, %v178_v38  ;;  %v180_v48 = vpop.f32.mrf.mxu1  ;;  %v338_v38 = vperm.slane %v334_v31, 1 }
  0xaa   :  { %v295_v49 = vadd.f32 %v293_v41, %v272_v44  ;;  %v347_v44 = vperm.slane %v343_v35, 2  ;;  %v562_v35 = vperm.slane %v560_v34, 0 }
  0xab   :  { %v296_v50 = vadd.f32 %v294_v43, %v285_v47 }
  0xac   :  { %v298_v51 = vsel %vm297_vm0, %v295_v49, 0.0 }
  0xad   :  { %v299_v52 = vsel %vm297_vm0, %v296_v50, 0.0 }
  0xae   :  { %v300_v53 = vadd.f32 %v299_v52, %v298_v51 }
  0xaf   :  { %v273_v54 = vpop.f32.mrf.mxu2 }
  0xb0   :  { %v286_v55 = vpop.f32.mrf.mxu3  ;;  %301 = vadd.xlane.f32.xlu0 %v300_v53  ;;  %v387_v53 = vperm.slane %v384_v36, 0 }
 0x123   :  { %v302_v63 = vpop.xlane.xlu0 %301 }
 0x124   :  { %v310_v0 = vmul.f32 %v309_v62, %v302_v63 }
 0x126   :  { %v311_v1 = vsub.f32 %v295_v49, %v310_v0  ;;  %v312_v2 = vsub.f32 %v296_v50, %v310_v0 }
 0x128   :  { %v313_v3 = vmul.f32 %v311_v1, %v311_v1  ;;  %v314_v4 = vmul.f32 %v312_v2, %v312_v2 }
 0x12a   :  { %v315_v5 = vsel %vm297_vm0, %v313_v3, 0.0  ;;  %v316_v6 = vsel %vm297_vm0, %v314_v4, 0.0 }
 0x12b   :  { %v317_v7 = vadd.f32 %v316_v6, %v315_v5 }
 0x12d   :  { %318 = vadd.xlane.f32.xlu0 %v317_v7 }
 0x1a0   :  { %v319_v24 = vpop.xlane.xlu0 %318 }
 0x1a1   :  { %v320_v25 = vmul.f32 %v319_v24, %v309_v62 }
 0x1a3   :  { %v321_v26 = vadd.f32 1e-05, %v320_v25 }
 0x1a5   :  { %1360 = vrsqrt.f32 %v321_v26  ;;  %vm328_vm3 = vweird.f32 %v321_v26 }
 0x1a6   :  { %1362 = vrcp.f32 %v1399_v61 }
 0x1ab   :  { %v1361_v27 = vpop.eup %1360 }
 0x1ac   :  { %v323_v28 = vmul.f32 %v1361_v27, %v321_v26  ;;  %vm329_vm2 = vweird.f32 %v1361_v27  ;;  %v1363_v62 = vpop.eup %1362  ;;  %v539_v26 = vperm.slane %v384_v36, 1 }
 0x1ad   :  { %vm330_vm4 = vmor %vm328_vm3, %vm329_vm2  ;;  %v514_v63 = vmul.f32 128.0, %v1363_v62  ;;  %vm518_vm5 = vweird.f32 %v1363_v62 }
 0x1ae   :  { %v324_v29 = vmul.f32 %v1361_v27, %v323_v28 }
 0x1af   :  { %v515_v0 = vsub.f32 1.0, %v514_v63 }
 0x1b0   :  { %v325_v30 = vmul.f32 0.5, %v324_v29  ;;  %v541_v29 = vperm.slane %v384_v36, 2  ;;  %v666_v36 = vld [vmem:[%s1865_s9 + $0x38] sm:$0xff] }
 0x1b1   :  { %683 = vmatpush.msrb.mxu3 %v666_v36 }
 0x1b2   :  { %v326_v33 = vsub.f32 1.5, %v325_v30 }
 0x1b4   :  { %v327_v37 = vmul.f32 %v1361_v27, %v326_v33 }
 0x1b6   :  { %v331_v40 = vsel %vm330_vm4, %v1361_v27, %v327_v37 }
 0x1b7   :  { %v332_v41 = vmul.f32 %v331_v40, %v311_v1  ;;  %v333_v43 = vmul.f32 %v331_v40, %v312_v2  ;;  %v516_v1 = vmul.f32 %v1363_v62, %v515_v0 }
 0x1b9   :  { %v340_v45 = vmul.f32 %v338_v38, %v332_v41  ;;  %v341_v46 = vmul.f32 %v339_v39, %v333_v43  ;;  %v517_v2 = vadd.f32 %v1363_v62, %v516_v1  ;;  %v1400_v41 = vmov 64.0  }
 0x1bb   :  { %v348_v47 = vadd.f32 %v346_v42, %v340_v45  ;;  %v349_v48 = vadd.f32 %v347_v44, %v341_v46  ;;  %v519_v3 = vsel %vm518_vm5, %v1363_v62, %v517_v2 }
 0x1bd   :  { %v350_v49 = vmax.f32 %v348_v47, 0.0  ;;  %v351_v50 = vmax.f32 %v349_v48, 0.0 }
 0x1bf   :  { %v385_v51 = vpack.c.bf16 %v350_v49, %v350_v49  ;;  %v386_v52 = vpack.c.bf16 %v351_v50, %v351_v50 }
 0x1c1   :  { %492 = vmatmul.bf16.vlgmr.msrb.gmra.mxu0 %v385_v51  ;;  %505 = vmatmul.bf16.vlgmr.msrb.gmra.mxu1 %v386_v52 }
 0x23e   :  { %v493_v54 = vpop.f32.mrf.mxu0  ;;  %v506_v55 = vpop.f32.mrf.mxu1 }
 0x23f   :  { %v494_v56 = vadd.f32 %v493_v54, %v387_v53  ;;  %v665_v53 = vld [vmem:[%s1865_s9 + $0x30] sm:$0xff]  ;;  %v664_v54 = vld [vmem:[%s1865_s9 + $0x28] sm:$0xff] }
 0x240   :  { %684 = vmatpush.msrb.mxu3 %v665_v53 }
 0x241   :  { %v507_v57 = vadd.f32 %v506_v55, %v494_v56  ;;  %v663_v55 = vld [vmem:[%s1865_s9 + $0x20] sm:$0xff]  ;;  %v662_v56 = vld [vmem:[%s1865_s9 + $0x18] sm:$0xff] }
 0x242   :  { %685 = vmatpush.msrb.mxu3 %v664_v54 }
 0x243   :  { %v510_v58 = vsel %vm297_vm0, %v507_v57, 0.0 }
 0x244   :  { %511 = vadd.xlane.f32.xlu1 %v510_v58  ;;  %686 = vmatpush.msrb.mxu3 %v663_v55  ;;  %v660_v58 = vld [vmem:[%s1865_s9 + $0x8] sm:$0xff] }
 0x246   :  { %v495_v59 = vpop.f32.mrf.mxu0  ;;  %v508_v60 = vpop.f32.mrf.mxu1  ;;  %687 = vmatpush.msrb.mxu3 %v662_v56 }
 0x247   :  { %v659_v59 = vld [vmem:[%s1865_s9] sm:$0xff] }
 0x2b7   :  { %v512_v4 = vpop.xlane.xlu1 %511 }
 0x2b8   :  { %v520_v5 = vmul.f32 %v519_v3, %v512_v4 }
 0x2ba   :  { %v521_v6 = vsub.f32 %v507_v57, %v520_v5  ;;  %v661_v57 = vld [vmem:[%s1865_s9 + $0x10] sm:$0xff]  ;;  %v654_v5 = vperm.slane %v560_v34, 1 }
 0x2bb   :  { %688 = vmatpush.msrb.mxu3 %v661_v57 }
 0x2bc   :  { %v522_v7 = vmul.f32 %v521_v6, %v521_v6 }
 0x2bd   :  { %689 = vmatpush.msrb.mxu3 %v660_v58 }
 0x2be   :  { %v523_v8 = vsel %vm297_vm0, %v522_v7, 0.0  ;;  %v656_v7 = vperm.slane %v560_v34, 2 }
 0x2bf   :  { %524 = vadd.xlane.f32.xlu1 %v523_v8  ;;  %690 = vmatpush.msrb.mxu3 %v659_v59 }
 0x332   :  { %v525_v17 = vpop.xlane.xlu1 %524 }
 0x333   :  { %v526_v18 = vmul.f32 %v525_v17, %v519_v3 }
 0x335   :  { %v527_v19 = vadd.f32 1e-05, %v526_v18 }
 0x337   :  { %1364 = vrsqrt.f32 %v527_v19  ;;  %vm534_vm7 = vweird.f32 %v527_v19 }
 0x338   :  { %1366 = vrcp.f32 %v1400_v41 }
 0x33d   :  { %v1365_v20 = vpop.eup %1364 }
 0x33e   :  { %v529_v21 = vmul.f32 %v1365_v20, %v527_v19  ;;  %vm535_vm6 = vweird.f32 %v1365_v20  ;;  %v1367_v42 = vpop.eup %1366 }
 0x33f   :  { %vm536_vm8 = vmor %vm534_vm7, %vm535_vm6  ;;  %v629_v43 = vmul.f32 64.0, %v1367_v42  ;;  %vm633_vm10 = vweird.f32 %v1367_v42 }
 0x340   :  { %v530_v22 = vmul.f32 %v1365_v20, %v529_v21 }
 0x341   :  { %v630_v44 = vsub.f32 1.0, %v629_v43 }
 0x342   :  { %v531_v23 = vmul.f32 0.5, %v530_v22 }
 0x343   :  { %v631_v45 = vmul.f32 %v1367_v42, %v630_v44 }
 0x344   :  { %v532_v24 = vsub.f32 1.5, %v531_v23 }
 0x345   :  { %v632_v46 = vadd.f32 %v1367_v42, %v631_v45 }
 0x346   :  { %v533_v25 = vmul.f32 %v1365_v20, %v532_v24 }
 0x347   :  { %v634_v47 = vsel %vm633_vm10, %v1367_v42, %v632_v46  ;;  %v1406_v42 = vmov 1326507024  }
 0x348   :  { %v537_v27 = vsel %vm536_vm8, %v1365_v20, %v533_v25 }
 0x349   :  { %v538_v28 = vmul.f32 %v537_v27, %v521_v6  ;;  %v1401_v27 = vmov 683565275  }
 0x34b   :  { %v540_v30 = vmul.f32 %v539_v26, %v538_v28 }
 0x34d   :  { %v542_v31 = vadd.f32 %v541_v29, %v540_v30  ;;  %v1402_v29 = vmov 2475754826  }
 0x34f   :  { %v543_v32 = vmax.f32 %v542_v31, 0.0 }
 0x351   :  { %v561_v33 = vpack.c.bf16 %v543_v32, %v543_v32  ;;  %v1403_v32 = vmov 2131351028  }
 0x353   :  { %619 = vmatmul.bf16.vlgmr.msrb.gmra.mxu2 %v561_v33 }
 0x3d6   :  { %v620_v37 = vpop.f32.mrf.mxu2 }
 0x3d7   :  { %v621_v38 = vadd.f32 %v620_v37, %v562_v35  ;;  %v1404_v35 = vmov 2102212464  }
 0x3d9   :  { %v625_v39 = vsel %vm624_vm9, %v621_v38, 0.0 }
 0x3da   :  { %626 = vadd.xlane.f32.xlu2 %v625_v39  ;;  %v1405_v39 = vmov 920167782  }
 0x3de   :  { %v622_v40 = vpop.f32.mrf.mxu2 }
 0x44d   :  { %v627_v48 = vpop.xlane.xlu2 %626 }
 0x44e   :  { %v635_v49 = vmul.f32 %v634_v47, %v627_v48 }
 0x450   :  { %v636_v50 = vsub.f32 %v621_v38, %v635_v49 }
 0x452   :  { %v637_v51 = vmul.f32 %v636_v50, %v636_v50 }
 0x454   :  { %v638_v52 = vsel %vm624_vm9, %v637_v51, 0.0 }
 0x455   :  { %639 = vadd.xlane.f32.xlu2 %v638_v52 }
 0x4c8   :  { %v640_v60 = vpop.xlane.xlu2 %639 }
 0x4c9   :  { %v641_v61 = vmul.f32 %v640_v60, %v634_v47 }
 0x4cb   :  { %v642_v62 = vadd.f32 1e-05, %v641_v61 }
 0x4cd   :  { %1368 = vrsqrt.f32 %v642_v62  ;;  %vm649_vm12 = vweird.f32 %v642_v62 }
 0x4d3   :  { %v1369_v63 = vpop.eup %1368 }
 0x4d4   :  { %v644_v0 = vmul.f32 %v1369_v63, %v642_v62  ;;  %vm650_vm11 = vweird.f32 %v1369_v63 }
 0x4d5   :  { %vm651_vm13 = vmor %vm649_vm12, %vm650_vm11 }
 0x4d6   :  { %v645_v1 = vmul.f32 %v1369_v63, %v644_v0 }
 0x4d8   :  { %v646_v2 = vmul.f32 0.5, %v645_v1 }
 0x4da   :  { %v647_v3 = vsub.f32 1.5, %v646_v2 }
 0x4dc   :  { %v648_v4 = vmul.f32 %v1369_v63, %v647_v3 }
 0x4de   :  { %v652_v6 = vsel %vm651_vm13, %v1369_v63, %v648_v4 }
 0x4df   :  { %v653_v8 = vmul.f32 %v652_v6, %v636_v50 }
 0x4e1   :  { %v655_v9 = vmul.f32 %v654_v5, %v653_v8 }
 0x4e3   :  { %v657_v10 = vadd.f32 %v656_v7, %v655_v9 }
 0x4e5   :  { %v658_v11 = vmax.f32 %v657_v10, 0.0 }
 0x4e7   :  { %1281 = vmatmul.msk.f32.vlgmr.msrb.gmra.mxu3 %vm671_vm14, %v658_v11  ;;  %v1407_v11 = vmov 0  }
 0x56a   :  { %v692_v13 = vpop.f32.mrf.mxu3 }
 0x56b   :  { %v1793_v14 = vadd.f32 %v1357_v12, %v692_v13 }
 0x56d   :  { %v1796_v15 = vmul.f32 0.5, %v1793_v14 }
 0x56f   :  { %v699_v16 = vand.u32 2139095040, %v1796_v15  ;;  %v696_v19 = vand.u32 2147483647, %v1796_v15  ;;  %vm698_vm11 = vcmp.lt.s32.totalorder %v1796_v15, 0 }
 0x571   :  { %v700_v17 = vshrl.u32 %v699_v16, 23  ;;  %v703_v21 = vand.u32 8388607, %v696_v19  ;;  %vm697_vm12 = vcmp.le.f32.partialorder %v696_v19, 0.7853982 }
 0x573   :  { %v1282_v18 = vadd.s32 4294967169, %v700_v17  ;;  %v704_v25 = vor.u32 8388608, %v703_v21 }
 0x575   :  { %v706_v20 = vadd.s32 1, %v1282_v18  ;;  %v1813_v49 = vshll.u32 %v704_v25, 8 }
 0x577   :  { %vm707_vm15 = vcmp.gt.s32.totalorder %v706_v20, 0  ;;  %v745_v57 = vand.u32 65535, %v1813_v49  ;;  %v746_v58 = vshrl.u32 %v1813_v49, 16 }
 0x578   :  { %v708_v22 = vsel %vm707_vm15, %v706_v20, 0 }
 0x579   :  { %v710_v23 = vand.u32 31, %v708_v22  ;;  %v1804_v26 = vshrl.u32 %v708_v22, 5 }
 0x57b   :  { %v1802_v24 = vsub.s32 32, %v710_v23  ;;  %v713_v28 = vshll.u32 %v1401_v27, %v710_v23  ;;  %v716_v30 = vshll.u32 %v1402_v29, %v710_v23  ;;  %v719_v34 = vshll.u32 %v1403_v32, %v710_v23 }
 0x57c   :  { %v722_v38 = vshll.u32 %v1404_v35, %v710_v23  ;;  %v725_v41 = vshll.u32 %v1405_v39, %v710_v23  ;;  %vm728_vm0 = vcmp.lt.s32.totalorder %v1804_v26, 1  ;;  %vm731_vm1 = vcmp.lt.s32.totalorder %v1804_v26, 4 }
 0x57d   :  { %v714_v31 = vshrl.u32 %v1402_v29, %v1802_v24  ;;  %v717_v33 = vshrl.u32 %v1403_v32, %v1802_v24  ;;  %v720_v37 = vshrl.u32 %v1404_v35, %v1802_v24  ;;  %v723_v40 = vshrl.u32 %v1405_v39, %v1802_v24 }
 0x57e   :  { %v726_v43 = vshrl.u32 %v1406_v42, %v1802_v24  ;;  %vm730_vm2 = vcmp.lt.s32.totalorder %v1804_v26, 3  ;;  %vm729_vm3 = vcmp.lt.s32.totalorder %v1804_v26, 2  ;;  %v712_v23 = vshrl.u32 %v1401_v27, %v1802_v24 }
 0x57f   :  { %v715_v44 = vor.u32 %v714_v31, %v713_v28  ;;  %v718_v45 = vor.u32 %v717_v33, %v716_v30  ;;  %v721_v46 = vor.u32 %v720_v37, %v719_v34  ;;  %v724_v47 = vor.u32 %v723_v40, %v722_v38 }
 0x580   :  { %v727_v48 = vor.u32 %v726_v43, %v725_v41 }
 0x581   :  { %v736_v50 = vsel %vm728_vm0, %v715_v44, %v718_v45  ;;  %v740_v51 = vsel %vm728_vm0, %v718_v45, %v721_v46  ;;  %v737_v52 = vsel %vm731_vm1, %v724_v47, 920167782  ;;  %v733_v20 = vsel %vm731_vm1, %v721_v46, 2102212464 }
 0x582   :  { %v741_v36 = vsel %vm731_vm1, %v727_v48, 1326507024  ;;  %v738_v53 = vsel %vm730_vm2, %v721_v46, %v737_v52  ;;  %v732_v32 = vsel %vm728_vm0, %v712_v23, %v715_v44  ;;  %v734_v33 = vsel %vm730_vm2, %v718_v45, %v733_v20 }
 0x583   :  { %v742_v54 = vsel %vm730_vm2, %v724_v47, %v741_v36  ;;  %v739_v55 = vsel %vm729_vm3, %v736_v50, %v738_v53  ;;  %v735_v24 = vsel %vm729_vm3, %v732_v32, %v734_v33 }
 0x584   :  { %v743_v56 = vsel %vm729_vm3, %v740_v51, %v742_v54  ;;  %v769_v61 = vand.u32 65535, %v739_v55  ;;  %v770_v62 = vshrl.u32 %v739_v55, 16  ;;  %v789_v42 = vmul.u32 %v1813_v49, %v735_v24 }
 0x585   :  { %v747_v59 = vand.u32 65535, %v743_v56  ;;  %v748_v60 = vshrl.u32 %v743_v56, 16  ;;  %vm839_vm3 = vweird.f32 %v1796_v15 }
 0x586   :  { %v772_v1 = vmul.u32 %v770_v62, %v745_v57  ;;  %v773_v2 = vmul.u32 %v769_v61, %v746_v58  ;;  %v771_v6 = vmul.u32 %v769_v61, %v745_v57  ;;  %v774_v10 = vmul.u32 %v770_v62, %v746_v58 }
 0x587   :  { %v750_v63 = vmul.u32 %v748_v60, %v745_v57  ;;  %v751_v0 = vmul.u32 %v747_v59, %v746_v58  ;;  %v749_v3 = vmul.u32 %v747_v59, %v745_v57  ;;  %v752_v5 = vmul.u32 %v748_v60, %v746_v58 }
 0x588   :  { %v775_v7 = vshll.u32 %v772_v1, 16  ;;  %v777_v13 = vshll.u32 %v773_v2, 16  ;;  %v776_v30 = vshrl.u32 %v772_v1, 16  ;;  %v778_v37 = vshrl.u32 %v773_v2, 16 }
 0x589   :  { %v753_v4 = vshll.u32 %v750_v63, 16  ;;  %v755_v8 = vshll.u32 %v751_v0, 16  ;;  %v754_v25 = vshrl.u32 %v750_v63, 16  ;;  %v756_v34 = vshrl.u32 %v751_v0, 16 }
 0x58a   :  { %vm779_vm5 = vc.u32 %v771_v6, %v775_v7  ;;  %v781_v16 = vadd.s32 %v775_v7, %v771_v6 }
 0x58b   :  { %vm757_vm4 = vc.u32 %v749_v3, %v753_v4  ;;  %v759_v9 = vadd.s32 %v753_v4, %v749_v3  ;;  %v780_v18 = vsel %vm779_vm5, 1, %v1407_v11 }
 0x58c   :  { %v758_v12 = vsel %vm757_vm4, 1, %v1407_v11  ;;  %v782_v22 = vadd.s32 %v780_v18, %v774_v10  ;;  %vm783_vm7 = vc.u32 %v781_v16, %v777_v13  ;;  %v785_v40 = vadd.s32 %v781_v16, %v777_v13 }
 0x58d   :  { %v760_v17 = vadd.s32 %v758_v12, %v752_v5  ;;  %vm761_vm6 = vc.u32 %v759_v9, %v755_v8  ;;  %v784_v29 = vsel %vm783_vm7, 1, %v1407_v11  ;;  %vm1029_vm7 = vcmask 23552  }
 0x58e   :  { %v762_v21 = vsel %vm761_vm6, 1, %v1407_v11  ;;  %v786_v31 = vadd.s32 %v784_v29, %v782_v22 }
 0x58f   :  { %v764_v28 = vadd.s32 %v762_v21, %v760_v17 }
 0x590   :  { %v787_v38 = vadd.s32 %v786_v31, %v776_v30 }
 0x591   :  { %v765_v35 = vadd.s32 %v764_v28, %v754_v25 }
 0x592   :  { %v788_v27 = vadd.s32 %v787_v38, %v778_v37 }
 0x593   :  { %v766_v39 = vadd.s32 %v765_v35, %v756_v34 }
 0x594   :  { %v792_v41 = vadd.s32 1, %v788_v27 }
 0x595   :  { %vm791_vm8 = vc.u32 %v766_v39, %v785_v40  ;;  %v790_v26 = vadd.s32 %v785_v40, %v766_v39 }
 0x596   :  { %v793_v43 = vsel %vm791_vm8, %v792_v41, %v788_v27  ;;  %vm1031_vm8 = vcmask 31744  }
 0x597   :  { %v794_v46 = vadd.s32 %v793_v43, %v789_v42 }
 0x599   :  { %v795_v44 = vadd.s32 536870912, %v794_v46 }
 0x59b   :  { %v796_v47 = vshrl.u32 %v795_v44, 30 }
 0x59d   :  { %v797_v48 = vshll.u32 %v796_v47, 30  ;;  %v820_v2 = vsub.s32 4, %v796_v47 }
 0x59f   :  { %v798_v45 = vsub.s32 %v794_v46, %v797_v48  ;;  %v821_v7 = vsel %vm698_vm11, %v820_v2, %v796_v47 }
 0x5a0   :  { %v823_v10 = vsel %vm697_vm12, 0, %v821_v7 }
 0x5a1   :  { %vm799_vm9 = vcmp.lt.s32.totalorder %v798_v45, 0  ;;  %v800_v50 = vsub.s32 0, %v798_v45  ;;  %v840_v17 = vadd.s32 3, %v823_v10  ;;  %v995_v22 = vand.u32 3, %v823_v10 }
 0x5a3   :  { %v801_v51 = vsel %vm799_vm9, %v800_v50, %v798_v45  ;;  %v841_v23 = vand.u32 3, %v840_v17  ;;  %vm996_vm13 = vcmp.lt.s32.totalorder %v995_v22, 2  ;;  %vm997_vm14 = vcmp.eq.s32.totalorder %v995_v22, 0 }
 0x5a4   :  { %v802_v52 = vclz %v801_v51  ;;  %vm1000_vm2 = vcmp.eq.s32.totalorder %v995_v22, 2  ;;  %v1030_v50 = vsel %vm1029_vm7, %v1793_v14, 0.0  ;;  %vm1033_vm9 = vcmask 39936  }
 0x5a5   :  { %vm842_vm15 = vcmp.lt.s32.totalorder %v841_v23, 2  ;;  %vm843_vm0 = vcmp.eq.s32.totalorder %v841_v23, 0  ;;  %vm846_vm1 = vcmp.eq.s32.totalorder %v841_v23, 2  ;;  %v1032_v51 = vsel %vm1031_vm8, %v1030_v50, 0.0 }
 0x5a6   :  { %v1283_v36 = vadd.s32 4294967294, %v802_v52 }
 0x5a8   :  { %vm1284_vm10 = vcmp.lt.s32.totalorder %v1283_v36, 0 }
 0x5a9   :  { %v805_v53 = vsel %vm1284_vm10, 0, %v1283_v36  ;;  %vm1035_vm10 = vcmask 48128  }
 0x5aa   :  { %v806_v54 = vsub.s32 32, %v805_v53  ;;  %v810_v55 = vsub.s32 4294967266, %v805_v53  ;;  %v807_v56 = vshll.u32 %v798_v45, %v805_v53 }
 0x5ac   :  { %v808_v57 = vshrl.u32 %v790_v26, %v806_v54  ;;  %v811_v58 = vadd.s32 127, %v810_v55 }
 0x5ae   :  { %v809_v49 = vor.u32 %v808_v57, %v807_v56  ;;  %v812_v59 = vshll.u32 %v811_v58, 23 }
 0x5b0   :  { %v813_v60 = vor.u32 4788187, %v812_v59  ;;  %v816_v62 = vcvt.s32.f32 %v809_v49 }
 0x5b2   :  { %v814_v61 = vand.u32 2147483647, %v813_v60 }
 0x5b4   :  { %v817_v63 = vmul.f32 %v816_v62, %v814_v61 }
 0x5b6   :  { %v818_v0 = vxor.u32 2147483648, %v817_v63 }
 0x5b8   :  { %v819_v1 = vsel %vm698_vm11, %v818_v0, %v817_v63  ;;  %vm1037_vm11 = vcmask 56320  }
 0x5b9   :  { %v822_v3 = vsel %vm697_vm12, %v1796_v15, %v819_v1  ;;  %vm1039_vm12 = vcmask 58368  }
 0x5ba   :  { %v824_v4 = vmul.f32 %v822_v3, %v822_v3 }
 0x5bc   :  { %v825_v5 = vmul.f32 -0.001358992, %v824_v4  ;;  %v832_v6 = vmul.f32 -0.00019511016, %v824_v4 }
 0x5be   :  { %v826_v8 = vadd.f32 0.041655596, %v825_v5  ;;  %v833_v9 = vadd.f32 0.008332121, %v832_v6 }
 0x5c0   :  { %v827_v11 = vmul.f32 %v826_v8, %v824_v4  ;;  %v834_v12 = vmul.f32 %v833_v9, %v824_v4 }
 0x5c2   :  { %v828_v13 = vadd.f32 -0.4999988, %v827_v11  ;;  %v835_v16 = vadd.f32 -0.16666654, %v834_v12 }
 0x5c4   :  { %v829_v18 = vmul.f32 %v828_v13, %v824_v4  ;;  %v836_v20 = vmul.f32 %v835_v16, %v824_v4 }
 0x5c6   :  { %v830_v21 = vadd.f32 1.0, %v829_v18  ;;  %v837_v19 = vadd.f32 1.0, %v836_v20 }
 0x5c8   :  { %v838_v25 = vmul.f32 %v837_v19, %v822_v3  ;;  %v847_v28 = vxor.u32 2147483648, %v830_v21 }
 0x5ca   :  { %v844_v29 = vxor.u32 2147483648, %v838_v25  ;;  %v848_v31 = vsel %vm846_vm1, %v847_v28, %v838_v25  ;;  %v1002_v33 = vsel %vm1000_vm2, %v847_v28, %v838_v25 }
 0x5cc   :  { %v845_v30 = vsel %vm843_vm0, %v830_v21, %v844_v29  ;;  %v999_v32 = vsel %vm997_vm14, %v830_v21, %v844_v29 }
 0x5cd   :  { %v849_v34 = vsel %vm842_vm15, %v845_v30, %v848_v31  ;;  %v1003_v35 = vsel %vm996_vm13, %v999_v32, %v1002_v33 }
 0x5ce   :  { %v850_v37 = vsel %vm839_vm3, nan, %v849_v34  ;;  %v1004_v38 = vsel %vm839_vm3, nan, %v1003_v35 }
 0x5cf   :  { %v1005_v39 = vmul.f32 %v850_v37, %v850_v37  ;;  %v1006_v40 = vmul.f32 %v1004_v38, %v1004_v38 }
 0x5d1   :  { %v1007_v24 = vadd.f32 %v1006_v40, %v1005_v39 }
 0x5d3   :  { %v1008_v27 = vmax.f32 %v1007_v24, 1e-24 }
 0x5d5   :  { %1370 = vrsqrt.f32 %v1008_v27  ;;  %vm1015_vm5 = vweird.f32 %v1008_v27 }
 0x5db   :  { %v1371_v41 = vpop.eup %1370 }
 0x5dc   :  { %v1010_v42 = vmul.f32 %v1371_v41, %v1008_v27  ;;  %vm1016_vm4 = vweird.f32 %v1371_v41 }
 0x5dd   :  { %vm1017_vm6 = vmor %vm1015_vm5, %vm1016_vm4 }
 0x5de   :  { %v1011_v43 = vmul.f32 %v1371_v41, %v1010_v42 }
 0x5e0   :  { %v1012_v46 = vmul.f32 0.5, %v1011_v43 }
 0x5e2   :  { %v1013_v44 = vsub.f32 1.5, %v1012_v46 }
 0x5e4   :  { %v1014_v47 = vmul.f32 %v1371_v41, %v1013_v44 }
 0x5e6   :  { %v1018_v48 = vsel %vm1017_vm6, %v1371_v41, %v1014_v47 }
 0x5e7   :  { %v1020_v15 = vmul.f32 %v1018_v48, %v1004_v38  ;;  %v1019_v45 = vmul.f32 %v1018_v48, %v850_v37 }
 0x5e9   :  { %1026 = vrot.lane.b32.xlu1 %v1020_v15, %s1408_s10  ;;  %1022 = vrot.lane.b32.xlu0 %v1019_v45, %s1409_s28 }
 0x65b   :  { %v1027_v52 = vpop.permute.xlu1 %1026  ;;  %v1023_v36 = vpop.permute.xlu0 %1022 }
 0x65c   :  { %v1034_v53 = vsel %vm1033_vm9, %v1032_v51, %v1023_v36 }
 0x65d   :  { %v1036_v26 = vsel %vm1035_vm10, %v1034_v53, %v1027_v52 }
 0x65e   :  { %v1038_v54 = vsel %vm1037_vm11, %v1036_v26, 0.0 }
 0x65f   :  { %1040 = vst.msk [vmem:[#allocation2] sm:$0x3] %vm1039_vm12, %v1038_v54 }
 0x660   :  { %1051 = dma.vmem_to_hbm [thread:$0]  %s1047_s30, 32, %s1049_s13, [#allocation3]  }
 0x661   :  { %1396 = dma.done.wait [#allocation3], 32  }
 0x662   :  { %1397 = vsyncadd [#allocation3], 4294967264 }
 0x663   :  { %1056 = vsyncpa [#allocation3], 1 }

// kernel: stable_placement_policy_determ_forward.2
= control target key start
LH: loop header
LB: loop body
LE: loop exit
PB: predicated region body
PF: predicated region fallthrough
CT: control target
= control target key end

     0   :  { %s3785_s30 = smov 0   ;;  %s3787_s10 = smov 0   ;;  %s5651_s0 = inlined_call_operand.vmem [shape: f32[2,128,3], index: 0, kind: input, shape index: {}]   ;;  %s5652_s1 = inlined_call_operand.vmem [shape: f32[2,3,64], index: 1, kind: input, shape index: {}]   ;;  %s5653_s2 = inlined_call_operand.vmem [shape: f32[2,3,64], index: 2, kind: input, shape index: {}]   ;;  %s5654_s3 = inlined_call_operand.vmem [shape: bf16[2,64,128], index: 3, kind: input, shape index: {}]   ;;  %s5655_s4 = inlined_call_operand.vmem [shape: f32[2,3,128], index: 4, kind: input, shape index: {}]   ;;  %s5656_s5 = inlined_call_operand.vmem [shape: bf16[2,128,256], index: 5, kind: input, shape index: {}]   ;;  %s5657_s6 = inlined_call_operand.vmem [shape: f32[2,3,256], index: 6, kind: input, shape index: {}]   ;;  %s5658_s7 = inlined_call_operand.vmem [shape: bf16[2,256,128], index: 7, kind: input, shape index: {}]   ;;  %s5659_s8 = inlined_call_operand.vmem [shape: f32[2,3,128], index: 8, kind: input, shape index: {}]   ;;  %s5660_s9 = inlined_call_operand.vmem [shape: f32[2,2,128], index: 9, kind: output, shape index: {}]  }
   0x1   :  { %s3789_s11 = smov 0  }
   0x2 LB: > { %s31_s12 = sadd.s32 1, %s3723_s10  ;;  %p3289_p0 = scmp.ge.s32.totalorder %s3727_s11, 1  ;;  %s3727_s11 = sphi %s3789_s11, %s19_s11   ;;  %s3723_s10 = sphi %s3787_s10, %s5692_s10   ;;  %s3719_s30 = sphi %s3785_s30, %s5691_s30  }
   0x3   : > { %p33_p1 = scmp.ge.s32.totalorder %s31_s12, 2  ;;  %p384_p2 = scmp.lt.s32.totalorder %s3727_s11, 3 }
   0x5   : > { %s5694_s12 = smov (%p33_p1, %s31_s12), 0  ;;  %p385_p3 = pnand %p3289_p0, %p384_p2 }
   0x6   : > { %p463_p4 = scmp.lt.s32.totalorder (!%p385_p3), %s3719_s30, 1 }
   0x7   : > { %388 = sbr.rel (%p385_p3) target bundleno = 2163 (0x873), region = 56 }
   0xc   : > { %v3729_v0 = vmov 2   ;;  %v3730_v1 = vmov 1   ;;  %s5696_s30 = smov (!%p463_p4, %s3719_s30), 1  ;;  %v3731_v7 = vmov 0   ;;  %vm842_vm0 = vcmask 523264  }
   0xd   : > { %3552 = vset.pattern.permute.xlu0 %v3729_v0  ;;  %3542 = vset.pattern.permute.xlu1 %v3730_v1  ;;  %s3809_s13 = sshll.u32 %s5696_s30, 7  ;;  %s3851_s17 = sshll.u32 %s5696_s30, 2 }
   0xe   : > { %3543 = vset.pattern.permute.xlu2 %v3729_v0  ;;  %s3815_s16 = scalar_lea.vmem %s5651_s0, %s3809_s13  ;;  %s475_s20 = scalar_lea.vmem %s5652_s1, %s3851_s17 }
   0xf   : > { %v521_v2 = vld [vmem:[%s3815_s16 + $0x28] sm:$0xff]  ;;  %v516_v3 = vld [vmem:[%s3815_s16] sm:$0xff]  ;;  %v522_v4 = vld [vmem:[%s3815_s16 + $0x30] sm:$0xff]  ;;  %s479_s23 = scalar_lea.vmem %s5653_s2, %s3851_s17  ;;  %s3460_s24 = sshll.u32 %s5696_s30, 5 }
  0x10   : > { %766 = vperm.xlu0 %3552, %v521_v2   ;;  %649 = vperm.xlu1 %3542, %v516_v3   ;;  %v517_v5 = vld [vmem:[%s3815_s16 + $0x8] sm:$0xff]  ;;  %v519_v6 = vld [vmem:[%s3815_s16 + $0x18] sm:$0xff]  ;;  %v518_v8 = vld [vmem:[%s3815_s16 + $0x10] sm:$0xff]  ;;  %s4043_s27 = scalar_lea.vmem %s5654_s3, %s3460_s24  ;;  %s488_s14 = scalar_lea.vmem %s5655_s4, %s3851_s17 }
  0x11   : > { %746 = vperm.xlu2 %3543, %v516_v3   ;;  %v520_v9 = vld [vmem:[%s3815_s16 + $0x20] sm:$0xff]  ;;  %v523_v10 = vld [vmem:[%s3815_s16 + $0x38] sm:$0xff]  ;;  %v3845_v13 = vld [vmem:[%s3815_s16 + $0x48] sm:$0xff]  ;;  %s4395_s18 = scalar_lea.vmem %s5656_s5, %s3809_s13  ;;  %s3462_s19 = sshll.u32 %s5696_s30, 3 }
  0x12   : > { %v3835_v11 = vld [vmem:[%s3815_s16 + $0x40] sm:$0xff]  ;;  %s498_s22 = scalar_lea.vmem %s5657_s6, %s3462_s19  ;;  %s4790_s25 = scalar_lea.vmem %s5658_s7, %s3809_s13 }
  0x13   : > { %v532_v20 = vld [vmem:[%s475_s20] sm:$0x7] }
  0x14   : > { %v3864_v21 = vld [vmem:[%s479_s23] sm:$0x7]  ;;  %v3866_v22 = vperm.slane %v532_v20, 0  ;;  %v3871_v24 = vperm.slane %v532_v20, 1  ;;  %v3873_v27 = vperm.slane %v532_v20, 2  ;;  %v3933_v20 = vld [vmem:[%s3815_s16 + $0x68] sm:$0xff] }
  0x15   : > { %v3869_v23 = vperm.slane %v3864_v21, 0 }
  0x18   : > { %770 = vperm.xlu0 %3552, %v522_v4   ;;  %653 = vperm.xlu1 %3542, %v517_v5  }
  0x19   : > { %750 = vperm.xlu2 %3543, %v517_v5  }
  0x20   : > { %3555 = vset.pattern.permute.xlu0 %v3730_v1  ;;  %3544 = vset.pattern.permute.xlu1 %v3731_v7 }
  0x21   : > { %661 = vperm.xlu0 %3555, %v519_v6   ;;  %551 = vperm.xlu1 %3544, %v519_v6  }
  0x22   : > { %3545 = vset.pattern.permute.xlu2 %v3730_v1 }
  0x23   : > { %657 = vperm.xlu2 %3545, %v518_v8  }
  0x29   : > { %665 = vperm.xlu0 %3555, %v520_v9   ;;  %3546 = vset.pattern.permute.xlu1 %v3729_v0 }
  0x2a   : > { %754 = vperm.xlu1 %3546, %v518_v8  }
  0x2b   : > { %3547 = vset.pattern.permute.xlu2 %v3729_v0 }
  0x2c   : > { %758 = vperm.xlu2 %3547, %v519_v6  }
  0x31   : > { %673 = vperm.xlu0 %3555, %v522_v4  }
  0x32   : > { %3548 = vset.pattern.permute.xlu1 %v3731_v7 }
  0x33   : > { %556 = vperm.xlu1 %3548, %v520_v9  }
  0x34   : > { %3549 = vset.pattern.permute.xlu2 %v3731_v7 }
  0x35   : > { %561 = vperm.xlu2 %3549, %v521_v2  }
  0x39   : > { %677 = vperm.xlu0 %3555, %v523_v10  }
  0x3b   : > { %3550 = vset.pattern.permute.xlu1 %v3730_v1 }
  0x3c   : > { %669 = vperm.xlu1 %3550, %v521_v2  }
  0x3d   : > { %3551 = vset.pattern.permute.xlu2 %v3729_v0 }
  0x3e   : > { %762 = vperm.xlu2 %3551, %v520_v9  }
  0x41   : > { %681 = vperm.xlu0 %3555, %v3835_v11  }
  0x44   : > { %3553 = vset.pattern.permute.xlu1 %v3731_v7 }
  0x45   : > { %566 = vperm.xlu1 %3553, %v522_v4  }
  0x46   : > { %3554 = vset.pattern.permute.xlu2 %v3731_v7 }
  0x47   : > { %571 = vperm.xlu2 %3554, %v523_v10  }
  0x49   : > { %3557 = vset.pattern.permute.xlu0 %v3731_v7 }
  0x4a   : > { %536 = vperm.xlu0 %3557, %v516_v3  }
  0x4d   : > { %3560 = vset.pattern.permute.xlu1 %v3729_v0 }
  0x4f   : > { %3556 = vset.pattern.permute.xlu2 %v3729_v0 }
  0x50   : > { %774 = vperm.xlu2 %3556, %v523_v10  }
  0x52   : > { %541 = vperm.xlu0 %3557, %v517_v5  }
  0x58   : > { %3558 = vset.pattern.permute.xlu2 %v3730_v1 }
  0x59   : > { %685 = vperm.xlu2 %3558, %v3845_v13  }
  0x5a   : > { %546 = vperm.xlu0 %3557, %v518_v8  }
  0x61   : > { %3559 = vset.pattern.permute.xlu2 %v3729_v0 }
  0x62   : > { %782 = vperm.xlu2 %3559, %v3845_v13  }
  0x6a   : > { %3561 = vset.pattern.permute.xlu2 %v3731_v7 }
  0x6b   : > { %v747_v12 = vpop.permute.xlu2 %746 }
  0x6c   : > { %v810_v55 = vmul.f32 %v3873_v27, %v747_v12 }
  0x73   : > { %v751_v14 = vpop.permute.xlu2 %750 }
  0x74   : > { %v811_v63 = vmul.f32 %v3873_v27, %v751_v14 }
  0x7d   : > { %v658_v19 = vpop.permute.xlu2 %657 }
  0x7e   : > { %v715_v8 = vmul.f32 %v3871_v24, %v658_v19  ;;  %v3928_v19 = vld [vmem:[%s3815_s16 + $0x60] sm:$0xff] }
  0x82   : > { %v767_v15 = vpop.permute.xlu0 %766  ;;  %v650_v16 = vpop.permute.xlu1 %649 }
  0x83   : > { %v815_v46 = vmul.f32 %v3873_v27, %v767_v15  ;;  %v713_v52 = vmul.f32 %v3871_v24, %v650_v16  ;;  %v526_v16 = vld [vmem:[%s3815_s16 + $0x50] sm:$0xff] }
  0x86   : > { %v759_v29 = vpop.permute.xlu2 %758 }
  0x87   : > { %v813_v30 = vmul.f32 %v3873_v27, %v759_v29  ;;  %v3732_v29 = vmov 64.0  }
  0x88   : > { %3571 = vrcp.f32 %v3732_v29  ;;  %v3999_v29 = vld [vmem:[%s3815_s16 + $0x70] sm:$0xff] }
  0x8a   : > { %v3853_v17 = vpop.permute.xlu0 %770  ;;  %v654_v18 = vpop.permute.xlu1 %653 }
  0x8b   : > { %v714_v61 = vmul.f32 %v3871_v24, %v654_v18  ;;  %v527_v18 = vld [vmem:[%s3815_s16 + $0x58] sm:$0xff] }
  0x8f   : > { %v562_v40 = vpop.permute.xlu2 %561 }
  0x90   : > { %v620_v41 = vmul.f32 %v3866_v22, %v562_v40 }
  0x92   : > { %v637_v43 = vadd.f32 %v3869_v23, %v620_v41 }
  0x93   : > { %v662_v25 = vpop.permute.xlu0 %661  ;;  %v552_v26 = vpop.permute.xlu1 %551 }
  0x94   : > { %v618_v28 = vmul.f32 %v3866_v22, %v552_v26  ;;  %v716_v31 = vmul.f32 %v3871_v24, %v662_v25 }
  0x96   : > { %v635_v32 = vadd.f32 %v3869_v23, %v618_v28 }
  0x98   : > { %v732_v33 = vadd.f32 %v716_v31, %v635_v32  ;;  %v763_v25 = vpop.permute.xlu2 %762  ;;  %v3572_v32 = vpop.eup %3571 }
  0x99   : > { %vm896_vm1 = vweird.f32 %v3572_v32 }
  0x9a   : > { %v3879_v34 = vadd.f32 %v813_v30, %v732_v33 }
  0x9b   : > { %v3881_v35 = vpop.permute.xlu0 %665 }
  0x9c   : > { %v852_v36 = vsel %vm842_vm0, %v3879_v34, 0.0  ;;  %v755_v37 = vpop.permute.xlu1 %754  ;;  %v717_v33 = vmul.f32 %v3871_v24, %v3881_v35 }
  0x9d   : > { %853 = vadd.xlane.f32.xlu0 %v852_v36  ;;  %v812_v9 = vmul.f32 %v3873_v27, %v755_v37  ;;  %v814_v37 = vmul.f32 %v3873_v27, %v763_v25 }
  0xa1   : > { %v572_v26 = vpop.permute.xlu2 %571 }
  0xa3   : > { %v3885_v38 = vpop.permute.xlu0 %673 }
  0xa5   : > { %v557_v39 = vpop.permute.xlu1 %556 }
  0xa6   : > { %v619_v28 = vmul.f32 %v3866_v22, %v557_v39 }
  0xa8   : > { %v636_v30 = vadd.f32 %v3869_v23, %v619_v28  ;;  %v531_v28 = vld [vmem:[%s3815_s16 + $0x78] sm:$0xff] }
  0xaa   : > { %v775_v36 = vpop.permute.xlu2 %774  ;;  %v733_v41 = vadd.f32 %v717_v33, %v636_v30 }
  0xab   : > { %v3888_v42 = vpop.permute.xlu0 %677 }
  0xae   : > { %v670_v44 = vpop.permute.xlu1 %669 }
  0xaf   : > { %v718_v45 = vmul.f32 %v3871_v24, %v670_v44  ;;  %v3947_v44 = vadd.f32 %v814_v37, %v733_v41 }
  0xb1   : > { %v734_v47 = vadd.f32 %v718_v45, %v637_v43  ;;  %v892_v43 = vmul.f32 64.0, %v3572_v32  ;;  %v719_v45 = vmul.f32 %v3871_v24, %v3885_v38  ;;  %v855_v35 = vsel %vm842_vm0, %v3947_v44, 0.0 }
  0xb3   : > { %v3893_v48 = vpop.permute.xlu0 %681  ;;  %v3895_v49 = vadd.f32 %v815_v46, %v734_v47  ;;  %v893_v39 = vsub.f32 1.0, %v892_v43  ;;  %v3951_v46 = vpop.permute.xlu2 %685 }
  0xb5   : > { %v858_v50 = vsel %vm842_vm0, %v3895_v49, 0.0 }
  0xb6   : > { %859 = vadd.xlane.f32.xlu0 %v858_v50  ;;  %v894_v50 = vmul.f32 %v3572_v32, %v893_v39 }
  0xb7   : > { %v567_v31 = vpop.permute.xlu1 %566 }
  0xb8   : > { %v621_v40 = vmul.f32 %v3866_v22, %v567_v31 }
  0xbc   : > { %v537_v51 = vpop.permute.xlu0 %536 }
  0xbd   : > { %v615_v53 = vmul.f32 %v3866_v22, %v537_v51  ;;  %v816_v51 = vmul.f32 %v3873_v27, %v3853_v17  ;;  %v720_v17 = vmul.f32 %v3871_v24, %v3888_v42 }
  0xbf   : > { %v632_v54 = vadd.f32 %v3869_v23, %v615_v53  ;;  %v895_v53 = vadd.f32 %v3572_v32, %v894_v50 }
  0xc1   : > { %v729_v56 = vadd.f32 %v713_v52, %v632_v54  ;;  %v622_v54 = vmul.f32 %v3866_v22, %v572_v26 }
  0xc3   : > { %v3903_v57 = vadd.f32 %v810_v55, %v729_v56  ;;  %v3962_v55 = vpop.permute.xlu2 %782  ;;  %v3964_v56 = vsel %vm896_vm1, %v3572_v32, %v895_v53 }
  0xc4   : > { %v542_v58 = vpop.permute.xlu0 %541 }
  0xc5   : > { %v616_v59 = vmul.f32 %v3866_v22, %v542_v58  ;;  %v843_v60 = vsel %vm842_vm0, %v3903_v57, 0.0 }
  0xc6   : > { %844 = vadd.xlane.f32.xlu1 %v843_v60  ;;  %v639_v60 = vadd.f32 %v3869_v23, %v622_v54 }
  0xc7   : > { %v633_v62 = vadd.f32 %v3869_v23, %v616_v59 }
  0xc9   : > { %v730_v2 = vadd.f32 %v714_v61, %v633_v62 }
  0xcb   : > { %v3911_v3 = vadd.f32 %v811_v63, %v730_v2  ;;  %v736_v63 = vadd.f32 %v720_v17, %v639_v60  ;;  %v817_v2 = vmul.f32 %v3873_v27, %v775_v36  ;;  %v3467_v60 = vld [vmem:[%s4043_s27 + $0x18] sm:$0xff] }
  0xcc   : > { %v547_v4 = vpop.permute.xlu0 %546  ;;  %1322 = vmatpush.bf16.msra.mxu0 %v3467_v60  ;;  %3500 = vmatpush.bf16.msra.mxu1 %v3467_v60 }
  0xcd   : > { %v617_v5 = vmul.f32 %v3866_v22, %v547_v4  ;;  %v846_v6 = vsel %vm842_vm0, %v3911_v3, 0.0  ;;  %3501 = vmatpush.bf16.msra.mxu2 %v3467_v60  ;;  %3502 = vmatpush.bf16.msra.mxu3 %v3467_v60 }
  0xce   : > { %847 = vadd.xlane.f32.xlu2 %v846_v6 }
  0xcf   : > { %v634_v10 = vadd.f32 %v3869_v23, %v617_v5 }
  0xd1   : > { %v731_v12 = vadd.f32 %v715_v8, %v634_v10 }
  0xd3   : > { %v3919_v14 = vadd.f32 %v812_v9, %v731_v12  ;;  %v3981_v9 = vadd.f32 %v817_v2, %v736_v63 }
  0xd5   : > { %v849_v15 = vsel %vm842_vm0, %v3919_v14, 0.0  ;;  %v864_v10 = vsel %vm842_vm0, %v3981_v9, 0.0 }
  0xd6   : > { %850 = vadd.xlane.f32.xlu1 %v849_v15 }
  0xe6   : > { %586 = vperm.xlu2 %3561, %v526_v16  }
  0xee   : > { %591 = vperm.xlu2 %3561, %v527_v18  }
  0xef   : > { %778 = vperm.xlu1 %3560, %v3835_v11  }
  0xf6   : > { %3562 = vset.pattern.permute.xlu2 %v3730_v1 }
  0xf7   : > { %689 = vperm.xlu2 %3562, %v526_v16   ;;  %790 = vperm.xlu1 %3560, %v527_v18  }
  0xff   : > { %693 = vperm.xlu2 %3562, %v527_v18   ;;  %3564 = vset.pattern.permute.xlu1 %v3730_v1 }
 0x100   : > { %697 = vperm.xlu1 %3564, %v3928_v19  }
 0x107   : > { %3563 = vset.pattern.permute.xlu2 %v3729_v0 }
 0x108   : > { %786 = vperm.xlu2 %3563, %v526_v16   ;;  %701 = vperm.xlu1 %3564, %v3933_v20  }
 0x110   : > { %3565 = vset.pattern.permute.xlu1 %v3729_v0  ;;  %v854_v33 = vpop.xlane.xlu0 %853 }
 0x111   : > { %798 = vperm.xlu1 %3565, %v3933_v20   ;;  %v901_v39 = vmul.f32 %v3964_v56, %v854_v33 }
 0x119   : > { %3566 = vset.pattern.permute.xlu1 %v3731_v7  ;;  %v638_v7 = vadd.f32 %v3869_v23, %v621_v40 }
 0x11b   : > { %v735_v47 = vadd.f32 %v719_v45, %v638_v7 }
 0x11d   : > { %v3957_v52 = vadd.f32 %v816_v51, %v735_v47  ;;  %v4029_v51 = vsub.f32 %v3879_v34, %v901_v39 }
 0x11f   : > { %v861_v38 = vsel %vm842_vm0, %v3957_v52, 0.0 }
 0x129   : > { %v860_v7 = vpop.xlane.xlu0 %859 }
 0x131   : > { %856 = vadd.xlane.f32.xlu2 %v855_v35  ;;  %v903_v35 = vmul.f32 %v3964_v56, %v860_v7 }
 0x133   : > { %v4033_v53 = vsub.f32 %v3895_v49, %v903_v35 }
 0x135   : > { %v935_v34 = vmul.f32 %v4033_v53, %v4033_v53 }
 0x139   : > { %862 = vadd.xlane.f32.xlu2 %v861_v38  ;;  %v845_v58 = vpop.xlane.xlu1 %844 }
 0x13a   : > { %v898_v59 = vmul.f32 %v3964_v56, %v845_v58  ;;  %v933_v58 = vmul.f32 %v4029_v51, %v4029_v51 }
 0x13c   : > { %v3971_v61 = vsub.f32 %v3903_v57, %v898_v59  ;;  %v955_v63 = vsel %vm842_vm0, %v933_v58, 0.0 }
 0x13e   : > { %v930_v62 = vmul.f32 %v3971_v61, %v3971_v61 }
 0x140   : > { %v946_v4 = vsel %vm842_vm0, %v930_v62, 0.0 }
 0x141   : > { %v848_v5 = vpop.xlane.xlu2 %847  ;;  %947 = vadd.xlane.f32.xlu0 %v946_v4  ;;  %v961_v4 = vsel %vm842_vm0, %v935_v34, 0.0 }
 0x142   : > { %v899_v6 = vmul.f32 %v3964_v56, %v848_v5  ;;  %v3466_v5 = vld [vmem:[%s4043_s27 + $0x10] sm:$0xff] }
 0x143   : > { %1323 = vmatpush.bf16.msra.mxu0 %v3466_v5  ;;  %3503 = vmatpush.bf16.msra.mxu1 %v3466_v5 }
 0x144   : > { %v3979_v8 = vsub.f32 %v3911_v3, %v899_v6  ;;  %3504 = vmatpush.bf16.msra.mxu2 %v3466_v5  ;;  %3505 = vmatpush.bf16.msra.mxu3 %v3466_v5  ;;  %v721_v5 = vmul.f32 %v3871_v24, %v3893_v48 }
 0x146   : > { %v931_v42 = vmul.f32 %v3979_v8, %v3979_v8 }
 0x148   : > { %v949_v57 = vsel %vm842_vm0, %v931_v42, 0.0 }
 0x149   : > { %950 = vadd.xlane.f32.xlu1 %v949_v57  ;;  %865 = vadd.xlane.f32.xlu0 %v864_v10  ;;  %v587_v12 = vpop.permute.xlu2 %586  ;;  %v3465_v57 = vld [vmem:[%s4043_s27 + $0x8] sm:$0xff] }
 0x14a   : > { %v625_v16 = vmul.f32 %v3866_v22, %v587_v12  ;;  %1324 = vmatpush.bf16.msra.mxu0 %v3465_v57  ;;  %3506 = vmatpush.bf16.msra.mxu1 %v3465_v57 }
 0x14b   : > { %3507 = vmatpush.bf16.msra.mxu2 %v3465_v57  ;;  %3508 = vmatpush.bf16.msra.mxu3 %v3465_v57 }
 0x14c   : > { %v642_v3 = vadd.f32 %v3869_v23, %v625_v16 }
 0x151   : > { %v592_v15 = vpop.permute.xlu2 %591 }
 0x152   : > { %v626_v32 = vmul.f32 %v3866_v22, %v592_v15 }
 0x154   : > { %v643_v37 = vadd.f32 %v3869_v23, %v626_v32 }
 0x159   : > { %v690_v18 = vpop.permute.xlu2 %689 }
 0x15a   : > { %v723_v25 = vmul.f32 %v3871_v24, %v690_v18 }
 0x15c   : > { %v3991_v26 = vadd.f32 %v723_v25, %v642_v3  ;;  %v3464_v3 = vld [vmem:[%s4043_s27] sm:$0xff]  ;;  %s507_s27 = scalar_lea.vmem %s5659_s8, %s3851_s17  ;;  %s3304_s17 = sshll.u32 %s5696_s30, 1 }
 0x15d   : > { %581 = vperm.xlu0 %3557, %v3845_v13   ;;  %1325 = vmatpush.bf16.msra.mxu0 %v3464_v3 }
 0x15e   : > { %3509 = vmatpush.bf16.msra.mxu1 %v3464_v3  ;;  %3510 = vmatpush.bf16.msra.mxu2 %v3464_v3 }
 0x15f   : > { %3511 = vmatpush.bf16.msra.mxu3 %v3464_v3  ;;  %v722_v3 = vmul.f32 %v3871_v24, %v3951_v46 }
 0x162   : > { %576 = vperm.xlu1 %3566, %v3835_v11   ;;  %v851_v11 = vpop.xlane.xlu1 %850 }
 0x163   : > { %v900_v30 = vmul.f32 %v3964_v56, %v851_v11 }
 0x165   : > { %596 = vperm.xlu0 %3557, %v3928_v19   ;;  %v4011_v31 = vsub.f32 %v3919_v14, %v900_v30 }
 0x167   : > { %v932_v40 = vmul.f32 %v4011_v31, %v4011_v31 }
 0x169   : > { %v952_v14 = vsel %vm842_vm0, %v932_v40, 0.0 }
 0x16a   : > { %601 = vperm.xlu1 %3566, %v3933_v20   ;;  %v4007_v13 = vpop.permute.xlu1 %778  ;;  %v694_v20 = vpop.permute.xlu2 %693 }
 0x16d   : > { %611 = vperm.xlu0 %3557, %v531_v28  }
 0x172   : > { %606 = vperm.xlu1 %3566, %v3999_v29   ;;  %v791_v36 = vpop.permute.xlu1 %790 }
 0x173   : > { %v821_v43 = vmul.f32 %v3873_v27, %v791_v36 }
 0x175   : > { %3567 = vset.pattern.permute.xlu0 %v3730_v1 }
 0x176   : > { %705 = vperm.xlu0 %3567, %v3999_v29  }
 0x17a   : > { %3568 = vset.pattern.permute.xlu1 %v3730_v1  ;;  %v4014_v1 = vpop.permute.xlu2 %786  ;;  %v4023_v45 = vpop.permute.xlu1 %697 }
 0x17b   : > { %709 = vperm.xlu1 %3568, %v531_v28   ;;  %v820_v30 = vmul.f32 %v3873_v27, %v4014_v1  ;;  %v4080_v1 = vperm.slane %v3864_v21, 1 }
 0x17d   : > { %v4075_v36 = vadd.f32 %v820_v30, %v3991_v26 }
 0x17e   : > { %3570 = vset.pattern.permute.xlu0 %v3729_v0 }
 0x182   : > { %v4047_v49 = vpop.permute.xlu1 %701 }
 0x183   : > { %3569 = vset.pattern.permute.xlu1 %v3729_v0  ;;  %v724_v0 = vmul.f32 %v3871_v24, %v694_v20  ;;  %v726_v46 = vmul.f32 %v3871_v24, %v4047_v49 }
 0x184   : > { %806 = vperm.xlu1 %3569, %v531_v28  }
 0x185   : > { %v740_v41 = vadd.f32 %v724_v0, %v643_v37 }
 0x187   : > { %v4026_v47 = vadd.f32 %v821_v43, %v740_v41 }
 0x189   : > { %v876_v54 = vsel %vm842_vm0, %v4026_v47, 0.0 }
 0x18a   : > { %v4064_v42 = vpop.permute.xlu1 %798 }
 0x1a0   : > { %953 = vadd.xlane.f32.xlu0 %v952_v14 }
 0x1a4   : > { %v857_v50 = vpop.xlane.xlu2 %856 }
 0x1a5   : > { %v902_v38 = vmul.f32 %v3964_v56, %v857_v50 }
 0x1a7   : > { %v4051_v17 = vsub.f32 %v3947_v44, %v902_v38  ;;  %v4084_v38 = vperm.slane %v3864_v21, 2 }
 0x1a8   : > { %877 = vadd.xlane.f32.xlu0 %v876_v54 }
 0x1a9   : > { %v934_v44 = vmul.f32 %v4051_v17, %v4051_v17 }
 0x1ab   : > { %v958_v12 = vsel %vm842_vm0, %v934_v44, 0.0 }
 0x1ac   : > { %v863_v59 = vpop.xlane.xlu2 %862 }
 0x1ad   : > { %v904_v62 = vmul.f32 %v3964_v56, %v863_v59 }
 0x1ae   : > { %956 = vadd.xlane.f32.xlu1 %v955_v63 }
 0x1af   : > { %v4056_v2 = vsub.f32 %v3957_v52, %v904_v62 }
 0x1b0   : > { %962 = vadd.xlane.f32.xlu0 %v961_v4 }
 0x1b1   : > { %v936_v6 = vmul.f32 %v4056_v2, %v4056_v2 }
 0x1b3   : > { %v964_v16 = vsel %vm842_vm0, %v936_v6, 0.0 }
 0x1b4   : > { %v948_v52 = vpop.xlane.xlu0 %947 }
 0x1b5   : > { %v994_v10 = vmul.f32 %v948_v52, %v3964_v56 }
 0x1b6   : > { %959 = vadd.xlane.f32.xlu1 %v958_v12 }
 0x1b7   : > { %v1010_v15 = vadd.f32 1e-05, %v994_v10 }
 0x1b8   : > { %965 = vadd.xlane.f32.xlu0 %v964_v16  ;;  %v725_v16 = vmul.f32 %v3871_v24, %v4023_v45  ;;  %v819_v45 = vmul.f32 %v3873_v27, %v3962_v55 }
 0x1b9   : > { %3573 = vrsqrt.f32 %v1010_v15  ;;  %vm1032_vm3 = vweird.f32 %v1010_v15 }
 0x1bc   : > { %v951_v18 = vpop.xlane.xlu1 %950  ;;  %v4077_v40 = vpop.xlane.xlu0 %865 }
 0x1bd   : > { %v995_v25 = vmul.f32 %v951_v18, %v3964_v56 }
 0x1bf   : > { %v3574_v28 = vpop.eup %3573  ;;  %v1011_v11 = vadd.f32 1e-05, %v995_v25 }
 0x1c0   : > { %v1027_v20 = vmul.f32 %v3574_v28, %v1010_v15  ;;  %vm1033_vm2 = vweird.f32 %v3574_v28 }
 0x1c1   : > { %3575 = vrsqrt.f32 %v1011_v11  ;;  %vm1034_vm4 = vmor %vm1032_vm3, %vm1033_vm2  ;;  %vm1042_vm6 = vweird.f32 %v1011_v11 }
 0x1c2   : > { %v1028_v32 = vmul.f32 %v3574_v28, %v1027_v20 }
 0x1c4   : > { %v1029_v33 = vmul.f32 0.5, %v1028_v32 }
 0x1c6   : > { %v1030_v37 = vsub.f32 1.5, %v1029_v33 }
 0x1c7   : > { %v3576_v0 = vpop.eup %3575 }
 0x1c8   : > { %v1031_v41 = vmul.f32 %v3574_v28, %v1030_v37  ;;  %v1037_v43 = vmul.f32 %v3576_v0, %v1011_v11  ;;  %vm1043_vm5 = vweird.f32 %v3576_v0  ;;  %v823_v37 = vmul.f32 %v3873_v27, %v4064_v42 }
 0x1c9   : > { %vm1044_vm7 = vmor %vm1042_vm6, %vm1043_vm5 }
 0x1ca   : > { %v1035_v14 = vsel %vm1034_vm4, %v3574_v28, %v1031_v41  ;;  %v1038_v7 = vmul.f32 %v3576_v0, %v1037_v43 }
 0x1cb   : > { %v1186_v35 = vmul.f32 %v1035_v14, %v3971_v61 }
 0x1cc   : > { %v1039_v39 = vmul.f32 0.5, %v1038_v7 }
 0x1cd   : > { %v1203_v58 = vmul.f32 %v4080_v1, %v1186_v35 }
 0x1ce   : > { %v1040_v50 = vsub.f32 1.5, %v1039_v39 }
 0x1cf   : > { %v582_v26 = vpop.permute.xlu0 %581  ;;  %v1220_v4 = vadd.f32 %v4084_v38, %v1203_v58 }
 0x1d0   : > { %v1041_v54 = vmul.f32 %v3576_v0, %v1040_v50  ;;  %v624_v62 = vmul.f32 %v3866_v22, %v582_v26 }
 0x1d1   : > { %v1236_v10 = vmax.f32 %v1220_v4, 0.0 }
 0x1d2   : > { %v1045_v34 = vsel %vm1044_vm7, %v3576_v0, %v1041_v54  ;;  %v641_v57 = vadd.f32 %v3869_v23, %v624_v62 }
 0x1d3   : > { %v1187_v59 = vmul.f32 %v1045_v34, %v3979_v8  ;;  %v818_v8 = vmul.f32 %v3873_v27, %v4007_v13 }
 0x1d4   : > { %v577_v60 = vpop.permute.xlu1 %576  ;;  %v738_v30 = vadd.f32 %v722_v3, %v641_v57 }
 0x1d5   : > { %v623_v63 = vmul.f32 %v3866_v22, %v577_v60  ;;  %v1204_v61 = vmul.f32 %v4080_v1, %v1187_v59 }
 0x1d6   : > { %v4120_v0 = vadd.f32 %v819_v45, %v738_v30 }
 0x1d7   : > { %v640_v21 = vadd.f32 %v3869_v23, %v623_v63  ;;  %v597_v44 = vpop.permute.xlu0 %596  ;;  %v1221_v6 = vadd.f32 %v4084_v38, %v1204_v61 }
 0x1d8   : > { %v627_v52 = vmul.f32 %v3866_v22, %v597_v44  ;;  %v870_v55 = vsel %vm842_vm0, %v4120_v0, 0.0 }
 0x1d9   : > { %v1237_v12 = vmax.f32 %v1221_v6, 0.0  ;;  %v737_v15 = vadd.f32 %v721_v5, %v640_v21 }
 0x1da   : > { %v644_v48 = vadd.f32 %v3869_v23, %v627_v52 }
 0x1db   : > { %v1261_v18 = vpack.c.bf16 %v1237_v12, %v1236_v10  ;;  %v4105_v25 = vadd.f32 %v818_v8, %v737_v15 }
 0x1dc   : > { %v602_v28 = vpop.permute.xlu1 %601  ;;  %v4107_v13 = vadd.f32 %v725_v16, %v644_v48 }
 0x1dd   : > { %v628_v11 = vmul.f32 %v3866_v22, %v602_v28  ;;  %3321 = vmatmul.msk.bf16.vlgmr.msra.gmra.mxu0 %vm842_vm0, %v1261_v18  ;;  %v867_v20 = vsel %vm842_vm0, %v4105_v25, 0.0  ;;  %v873_v28 = vsel %vm842_vm0, %v4075_v36, 0.0 }
 0x1de   : > { %868 = vadd.xlane.f32.xlu2 %v867_v20 }
 0x1df   : > { %v645_v32 = vadd.f32 %v3869_v23, %v628_v11  ;;  %v612_v33 = vpop.permute.xlu0 %611 }
 0x1e0   : > { %v630_v50 = vmul.f32 %v3866_v22, %v612_v33 }
 0x1e1   : > { %v742_v41 = vadd.f32 %v726_v46, %v645_v32 }
 0x1e2   : > { %v647_v54 = vadd.f32 %v3869_v23, %v630_v50 }
 0x1e3   : > { %v4122_v43 = vadd.f32 %v823_v37, %v742_v41 }
 0x1e4   : > { %v607_v14 = vpop.permute.xlu1 %606 }
 0x1e5   : > { %v629_v7 = vmul.f32 %v3866_v22, %v607_v14 }
 0x1e6   : > { %871 = vadd.xlane.f32.xlu2 %v870_v55 }
 0x1e7   : > { %v646_v49 = vadd.f32 %v3869_v23, %v629_v7 }
 0x1e8   : > { %v706_v39 = vpop.permute.xlu0 %705 }
 0x1e9   : > { %v727_v35 = vmul.f32 %v3871_v24, %v706_v39  ;;  %v882_v39 = vsel %vm842_vm0, %v4122_v43, 0.0 }
 0x1eb   : > { %v4130_v42 = vadd.f32 %v727_v35, %v646_v49 }
 0x1ed   : > { %v710_v26 = vpop.permute.xlu1 %709 }
 0x1ee   : > { %v728_v58 = vmul.f32 %v3871_v24, %v710_v26 }
 0x1f0   : > { %v744_v34 = vadd.f32 %v728_v58, %v647_v54 }
 0x1f6   : > { %v807_v59 = vpop.permute.xlu1 %806 }
 0x1f7   : > { %v825_v60 = vmul.f32 %v3873_v27, %v807_v59 }
 0x1f9   : > { %v4135_v62 = vadd.f32 %v825_v60, %v744_v34 }
 0x1fe   : > { %794 = vperm.xlu2 %3563, %v3928_v19  }
 0x206   : > { %802 = vperm.xlu2 %3563, %v3999_v29  }
 0x213   : > { %v954_v63 = vpop.xlane.xlu0 %953 }
 0x214   : > { %v996_v22 = vmul.f32 %v954_v63, %v3964_v56 }
 0x216   : > { %v1012_v61 = vadd.f32 1e-05, %v996_v22 }
 0x218   : > { %3577 = vrsqrt.f32 %v1012_v61  ;;  %vm1052_vm9 = vweird.f32 %v1012_v61 }
 0x21b   : > { %v4140_v4 = vpop.xlane.xlu0 %877 }
 0x21e   : > { %v3578_v23 = vpop.eup %3577 }
 0x21f   : > { %v1047_v5 = vmul.f32 %v3578_v23, %v1012_v61  ;;  %vm1053_vm8 = vweird.f32 %v3578_v23 }
 0x220   : > { %vm1054_vm10 = vmor %vm1052_vm9, %vm1053_vm8 }
 0x221   : > { %v1048_v24 = vmul.f32 %v3578_v23, %v1047_v5  ;;  %v957_v21 = vpop.xlane.xlu1 %956 }
 0x222   : > { %v997_v44 = vmul.f32 %v957_v21, %v3964_v56 }
 0x223   : > { %v1049_v6 = vmul.f32 0.5, %v1048_v24  ;;  %v963_v8 = vpop.xlane.xlu0 %962 }
 0x224   : > { %v1013_v52 = vadd.f32 1e-05, %v997_v44  ;;  %v999_v19 = vmul.f32 %v963_v8, %v3964_v56 }
 0x225   : > { %v1050_v57 = vsub.f32 1.5, %v1049_v6 }
 0x226   : > { %3579 = vrsqrt.f32 %v1013_v52  ;;  %v1015_v29 = vadd.f32 1e-05, %v999_v19  ;;  %vm1062_vm12 = vweird.f32 %v1013_v52 }
 0x227   : > { %v1051_v15 = vmul.f32 %v3578_v23, %v1050_v57 }
 0x228   : > { %3581 = vrsqrt.f32 %v1015_v29  ;;  %vm1082_vm15 = vweird.f32 %v1015_v29 }
 0x229   : > { %v960_v10 = vpop.xlane.xlu1 %959  ;;  %v1055_v11 = vsel %vm1054_vm10, %v3578_v23, %v1051_v15 }
 0x22a   : > { %v998_v12 = vmul.f32 %v960_v10, %v3964_v56  ;;  %v1188_v32 = vmul.f32 %v1055_v11, %v4011_v31 }
 0x22c   : > { %v3580_v16 = vpop.eup %3579  ;;  %v1014_v48 = vadd.f32 1e-05, %v998_v12  ;;  %v1205_v49 = vmul.f32 %v4080_v1, %v1188_v32 }
 0x22d   : > { %v1057_v3 = vmul.f32 %v3580_v16, %v1013_v52  ;;  %vm1063_vm11 = vweird.f32 %v3580_v16 }
 0x22e   : > { %v3582_v18 = vpop.eup %3581  ;;  %3583 = vrsqrt.f32 %v1014_v48  ;;  %vm1064_vm14 = vmor %vm1062_vm12, %vm1063_vm11  ;;  %v1222_v60 = vadd.f32 %v4084_v38, %v1205_v49  ;;  %vm1072_vm3 = vweird.f32 %v1014_v48 }
 0x22f   : > { %v1058_v20 = vmul.f32 %v3580_v16, %v1057_v3  ;;  %v1077_v30 = vmul.f32 %v3582_v18, %v1015_v29  ;;  %874 = vadd.xlane.f32.xlu2 %v873_v28  ;;  %vm1083_vm13 = vweird.f32 %v3582_v18 }
 0x230   : > { %vm1084_vm1 = vmor %vm1082_vm15, %vm1083_vm13  ;;  %v1238_v23 = vmax.f32 %v1222_v60, 0.0 }
 0x231   : > { %v1059_v45 = vmul.f32 0.5, %v1058_v20  ;;  %v1078_v46 = vmul.f32 %v3582_v18, %v1077_v30  ;;  %v905_v20 = vmul.f32 %v3964_v56, %v4077_v40  ;;  %v909_v40 = vmul.f32 %v3964_v56, %v4140_v4 }
 0x233   : > { %v1060_v33 = vsub.f32 1.5, %v1059_v45  ;;  %v1079_v37 = vmul.f32 0.5, %v1078_v46 }
 0x234   : > { %v3584_v41 = vpop.eup %3583 }
 0x235   : > { %v1061_v14 = vmul.f32 %v3580_v16, %v1060_v33  ;;  %v1080_v7 = vsub.f32 1.5, %v1079_v37  ;;  %v1067_v55 = vmul.f32 %v3584_v41, %v1014_v48  ;;  %vm1073_vm2 = vweird.f32 %v3584_v41 }
 0x236   : > { %vm1074_vm4 = vmor %vm1072_vm3, %vm1073_vm2 }
 0x237   : > { %v1065_v35 = vsel %vm1064_vm14, %v3580_v16, %v1061_v14  ;;  %v1081_v50 = vmul.f32 %v3582_v18, %v1080_v7  ;;  %v1068_v26 = vmul.f32 %v3584_v41, %v1067_v55  ;;  %883 = vadd.xlane.f32.xlu2 %v882_v39 }
 0x238   : > { %v1189_v31 = vmul.f32 %v1065_v35, %v4029_v51 }
 0x239   : > { %v1085_v54 = vsel %vm1084_vm1, %v3582_v18, %v1081_v50  ;;  %v1069_v58 = vmul.f32 0.5, %v1068_v26 }
 0x23a   : > { %v1191_v34 = vmul.f32 %v1085_v54, %v4033_v53  ;;  %v1206_v59 = vmul.f32 %v4080_v1, %v1189_v31  ;;  %v4221_v31 = vld [vmem:[%s488_s14] sm:$0x7]  ;;  %s514_s14 = scalar_lea.vmem %s5660_s9, %s3304_s17 }
 0x23b   : > { %v1070_v63 = vsub.f32 1.5, %v1069_v58  ;;  %v4225_v58 = vperm.slane %v4221_v31, 0 }
 0x23c   : > { %v1223_v22 = vadd.f32 %v4084_v38, %v1206_v59  ;;  %v1208_v51 = vmul.f32 %v4080_v1, %v1191_v34 }
 0x23d   : > { %v1071_v61 = vmul.f32 %v3584_v41, %v1070_v63  ;;  %v966_v63 = vpop.xlane.xlu0 %965 }
 0x23e   : > { %v1239_v5 = vmax.f32 %v1223_v22, 0.0  ;;  %v1225_v6 = vadd.f32 %v4084_v38, %v1208_v51 }
 0x23f   : > { %v1075_v24 = vsel %vm1074_vm4, %v3584_v41, %v1071_v61  ;;  %v1000_v61 = vmul.f32 %v966_v63, %v3964_v56 }
 0x240   : > { %v1190_v21 = vmul.f32 %v1075_v24, %v4051_v17  ;;  %v1262_v44 = vpack.c.bf16 %v1239_v5, %v1238_v23  ;;  %v1241_v19 = vmax.f32 %v1225_v6, 0.0 }
 0x241   : > { %v4241_v51 = vadd.f32 1e-05, %v1000_v61 }
 0x242   : > { %3322 = vmatmul.msk.bf16.gmra.mxu0 %vm842_vm0, %v1262_v44  ;;  %v1207_v53 = vmul.f32 %v4080_v1, %v1190_v21 }
 0x243   : > { %vm1092_vm12 = vweird.f32 %v4241_v51 }
 0x244   : > { %v1224_v8 = vadd.f32 %v4084_v38, %v1207_v53 }
 0x246   : > { %v1240_v52 = vmax.f32 %v1224_v8, 0.0 }
 0x248   : > { %v1263_v29 = vpack.c.bf16 %v1241_v19, %v1240_v52 }
 0x24a   : > { %3323 = vmatmul.msk.bf16.vlgmr.msra.gmra.mxu1 %vm842_vm0, %v1263_v29 }
 0x251   : > { %v869_v57 = vpop.xlane.xlu2 %868 }
 0x252   : > { %v906_v10 = vmul.f32 %v3964_v56, %v869_v57 }
 0x254   : > { %v4165_v12 = vsub.f32 %v4105_v25, %v906_v10  ;;  %v888_v25 = vsel %vm842_vm0, %v4135_v62, 0.0 }
 0x256   : > { %v938_v17 = vmul.f32 %v4165_v12, %v4165_v12 }
 0x258   : > { %v970_v15 = vsel %vm842_vm0, %v938_v17, 0.0 }
 0x259   : > { %v872_v16 = vpop.xlane.xlu2 %871  ;;  %971 = vadd.xlane.f32.xlu2 %v970_v15 }
 0x25a   : > { %v907_v48 = vmul.f32 %v3964_v56, %v872_v16  ;;  %v1327_v50 = vpop.f32.mrf.mxu0 }
 0x25c   : > { %v4172_v3 = vsub.f32 %v4120_v0, %v907_v48  ;;  %v4184_v0 = vsub.f32 %v3981_v9, %v905_v20  ;;  %v4197_v9 = vsub.f32 %v4026_v47, %v909_v40 }
 0x25e   : > { %v939_v18 = vmul.f32 %v4172_v3, %v4172_v3  ;;  %v937_v32 = vmul.f32 %v4184_v0, %v4184_v0 }
 0x260   : > { %v973_v28 = vsel %vm842_vm0, %v939_v18, 0.0  ;;  %v967_v41 = vsel %vm842_vm0, %v937_v32, 0.0 }
 0x261   : > { %974 = vadd.xlane.f32.xlu0 %v973_v28  ;;  %v795_v11 = vpop.permute.xlu2 %794  ;;  %889 = vadd.xlane.f32.xlu2 %v888_v25 }
 0x262   : > { %v822_v30 = vmul.f32 %v3873_v27, %v795_v11  ;;  %v4227_v34 = vpop.f32.mrf.mxu0 }
 0x264   : > { %v838_v45 = vadd.f32 %v822_v30, %v4107_v13 }
 0x266   : > { %v879_v46 = vsel %vm842_vm0, %v838_v45, 0.0 }
 0x267   : > { %880 = vadd.xlane.f32.xlu1 %v879_v46 }
 0x269   : > { %v803_v33 = vpop.permute.xlu2 %802 }
 0x26a   : > { %v824_v37 = vmul.f32 %v3873_v27, %v803_v33  ;;  %v941_v27 = vmul.f32 %v4197_v9, %v4197_v9 }
 0x26c   : > { %v4194_v13 = vadd.f32 %v824_v37, %v4130_v42  ;;  %v979_v7 = vsel %vm842_vm0, %v941_v27, 0.0 }
 0x26e   : > { %v885_v14 = vsel %vm842_vm0, %v4194_v13, 0.0 }
 0x26f   : > { %968 = vadd.xlane.f32.xlu1 %v967_v41 }
 0x277   : > { %886 = vadd.xlane.f32.xlu1 %v885_v14 }
 0x27f   : > { %980 = vadd.xlane.f32.xlu1 %v979_v7 }
 0x2a2   : > { %v875_v55 = vpop.xlane.xlu2 %874 }
 0x2a3   : > { %v908_v4 = vmul.f32 %v3964_v56, %v875_v55 }
 0x2a5   : > { %v4206_v42 = vsub.f32 %v4075_v36, %v908_v4 }
 0x2a7   : > { %v940_v47 = vmul.f32 %v4206_v42, %v4206_v42 }
 0x2a9   : > { %v976_v39 = vsel %vm842_vm0, %v940_v47, 0.0 }
 0x2aa   : > { %977 = vadd.xlane.f32.xlu0 %v976_v39  ;;  %v884_v49 = vpop.xlane.xlu2 %883 }
 0x2ab   : > { %v911_v35 = vmul.f32 %v3964_v56, %v884_v49 }
 0x2ad   : > { %v4213_v26 = vsub.f32 %v4122_v43, %v911_v35  ;;  %v4230_v43 = vadd.f32 %v1327_v50, %v4225_v58 }
 0x2af   : > { %v943_v36 = vmul.f32 %v4213_v26, %v4213_v26 }
 0x2b1   : > { %v985_v54 = vsel %vm842_vm0, %v943_v36, 0.0 }
 0x2b2   : > { %986 = vadd.xlane.f32.xlu0 %v985_v54 }
 0x2ba   : > { %1367 = vadd.xlane.f32.xlu0 %v4230_v43 }
 0x2bf   : > { %v4233_v59 = vpop.f32.mrf.mxu0 }
 0x2c7   : > { %v1334_v60 = vpop.f32.mrf.mxu0  ;;  %v1337_v36 = vpop.f32.mrf.mxu1 }
 0x2c8   : > { %v4236_v22 = vadd.f32 %v1334_v60, %v4225_v58 }
 0x2ca   : > { %1373 = vadd.xlane.f32.xlu0 %v4236_v22 }
 0x2cc   : > { %v972_v23 = vpop.xlane.xlu2 %971 }
 0x2cd   : > { %v1002_v5 = vmul.f32 %v972_v23, %v3964_v56 }
 0x2cf   : > { %v1018_v24 = vadd.f32 1e-05, %v1002_v5 }
 0x2d1   : > { %3585 = vrsqrt.f32 %v1018_v24  ;;  %vm1112_vm6 = vweird.f32 %v1018_v24 }
 0x2d2   : > { %3587 = vrsqrt.f32 %v4241_v51 }
 0x2d4   : > { %v975_v21 = vpop.xlane.xlu0 %974  ;;  %v890_v29 = vpop.xlane.xlu2 %889 }
 0x2d5   : > { %v1003_v44 = vmul.f32 %v975_v21, %v3964_v56  ;;  %v913_v16 = vmul.f32 %v3964_v56, %v890_v29 }
 0x2d7   : > { %v3586_v53 = vpop.eup %3585  ;;  %v1019_v6 = vadd.f32 1e-05, %v1003_v44  ;;  %v4257_v46 = vsub.f32 %v4135_v62, %v913_v16 }
 0x2d8   : > { %v1107_v8 = vmul.f32 %v3586_v53, %v1018_v24  ;;  %v4245_v52 = vpop.eup %3587  ;;  %vm1113_vm5 = vweird.f32 %v3586_v53 }
 0x2d9   : > { %3589 = vrsqrt.f32 %v1019_v6  ;;  %v1087_v17 = vmul.f32 %v4245_v52, %v4241_v51  ;;  %vm1114_vm7 = vmor %vm1112_vm6, %vm1113_vm5  ;;  %v945_v55 = vmul.f32 %v4257_v46, %v4257_v46  ;;  %vm1122_vm9 = vweird.f32 %v1019_v6 }
 0x2da   : > { %v1108_v19 = vmul.f32 %v3586_v53, %v1107_v8  ;;  %v881_v57 = vpop.xlane.xlu1 %880  ;;  %vm1093_vm11 = vweird.f32 %v4245_v52 }
 0x2db   : > { %v910_v10 = vmul.f32 %v3964_v56, %v881_v57  ;;  %v1088_v11 = vmul.f32 %v4245_v52, %v1087_v17  ;;  %v991_v39 = vsel %vm842_vm0, %v945_v55, 0.0  ;;  %vm1094_vm13 = vmor %vm1092_vm12, %vm1093_vm11  ;;  %v1339_v17 = vpop.f32.mrf.mxu1 }
 0x2dc   : > { %v1109_v15 = vmul.f32 0.5, %v1108_v19  ;;  %v4294_v16 = vadd.f32 %v1339_v17, %v4225_v58 }
 0x2dd   : > { %v4251_v48 = vsub.f32 %v838_v45, %v910_v10  ;;  %v1089_v40 = vmul.f32 0.5, %v1088_v11 }
 0x2de   : > { %v1110_v18 = vsub.f32 1.5, %v1109_v15  ;;  %v4291_v15 = vadd.f32 %v4227_v34, %v4225_v58  ;;  %v4303_v34 = vadd.f32 %v1337_v36, %v4225_v58 }
 0x2df   : > { %v3590_v28 = vpop.eup %3589  ;;  %v942_v25 = vmul.f32 %v4251_v48, %v4251_v48  ;;  %v1090_v62 = vsub.f32 1.5, %v1089_v40 }
 0x2e0   : > { %v1111_v20 = vmul.f32 %v3586_v53, %v1110_v18  ;;  %v1117_v30 = vmul.f32 %v3590_v28, %v1019_v6  ;;  %vm1123_vm8 = vweird.f32 %v3590_v28 }
 0x2e1   : > { %v982_v32 = vsel %vm842_vm0, %v942_v25, 0.0  ;;  %vm1124_vm10 = vmor %vm1122_vm9, %vm1123_vm8  ;;  %v1091_v60 = vmul.f32 %v4245_v52, %v1090_v62 }
 0x2e2   : > { %v1115_v33 = vsel %vm1114_vm7, %v3586_v53, %v1111_v20  ;;  %v1118_v45 = vmul.f32 %v3590_v28, %v1117_v30  ;;  %983 = vadd.xlane.f32.xlu2 %v982_v32  ;;  %v969_v37 = vpop.xlane.xlu1 %968  ;;  %v4282_v53 = vadd.f32 %v4233_v59, %v4225_v58 }
 0x2e3   : > { %v1001_v41 = vmul.f32 %v969_v37, %v3964_v56  ;;  %v1194_v27 = vmul.f32 %v1115_v33, %v4165_v12  ;;  %v1095_v44 = vsel %vm1094_vm13, %v4245_v52, %v1091_v60  ;;  %v3733_v37 = vmov 128.0  }
 0x2e4   : > { %v1119_v14 = vmul.f32 0.5, %v1118_v45  ;;  %v1192_v51 = vmul.f32 %v1095_v44, %v4056_v2 }
 0x2e5   : > { %v1017_v7 = vadd.f32 1e-05, %v1001_v41  ;;  %v1211_v49 = vmul.f32 %v4080_v1, %v1194_v27 }
 0x2e6   : > { %v1120_v4 = vsub.f32 1.5, %v1119_v14  ;;  %v1209_v59 = vmul.f32 %v4080_v1, %v1192_v51 }
 0x2e7   : > { %3591 = vrsqrt.f32 %v1017_v7  ;;  %v1228_v5 = vadd.f32 %v4084_v38, %v1211_v49  ;;  %vm1102_vm15 = vweird.f32 %v1017_v7 }
 0x2e8   : > { %v1121_v47 = vmul.f32 %v3590_v28, %v1120_v4  ;;  %v1226_v25 = vadd.f32 %v4084_v38, %v1209_v59 }
 0x2e9   : > { %v1244_v8 = vmax.f32 %v1228_v5, 0.0 }
 0x2ea   : > { %v1125_v35 = vsel %vm1124_vm10, %v3590_v28, %v1121_v47  ;;  %992 = vadd.xlane.f32.xlu2 %v991_v39  ;;  %v887_v50 = vpop.xlane.xlu1 %886  ;;  %v1242_v20 = vmax.f32 %v1226_v25, 0.0 }
 0x2eb   : > { %v1195_v12 = vmul.f32 %v1125_v35, %v4172_v3  ;;  %v912_v54 = vmul.f32 %v3964_v56, %v887_v50 }
 0x2ed   : > { %v3592_v63 = vpop.eup %3591  ;;  %v4271_v61 = vsub.f32 %v4194_v13, %v912_v54  ;;  %v1212_v23 = vmul.f32 %v4080_v1, %v1195_v12 }
 0x2ee   : > { %v1097_v24 = vmul.f32 %v3592_v63, %v1017_v7  ;;  %vm1103_vm14 = vweird.f32 %v3592_v63 }
 0x2ef   : > { %v944_v3 = vmul.f32 %v4271_v61, %v4271_v61  ;;  %v1229_v21 = vadd.f32 %v4084_v38, %v1212_v23  ;;  %vm1104_vm1 = vmor %vm1102_vm15, %vm1103_vm14 }
 0x2f0   : > { %v1098_v13 = vmul.f32 %v3592_v63, %v1097_v24 }
 0x2f1   : > { %v988_v6 = vsel %vm842_vm0, %v944_v3, 0.0  ;;  %v1245_v19 = vmax.f32 %v1229_v21, 0.0 }
 0x2f2   : > { %v1099_v29 = vmul.f32 0.5, %v1098_v13  ;;  %1371 = vadd.xlane.f32.xlu2 %v4282_v53  ;;  %989 = vadd.xlane.f32.xlu1 %v988_v6  ;;  %v981_v33 = vpop.xlane.xlu1 %980 }
 0x2f3   : > { %v1265_v57 = vpack.c.bf16 %v1245_v19, %v1244_v8 }
 0x2f4   : > { %v1100_v10 = vsub.f32 1.5, %v1099_v29 }
 0x2f5   : > { %3325 = vmatmul.msk.bf16.vlgmr.msra.gmra.mxu2 %vm842_vm0, %v1265_v57 }
 0x2f6   : > { %v1101_v52 = vmul.f32 %v3592_v63, %v1100_v10 }
 0x2f8   : > { %v1105_v18 = vsel %vm1104_vm1, %v3592_v63, %v1101_v52 }
 0x2f9   : > { %v1193_v2 = vmul.f32 %v1105_v18, %v4184_v0  ;;  %v1005_v0 = vmul.f32 %v981_v33, %v3964_v56 }
 0x2fa   : > { %1377 = vadd.xlane.f32.xlu2 %v4294_v16  ;;  %1369 = vadd.xlane.f32.xlu1 %v4291_v15 }
 0x2fb   : > { %v1210_v28 = vmul.f32 %v4080_v1, %v1193_v2  ;;  %v1021_v45 = vadd.f32 1e-05, %v1005_v0 }
 0x2fd   : > { %v1227_v11 = vadd.f32 %v4084_v38, %v1210_v28  ;;  %3593 = vrsqrt.f32 %v1021_v45  ;;  %vm1142_vm4 = vweird.f32 %v1021_v45 }
 0x2fe   : > { %3595 = vrcp.f32 %v3733_v37 }
 0x2ff   : > { %v1243_v30 = vmax.f32 %v1227_v11, 0.0 }
 0x301   : > { %v1264_v32 = vpack.c.bf16 %v1243_v30, %v1242_v20 }
 0x302   : > { %1375 = vadd.xlane.f32.xlu1 %v4303_v34 }
 0x303   : > { %3324 = vmatmul.msk.bf16.gmra.mxu1 %vm842_vm0, %v1264_v32  ;;  %v3594_v41 = vpop.eup %3593 }
 0x304   : > { %v1137_v40 = vmul.f32 %v3594_v41, %v1021_v45  ;;  %v3596_v14 = vpop.eup %3595  ;;  %vm1143_vm2 = vweird.f32 %v3594_v41 }
 0x305   : > { %v1400_v7 = vmul.f32 128.0, %v3596_v14  ;;  %vm1404_vm3 = vweird.f32 %v3596_v14  ;;  %vm1144_vm5 = vmor %vm1142_vm4, %vm1143_vm2 }
 0x306   : > { %v1138_v27 = vmul.f32 %v3594_v41, %v1137_v40 }
 0x307   : > { %v1401_v47 = vsub.f32 1.0, %v1400_v7 }
 0x308   : > { %v1139_v62 = vmul.f32 0.5, %v1138_v27 }
 0x309   : > { %v1402_v35 = vmul.f32 %v3596_v14, %v1401_v47 }
 0x30a   : > { %v1140_v49 = vsub.f32 1.5, %v1139_v62 }
 0x30b   : > { %v1403_v12 = vadd.f32 %v3596_v14, %v1402_v35 }
 0x30c   : > { %v1141_v36 = vmul.f32 %v3594_v41, %v1140_v49 }
 0x30d   : > { %v4309_v5 = vsel %vm1404_vm3, %v3596_v14, %v1403_v12 }
 0x30e   : > { %v1145_v63 = vsel %vm1144_vm5, %v3594_v41, %v1141_v36 }
 0x30f   : > { %v1197_v21 = vmul.f32 %v1145_v63, %v4197_v9 }
 0x311   : > { %v1214_v29 = vmul.f32 %v4080_v1, %v1197_v21 }
 0x313   : > { %v1231_v10 = vadd.f32 %v4084_v38, %v1214_v29 }
 0x315   : > { %v1247_v52 = vmax.f32 %v1231_v10, 0.0 }
 0x31d   : > { %v978_v55 = vpop.xlane.xlu0 %977 }
 0x31e   : > { %v1004_v4 = vmul.f32 %v978_v55, %v3964_v56 }
 0x320   : > { %v1020_v39 = vadd.f32 1e-05, %v1004_v4 }
 0x322   : > { %3597 = vrsqrt.f32 %v1020_v39  ;;  %vm1132_vm7 = vweird.f32 %v1020_v39 }
 0x325   : > { %v987_v50 = vpop.xlane.xlu0 %986 }
 0x326   : > { %v1007_v18 = vmul.f32 %v987_v50, %v3964_v56 }
 0x328   : > { %v3598_v54 = vpop.eup %3597  ;;  %v1023_v2 = vadd.f32 1e-05, %v1007_v18 }
 0x329   : > { %v1127_v60 = vmul.f32 %v3598_v54, %v1020_v39  ;;  %vm1133_vm6 = vweird.f32 %v3598_v54 }
 0x32a   : > { %vm1134_vm8 = vmor %vm1132_vm7, %vm1133_vm6  ;;  %3599 = vrsqrt.f32 %v1023_v2  ;;  %vm1162_vm10 = vweird.f32 %v1023_v2 }
 0x32b   : > { %v1128_v23 = vmul.f32 %v3598_v54, %v1127_v60 }
 0x32d   : > { %v1129_v24 = vmul.f32 0.5, %v1128_v23  ;;  %v1368_v3 = vpop.xlane.xlu0 %1367 }
 0x32e   : > { %v1406_v44 = vmul.f32 %v4309_v5, %v1368_v3 }
 0x32f   : > { %v1130_v13 = vsub.f32 1.5, %v1129_v24 }
 0x330   : > { %v4314_v6 = vsub.f32 %v4230_v43, %v1406_v44  ;;  %v3600_v28 = vpop.eup %3599 }
 0x331   : > { %v1131_v8 = vmul.f32 %v3598_v54, %v1130_v13  ;;  %v1157_v25 = vmul.f32 %v3600_v28, %v1023_v2  ;;  %vm1163_vm9 = vweird.f32 %v3600_v28 }
 0x332   : > { %v1438_v19 = vmul.f32 %v4314_v6, %v4314_v6  ;;  %vm1164_vm11 = vmor %vm1162_vm10, %vm1163_vm9 }
 0x333   : > { %v1135_v51 = vsel %vm1134_vm8, %v3598_v54, %v1131_v8  ;;  %v1158_v11 = vmul.f32 %v3600_v28, %v1157_v25 }
 0x334   : > { %v1196_v57 = vmul.f32 %v1135_v51, %v4206_v42  ;;  %1454 = vadd.xlane.f32.xlu0 %v1438_v19 }
 0x335   : > { %v1159_v30 = vmul.f32 0.5, %v1158_v11 }
 0x336   : > { %v1213_v9 = vmul.f32 %v4080_v1, %v1196_v57 }
 0x337   : > { %v1160_v33 = vsub.f32 1.5, %v1159_v30 }
 0x338   : > { %v1230_v17 = vadd.f32 %v4084_v38, %v1213_v9 }
 0x339   : > { %v1161_v37 = vmul.f32 %v3600_v28, %v1160_v33 }
 0x33a   : > { %v1246_v43 = vmax.f32 %v1230_v17, 0.0 }
 0x33b   : > { %v1165_v27 = vsel %vm1164_vm11, %v3600_v28, %v1161_v37 }
 0x33c   : > { %v1266_v59 = vpack.c.bf16 %v1247_v52, %v1246_v43  ;;  %v1199_v62 = vmul.f32 %v1165_v27, %v4213_v26 }
 0x33e   : > { %3326 = vmatmul.msk.bf16.gmra.mxu2 %vm842_vm0, %v1266_v59  ;;  %v1216_v12 = vmul.f32 %v4080_v1, %v1199_v62 }
 0x340   : > { %v1233_v3 = vadd.f32 %v4084_v38, %v1216_v12 }
 0x342   : > { %v1249_v10 = vmax.f32 %v1233_v3, 0.0  ;;  %v3379_v3 = vld [vmem:[%s4395_s18 + $0x60] sm:$0xf] }
 0x355   : > { %v984_v42 = vpop.xlane.xlu2 %983 }
 0x356   : > { %v1006_v20 = vmul.f32 %v984_v42, %v3964_v56 }
 0x358   : > { %v1022_v32 = vadd.f32 1e-05, %v1006_v20 }
 0x35a   : > { %3601 = vrsqrt.f32 %v1022_v32  ;;  %vm1152_vm13 = vweird.f32 %v1022_v32 }
 0x35d   : > { %v993_v0 = vpop.xlane.xlu2 %992 }
 0x35e   : > { %v1009_v45 = vmul.f32 %v993_v0, %v3964_v56 }
 0x360   : > { %v3602_v41 = vpop.eup %3601  ;;  %v1025_v40 = vadd.f32 1e-05, %v1009_v45 }
 0x361   : > { %v1147_v14 = vmul.f32 %v3602_v41, %v1022_v32  ;;  %vm1153_vm12 = vweird.f32 %v3602_v41 }
 0x362   : > { %3603 = vrsqrt.f32 %v1025_v40  ;;  %vm1154_vm14 = vmor %vm1152_vm13, %vm1153_vm12  ;;  %vm1182_vm1 = vweird.f32 %v1025_v40 }
 0x363   : > { %v1148_v7 = vmul.f32 %v3602_v41, %v1147_v14 }
 0x365   : > { %v1149_v55 = vmul.f32 0.5, %v1148_v7  ;;  %v990_v4 = vpop.xlane.xlu1 %989  ;;  %v1372_v44 = vpop.xlane.xlu2 %1371 }
 0x366   : > { %v1008_v47 = vmul.f32 %v990_v4, %v3964_v56  ;;  %v1408_v51 = vmul.f32 %v4309_v5, %v1372_v44  ;;  %v3480_v44 = vld [vmem:[%s4395_s18 + $0x64] sm:$0xf] }
 0x367   : > { %v1150_v39 = vsub.f32 1.5, %v1149_v55 }
 0x368   : > { %v3604_v49 = vpop.eup %3603  ;;  %v1024_v35 = vadd.f32 1e-05, %v1008_v47  ;;  %v4343_v18 = vsub.f32 %v4282_v53, %v1408_v51  ;;  %v3371_v51 = vld [vmem:[%s4395_s18 + $0x50] sm:$0xf] }
 0x369   : > { %v1151_v50 = vmul.f32 %v3602_v41, %v1150_v39  ;;  %v1177_v36 = vmul.f32 %v3604_v49, %v1025_v40  ;;  %vm1183_vm15 = vweird.f32 %v3604_v49 }
 0x36a   : > { %3605 = vrsqrt.f32 %v1024_v35  ;;  %vm1184_vm2 = vmor %vm1182_vm1, %vm1183_vm15  ;;  %vm1172_vm4 = vweird.f32 %v1024_v35  ;;  %v1440_v11 = vmul.f32 %v4343_v18, %v4343_v18 }
 0x36b   : > { %v1155_v54 = vsel %vm1154_vm14, %v3602_v41, %v1151_v50  ;;  %v1178_v60 = vmul.f32 %v3604_v49, %v1177_v36 }
 0x36c   : > { %v1198_v63 = vmul.f32 %v1155_v54, %v4251_v48  ;;  %v3483_v54 = vld [vmem:[%s4395_s18 + $0x74] sm:$0xf0] }
 0x36d   : > { %v1179_v23 = vmul.f32 0.5, %v1178_v60  ;;  %v1370_v24 = vpop.xlane.xlu1 %1369  ;;  %v3482_v60 = vld [vmem:[%s4395_s18 + $0x74] sm:$0xf] }
 0x36e   : > { %v1407_v26 = vmul.f32 %v4309_v5, %v1370_v24  ;;  %v1215_v56 = vmul.f32 %v4080_v1, %v1198_v63 }
 0x36f   : > { %v1180_v21 = vsub.f32 1.5, %v1179_v23  ;;  %v3389_v23 = vld [vmem:[%s4395_s18 + $0x78] sm:$0xf0] }
 0x370   : > { %v3606_v13 = vpop.eup %3605  ;;  %v4335_v8 = vsub.f32 %v4291_v15, %v1407_v26  ;;  %v1232_v19 = vadd.f32 %v4084_v38, %v1215_v56  ;;  %v3392_v26 = vor.u32 %v3482_v60, %v3389_v23 }
 0x371   : > { %v1181_v29 = vmul.f32 %v3604_v49, %v1180_v21  ;;  %v1167_v48 = vmul.f32 %v3606_v13, %v1024_v35  ;;  %vm1173_vm3 = vweird.f32 %v3606_v13  ;;  %v3481_v21 = vld [vmem:[%s4395_s18 + $0x64] sm:$0xf0] }
 0x372   : > { %v1439_v57 = vmul.f32 %v4335_v8, %v4335_v8  ;;  %v1248_v9 = vmax.f32 %v1232_v19, 0.0  ;;  %vm1174_vm5 = vmor %vm1172_vm4, %vm1173_vm3  ;;  %1905 = vmatpush.bf16.msrb.mxu2 %v3392_v26  ;;  %v3381_v19 = vld [vmem:[%s4395_s18 + $0x68] sm:$0xf0] }
 0x373   : > { %v1185_v17 = vsel %vm1184_vm2, %v3604_v49, %v1181_v29  ;;  %v1168_v43 = vmul.f32 %v3606_v13, %v1167_v48  ;;  %v3384_v48 = vor.u32 %v3480_v44, %v3381_v19 }
 0x374   : > { %1456 = vadd.xlane.f32.xlu1 %v1439_v57  ;;  %v1267_v52 = vpack.c.bf16 %v1249_v10, %v1248_v9  ;;  %v1201_v15 = vmul.f32 %v1185_v17, %v4257_v46  ;;  %v1374_v46 = vpop.xlane.xlu0 %1373  ;;  %v3479_v57 = vld [vmem:[%s4395_s18 + $0x54] sm:$0xf0]  ;;  %v3478_v9 = vld [vmem:[%s4395_s18 + $0x54] sm:$0xf] }
 0x375   : > { %v1169_v59 = vmul.f32 0.5, %v1168_v43  ;;  %v1409_v37 = vmul.f32 %v4309_v5, %v1374_v46  ;;  %v1376_v7 = vpop.xlane.xlu1 %1375  ;;  %v3372_v17 = vor.u32 %v3479_v57, %v3371_v51  ;;  %v3373_v43 = vld [vmem:[%s4395_s18 + $0x58] sm:$0xf0]  ;;  %v3474_v46 = vld [vmem:[%s4395_s18 + $0x34] sm:$0xf] }
 0x376   : > { %3327 = vmatmul.msk.bf16.gmra.mxu2 %vm842_vm0, %v1267_v52  ;;  %v1218_v42 = vmul.f32 %v4080_v1, %v1201_v15  ;;  %v1410_v55 = vmul.f32 %v4309_v5, %v1376_v7  ;;  %v3376_v52 = vor.u32 %v3478_v9, %v3373_v43  ;;  %v3477_v15 = vld [vmem:[%s4395_s18 + $0x44] sm:$0xf0] }
 0x377   : > { %v1170_v2 = vsub.f32 1.5, %v1169_v59  ;;  %v4363_v27 = vsub.f32 %v4236_v22, %v1409_v37  ;;  %v1378_v22 = vpop.xlane.xlu2 %1377  ;;  %1906 = vmatpush.bf16.msrb.mxu2 %v3384_v48  ;;  %v3363_v59 = vld [vmem:[%s4395_s18 + $0x40] sm:$0xf]  ;;  %v3472_v37 = vld [vmem:[%s4395_s18 + $0x24] sm:$0xf] }
 0x378   : > { %v1347_v28 = vpop.f32.mrf.mxu2  ;;  %v1235_v32 = vadd.f32 %v4084_v38, %v1218_v42  ;;  %v4374_v47 = vsub.f32 %v4303_v34, %v1410_v55  ;;  %v1411_v39 = vmul.f32 %v4309_v5, %v1378_v22  ;;  %v3471_v55 = vld [vmem:[%s4395_s18 + $0x14] sm:$0xf0] }
 0x379   : > { %v1171_v25 = vmul.f32 %v3606_v13, %v1170_v2  ;;  %v1441_v62 = vmul.f32 %v4363_v27, %v4363_v27  ;;  %v4378_v49 = vadd.f32 %v1347_v28, %v4225_v58  ;;  %v3476_v2 = vld [vmem:[%s4395_s18 + $0x44] sm:$0xf] }
 0x37a   : > { %v1442_v35 = vmul.f32 %v4374_v47, %v4374_v47  ;;  %v4384_v50 = vsub.f32 %v4294_v16, %v1411_v39  ;;  %v3387_v16 = vld [vmem:[%s4395_s18 + $0x70] sm:$0xf]  ;;  %v3341_v39 = vld [vmem:[%s4395_s18 + $0x18] sm:$0xf0] }
 0x37b   : > { %v1175_v20 = vsel %vm1174_vm5, %v3606_v13, %v1171_v25  ;;  %v3388_v63 = vor.u32 %v3483_v54, %v3387_v16  ;;  %v3380_v13 = vor.u32 %v3481_v21, %v3379_v3  ;;  %1907 = vmatpush.bf16.msrb.mxu2 %v3376_v52  ;;  %v3364_v25 = vor.u32 %v3477_v15, %v3363_v59  ;;  %v3469_v16 = vld [vmem:[%s4395_s18 + $0x4] sm:$0xf0]  ;;  %v3468_v54 = vld [vmem:[%s4395_s18 + $0x4] sm:$0xf] }
 0x37c   : > { %v1200_v30 = vmul.f32 %v1175_v20, %v4271_v61  ;;  %1458 = vadd.xlane.f32.xlu1 %v1440_v11  ;;  %v1251_v61 = vmax.f32 %v1235_v32, 0.0  ;;  %v1443_v36 = vmul.f32 %v4384_v50, %v4384_v50  ;;  %v3365_v11 = vld [vmem:[%s4395_s18 + $0x48] sm:$0xf0]  ;;  %v3355_v20 = vld [vmem:[%s4395_s18 + $0x30] sm:$0xf] }
 0x37d   : > { %1856 = vmatpush.bf16.msrb.mxu1 %v3388_v63  ;;  %v3368_v42 = vor.u32 %v3476_v2, %v3365_v11  ;;  %v3357_v32 = vld [vmem:[%s4395_s18 + $0x38] sm:$0xf0]  ;;  %v3333_v63 = vld [vmem:[%s4395_s18 + $0x8] sm:$0xf0]  ;;  %v4442_v2 = vperm.slane %v4221_v31, 1 }
 0x37e   : > { %v1217_v53 = vmul.f32 %v4080_v1, %v1200_v30  ;;  %v3475_v30 = vld [vmem:[%s4395_s18 + $0x34] sm:$0xf0] }
 0x37f   : > { %1908 = vmatpush.bf16.msrb.mxu2 %v3368_v42 }
 0x380   : > { %v1342_v33 = vpop.f32.mrf.mxu1  ;;  %v1349_v0 = vpop.f32.mrf.mxu2  ;;  %v1234_v45 = vadd.f32 %v4084_v38, %v1217_v53  ;;  %v3356_v53 = vor.u32 %v3475_v30, %v3355_v20 }
 0x381   : > { %v4355_v41 = vadd.f32 %v1342_v33, %v4225_v58  ;;  %v4358_v40 = vadd.f32 %v1349_v0, %v4225_v58  ;;  %1857 = vmatpush.bf16.msrb.mxu1 %v3380_v13  ;;  %v3360_v33 = vor.u32 %v3474_v46, %v3357_v32  ;;  %v3347_v0 = vld [vmem:[%s4395_s18 + $0x20] sm:$0xf] }
 0x382   : > { %v1250_v14 = vmax.f32 %v1234_v45, 0.0  ;;  %v3473_v45 = vld [vmem:[%s4395_s18 + $0x24] sm:$0xf0] }
 0x383   : > { %1379 = vadd.xlane.f32.xlu2 %v4355_v41  ;;  %1909 = vmatpush.bf16.msrb.mxu2 %v3360_v33  ;;  %v4459_v33 = vperm.slane %v4221_v31, 2 }
 0x384   : > { %1385 = vadd.xlane.f32.xlu1 %v4358_v40  ;;  %v1268_v1 = vpack.c.bf16 %v1251_v61, %v1250_v14  ;;  %v3348_v14 = vor.u32 %v3473_v45, %v3347_v0  ;;  %v3349_v61 = vld [vmem:[%s4395_s18 + $0x28] sm:$0xf0] }
 0x385   : > { %1858 = vmatpush.bf16.msrb.mxu1 %v3372_v17 }
 0x386   : > { %3328 = vmatmul.msk.bf16.vlgmr.msra.gmra.mxu3 %vm842_vm0, %v1268_v1  ;;  %v3352_v1 = vor.u32 %v3472_v37, %v3349_v61 }
 0x388   : > { %v1344_v38 = vpop.f32.mrf.mxu1  ;;  %1910 = vmatpush.bf16.msrb.mxu2 %v3352_v1 }
 0x389   : > { %v4368_v4 = vadd.f32 %v1344_v38, %v4225_v58  ;;  %1859 = vmatpush.bf16.msrb.mxu1 %v3364_v25  ;;  %v3339_v38 = vld [vmem:[%s4395_s18 + $0x10] sm:$0xf] }
 0x38a   : > { %v3340_v22 = vor.u32 %v3471_v55, %v3339_v38 }
 0x38b   : > { %1381 = vadd.xlane.f32.xlu0 %v4368_v4  ;;  %1460 = vadd.xlane.f32.xlu2 %v1441_v62  ;;  %v3470_v62 = vld [vmem:[%s4395_s18 + $0x14] sm:$0xf] }
 0x38d   : > { %1860 = vmatpush.bf16.msrb.mxu1 %v3356_v53 }
 0x391   : > { %1861 = vmatpush.bf16.msrb.mxu1 %v3348_v14 }
 0x393   : > { %1383 = vadd.xlane.f32.xlu0 %v4378_v49  ;;  %1462 = vadd.xlane.f32.xlu2 %v1442_v35 }
 0x395   : > { %1862 = vmatpush.bf16.msrb.mxu1 %v3340_v22 }
 0x39b   : > { %1464 = vadd.xlane.f32.xlu0 %v1443_v36  ;;  %v3344_v36 = vor.u32 %v3470_v62, %v3341_v39 }
 0x39d   : > { %1911 = vmatpush.bf16.msrb.mxu2 %v3344_v36 }
 0x3a7   : > { %v1455_v29 = vpop.xlane.xlu0 %1454 }
 0x3a8   : > { %v1486_v10 = vmul.f32 %v1455_v29, %v4309_v5 }
 0x3aa   : > { %v1502_v28 = vadd.f32 1e-05, %v1486_v10 }
 0x3ac   : > { %3607 = vrsqrt.f32 %v1502_v28  ;;  %vm1524_vm6 = vweird.f32 %v1502_v28 }
 0x3b2   : > { %v3608_v7 = vpop.eup %3607 }
 0x3b3   : > { %v1519_v35 = vmul.f32 %v3608_v7, %v1502_v28  ;;  %vm1525_vm0 = vweird.f32 %v3608_v7 }
 0x3b4   : > { %vm1526_vm7 = vmor %vm1524_vm6, %vm1525_vm0 }
 0x3b5   : > { %v1520_v23 = vmul.f32 %v3608_v7, %v1519_v35 }
 0x3b7   : > { %v1521_v21 = vmul.f32 0.5, %v1520_v23 }
 0x3b9   : > { %v1522_v13 = vsub.f32 1.5, %v1521_v21 }
 0x3bb   : > { %v1523_v48 = vmul.f32 %v3608_v7, %v1522_v13 }
 0x3bd   : > { %v1527_v10 = vsel %vm1526_vm7, %v3608_v7, %v1523_v48 }
 0x3be   : > { %v1678_v25 = vmul.f32 %v1527_v10, %v4314_v6 }
 0x3c1   : > { %v1352_v34 = vpop.f32.mrf.mxu2 }
 0x3c2   : > { %v4389_v12 = vadd.f32 %v1352_v34, %v4225_v58  ;;  %v3331_v34 = vld [vmem:[%s4395_s18] sm:$0xf] }
 0x3c3   : > { %v3332_v60 = vor.u32 %v3469_v16, %v3331_v34 }
 0x3c4   : > { %1387 = vadd.xlane.f32.xlu1 %v4389_v12 }
 0x3c5   : > { %1863 = vmatpush.bf16.msrb.mxu1 %v3332_v60 }
 0x3c9   : > { %v1354_v24 = vpop.f32.mrf.mxu2 }
 0x3ca   : > { %v4403_v56 = vadd.f32 %v1354_v24, %v4225_v58  ;;  %v3336_v24 = vor.u32 %v3468_v54, %v3333_v63 }
 0x3cc   : > { %1389 = vadd.xlane.f32.xlu2 %v4403_v56  ;;  %1912 = vmatpush.bf16.msrb.mxu2 %v3336_v24 }
 0x3e7   : > { %v1457_v26 = vpop.xlane.xlu1 %1456 }
 0x3e8   : > { %v1487_v3 = vmul.f32 %v1457_v26, %v4309_v5 }
 0x3ea   : > { %v1503_v44 = vadd.f32 1e-05, %v1487_v3 }
 0x3ec   : > { %3609 = vrsqrt.f32 %v1503_v44  ;;  %vm1534_vm9 = vweird.f32 %v1503_v44 }
 0x3ef   : > { %v1459_v19 = vpop.xlane.xlu1 %1458 }
 0x3f0   : > { %v1488_v29 = vmul.f32 %v1459_v19, %v4309_v5 }
 0x3f2   : > { %v3610_v51 = vpop.eup %3609  ;;  %v4437_v57 = vadd.f32 1e-05, %v1488_v29 }
 0x3f3   : > { %v1529_v9 = vmul.f32 %v3610_v51, %v1503_v44  ;;  %vm1535_vm8 = vweird.f32 %v3610_v51 }
 0x3f4   : > { %3611 = vrsqrt.f32 %v4437_v57  ;;  %vm1536_vm10 = vmor %vm1534_vm9, %vm1535_vm8  ;;  %vm1544_vm12 = vweird.f32 %v4437_v57 }
 0x3f5   : > { %v1530_v17 = vmul.f32 %v3610_v51, %v1529_v9 }
 0x3f6   : > { %v1380_v43 = vpop.xlane.xlu2 %1379 }
 0x3f7   : > { %v1531_v52 = vmul.f32 0.5, %v1530_v17  ;;  %v1412_v59 = vmul.f32 %v4309_v5, %v1380_v43  ;;  %v1386_v15 = vpop.xlane.xlu1 %1385 }
 0x3f8   : > { %v1415_v30 = vmul.f32 %v4309_v5, %v1386_v15 }
 0x3f9   : > { %v1532_v11 = vsub.f32 1.5, %v1531_v52  ;;  %v4446_v28 = vsub.f32 %v4355_v41, %v1412_v59  ;;  %v1357_v42 = vpop.f32.mrf.mxu2  ;;  %v1695_v41 = vmul.f32 %v4442_v2, %v1678_v25 }
 0x3fa   : > { %v4448_v20 = vpop.eup %3611  ;;  %v4452_v46 = vadd.f32 %v1357_v42, %v4225_v58  ;;  %v4466_v14 = vsub.f32 %v4358_v40, %v1415_v30 }
 0x3fb   : > { %v1533_v53 = vmul.f32 %v3610_v51, %v1532_v11  ;;  %v1539_v32 = vmul.f32 %v4448_v20, %v4437_v57  ;;  %v1444_v6 = vmul.f32 %v4446_v28, %v4446_v28  ;;  %v1712_v62 = vadd.f32 %v4459_v33, %v1695_v41 }
 0x3fc   : > { %1391 = vadd.xlane.f32.xlu2 %v4452_v46  ;;  %v1447_v40 = vmul.f32 %v4466_v14, %v4466_v14  ;;  %vm1545_vm11 = vweird.f32 %v4448_v20 }
 0x3fd   : > { %v1537_v0 = vsel %vm1536_vm10, %v3610_v51, %v1533_v53  ;;  %v1540_v45 = vmul.f32 %v4448_v20, %v1539_v32  ;;  %1466 = vadd.xlane.f32.xlu0 %v1444_v6  ;;  %v1728_v54 = vmax.f32 %v1712_v62, 0.0  ;;  %vm1546_vm13 = vmor %vm1544_vm12, %vm1545_vm11 }
 0x3fe   : > { %v1679_v37 = vmul.f32 %v1537_v0, %v4335_v8  ;;  %v1382_v61 = vpop.xlane.xlu0 %1381  ;;  %v1461_v1 = vpop.xlane.xlu2 %1460 }
 0x3ff   : > { %v1413_v7 = vmul.f32 %v4309_v5, %v1382_v61  ;;  %v1489_v31 = vmul.f32 %v1461_v1, %v4309_v5  ;;  %v1541_v38 = vmul.f32 0.5, %v1540_v45 }
 0x400   : > { %v1696_v55 = vmul.f32 %v4442_v2, %v1679_v37 }
 0x401   : > { %v4473_v22 = vsub.f32 %v4368_v4, %v1413_v7  ;;  %v1505_v39 = vadd.f32 1e-05, %v1489_v31  ;;  %v1359_v35 = vpop.f32.mrf.mxu2  ;;  %v1542_v16 = vsub.f32 1.5, %v1541_v38 }
 0x402   : > { %v4476_v8 = vadd.f32 %v1359_v35, %v4225_v58  ;;  %v1713_v36 = vadd.f32 %v4459_v33, %v1696_v55 }
 0x403   : > { %3613 = vrsqrt.f32 %v1505_v39  ;;  %v1445_v34 = vmul.f32 %v4473_v22, %v4473_v22  ;;  %v1543_v3 = vmul.f32 %v4448_v20, %v1542_v16  ;;  %vm1554_vm15 = vweird.f32 %v1505_v39 }
 0x404   : > { %1472 = vadd.xlane.f32.xlu2 %v1447_v40  ;;  %v1729_v60 = vmax.f32 %v1713_v36, 0.0 }
 0x405   : > { %1393 = vadd.xlane.f32.xlu0 %v4476_v8  ;;  %1468 = vadd.xlane.f32.xlu1 %v1445_v34  ;;  %v1547_v9 = vsel %vm1546_vm13, %v4448_v20, %v1543_v3 }
 0x406   : > { %v1384_v4 = vpop.xlane.xlu0 %1383  ;;  %v1463_v63 = vpop.xlane.xlu2 %1462  ;;  %v1761_v23 = vpack.c.bf16 %v1729_v60, %v1728_v54  ;;  %v1680_v57 = vmul.f32 %v1547_v9, %v4343_v18 }
 0x407   : > { %v1414_v24 = vmul.f32 %v4309_v5, %v1384_v4  ;;  %v1490_v26 = vmul.f32 %v1463_v63, %v4309_v5 }
 0x408   : > { %1864 = vmatmul.bf16.vlgmr.msrb.gmra.mxu1 %v1761_v23  ;;  %1913 = vmatmul.bf16.vlgmr.msrb.gmra.mxu2 %v1761_v23  ;;  %v1697_v30 = vmul.f32 %v4442_v2, %v1680_v57 }
 0x409   : > { %v3614_v21 = vpop.eup %3613  ;;  %v4489_v44 = vsub.f32 %v4378_v49, %v1414_v24  ;;  %v1506_v13 = vadd.f32 1e-05, %v1490_v26  ;;  %v1362_v19 = vpop.f32.mrf.mxu3 }
 0x40a   : > { %v1549_v29 = vmul.f32 %v3614_v21, %v1505_v39  ;;  %v4493_v48 = vadd.f32 %v1362_v19, %v4225_v58  ;;  %vm1555_vm14 = vweird.f32 %v3614_v21  ;;  %v1714_v0 = vadd.f32 %v4459_v33, %v1697_v30 }
 0x40b   : > { %3615 = vrsqrt.f32 %v1506_v13  ;;  %v1446_v51 = vmul.f32 %v4489_v44, %v4489_v44  ;;  %vm1556_vm1 = vmor %vm1554_vm15, %vm1555_vm14  ;;  %vm1564_vm3 = vweird.f32 %v1506_v13 }
 0x40c   : > { %v1550_v10 = vmul.f32 %v3614_v21, %v1549_v29  ;;  %v1730_v7 = vmax.f32 %v1714_v0, 0.0 }
 0x40d   : > { %1395 = vadd.xlane.f32.xlu0 %v4493_v48  ;;  %1470 = vadd.xlane.f32.xlu1 %v1446_v51 }
 0x40e   : > { %v1551_v49 = vmul.f32 0.5, %v1550_v10  ;;  %v1465_v17 = vpop.xlane.xlu0 %1464 }
 0x40f   : > { %v1491_v43 = vmul.f32 %v1465_v17, %v4309_v5 }
 0x410   : > { %v1552_v52 = vsub.f32 1.5, %v1551_v49 }
 0x411   : > { %v3616_v59 = vpop.eup %3615  ;;  %v1507_v15 = vadd.f32 1e-05, %v1491_v43  ;;  %v1364_v25 = vpop.f32.mrf.mxu3 }
 0x412   : > { %v1553_v11 = vmul.f32 %v3614_v21, %v1552_v52  ;;  %v1559_v42 = vmul.f32 %v3616_v59, %v1506_v13  ;;  %v4502_v20 = vadd.f32 %v1364_v25, %v4225_v58  ;;  %vm1565_vm2 = vweird.f32 %v3616_v59 }
 0x413   : > { %3617 = vrsqrt.f32 %v1507_v15  ;;  %vm1566_vm4 = vmor %vm1564_vm3, %vm1565_vm2  ;;  %vm1574_vm0 = vweird.f32 %v1507_v15 }
 0x414   : > { %v1557_v53 = vsel %vm1556_vm1, %v3614_v21, %v1553_v11  ;;  %v1560_v32 = vmul.f32 %v3616_v59, %v1559_v42 }
 0x415   : > { %1397 = vadd.xlane.f32.xlu1 %v4502_v20  ;;  %v1681_v18 = vmul.f32 %v1557_v53, %v4363_v27 }
 0x416   : > { %v1561_v6 = vmul.f32 0.5, %v1560_v32 }
 0x417   : > { %v1698_v41 = vmul.f32 %v4442_v2, %v1681_v18 }
 0x418   : > { %v1562_v45 = vsub.f32 1.5, %v1561_v6  ;;  %v4550_v6 = vld [vmem:[%s498_s22] sm:$0x77] }
 0x419   : > { %v3618_v37 = vpop.eup %3617  ;;  %v1715_v58 = vadd.f32 %v4459_v33, %v1698_v41 }
 0x41a   : > { %v1563_v61 = vmul.f32 %v3616_v59, %v1562_v45  ;;  %v1569_v1 = vmul.f32 %v3618_v37, %v1507_v15  ;;  %vm1575_vm5 = vweird.f32 %v3618_v37 }
 0x41b   : > { %v1731_v31 = vmax.f32 %v1715_v58, 0.0  ;;  %vm1576_vm6 = vmor %vm1574_vm0, %vm1575_vm5 }
 0x41c   : > { %v1567_v38 = vsel %vm1566_vm4, %v3616_v59, %v1563_v61  ;;  %v1570_v55 = vmul.f32 %v3618_v37, %v1569_v1 }
 0x41d   : > { %v1762_v62 = vpack.c.bf16 %v1731_v31, %v1730_v7  ;;  %v1682_v39 = vmul.f32 %v1567_v38, %v4374_v47  ;;  %v1770_v7 = vperm.slane %v4550_v6, 0 }
 0x41e   : > { %v1571_v27 = vmul.f32 0.5, %v1570_v55 }
 0x41f   : > { %1869 = vmatmul.bf16.gmra.mxu1 %v1762_v62  ;;  %1918 = vmatmul.bf16.gmra.mxu2 %v1762_v62  ;;  %v1699_v36 = vmul.f32 %v4442_v2, %v1682_v39  ;;  %v1771_v62 = vperm.slane %v4550_v6, 4 }
 0x420   : > { %v1572_v35 = vsub.f32 1.5, %v1571_v27 }
 0x421   : > { %v1716_v60 = vadd.f32 %v4459_v33, %v1699_v36 }
 0x422   : > { %v1573_v40 = vmul.f32 %v3618_v37, %v1572_v35 }
 0x423   : > { %v1732_v63 = vmax.f32 %v1716_v60, 0.0 }
 0x424   : > { %v1577_v34 = vsel %vm1576_vm6, %v3618_v37, %v1573_v40 }
 0x425   : > { %v1683_v16 = vmul.f32 %v1577_v34, %v4384_v50 }
 0x427   : > { %v1700_v54 = vmul.f32 %v4442_v2, %v1683_v16 }
 0x429   : > { %v1717_v4 = vadd.f32 %v4459_v33, %v1700_v54  ;;  %v4566_v54 = vperm.slane %v1770_v7, 0 }
 0x42b   : > { %v1733_v23 = vmax.f32 %v1717_v4, 0.0 }
 0x42d   : > { %v1763_v24 = vpack.c.bf16 %v1733_v23, %v1732_v63 }
 0x42f   : > { %1874 = vmatmul.bf16.gmra.mxu1 %v1763_v24  ;;  %1923 = vmatmul.bf16.gmra.mxu2 %v1763_v24 }
 0x437   : > { %v1388_v47 = vpop.xlane.xlu1 %1387 }
 0x438   : > { %v1416_v26 = vmul.f32 %v4309_v5, %v1388_v47 }
 0x43a   : > { %v4518_v3 = vsub.f32 %v4389_v12, %v1416_v26 }
 0x43c   : > { %v1448_v50 = vmul.f32 %v4518_v3, %v4518_v3 }
 0x43e   : > { %1474 = vadd.xlane.f32.xlu2 %v1448_v50 }
 0x43f   : > { %v1390_v21 = vpop.xlane.xlu2 %1389 }
 0x440   : > { %v1417_v13 = vmul.f32 %v4309_v5, %v1390_v21 }
 0x442   : > { %v4524_v19 = vsub.f32 %v4403_v56, %v1417_v13 }
 0x444   : > { %v1449_v29 = vmul.f32 %v4524_v19, %v4524_v19 }
 0x446   : > { %1476 = vadd.xlane.f32.xlu0 %v1449_v29 }
 0x46f   : > { %v1392_v51 = vpop.xlane.xlu2 %1391 }
 0x470   : > { %v1418_v9 = vmul.f32 %v4309_v5, %v1392_v51  ;;  %v1467_v12 = vpop.xlane.xlu0 %1466 }
 0x471   : > { %v1492_v10 = vmul.f32 %v1467_v12, %v4309_v5 }
 0x472   : > { %v4531_v49 = vsub.f32 %v4452_v46, %v1418_v9 }
 0x473   : > { %v1508_v17 = vadd.f32 1e-05, %v1492_v10 }
 0x474   : > { %v1450_v43 = vmul.f32 %v4531_v49, %v4531_v49 }
 0x475   : > { %3619 = vrsqrt.f32 %v1508_v17  ;;  %vm1584_vm8 = vweird.f32 %v1508_v17 }
 0x476   : > { %1478 = vadd.xlane.f32.xlu1 %v1450_v43 }
 0x477   : > { %v1473_v56 = vpop.xlane.xlu2 %1472 }
 0x478   : > { %v1495_v57 = vmul.f32 %v1473_v56, %v4309_v5  ;;  %v1394_v52 = vpop.xlane.xlu0 %1393  ;;  %v1469_v59 = vpop.xlane.xlu1 %1468 }
 0x479   : > { %v1419_v15 = vmul.f32 %v4309_v5, %v1394_v52  ;;  %v1493_v25 = vmul.f32 %v1469_v59, %v4309_v5 }
 0x47a   : > { %v4539_v11 = vadd.f32 1e-05, %v1495_v57 }
 0x47b   : > { %v3620_v46 = vpop.eup %3619  ;;  %v4542_v42 = vsub.f32 %v4476_v8, %v1419_v15  ;;  %v1509_v30 = vadd.f32 1e-05, %v1493_v25 }
 0x47c   : > { %v1579_v53 = vmul.f32 %v3620_v46, %v1508_v17  ;;  %3621 = vrsqrt.f32 %v4539_v11  ;;  %vm1585_vm7 = vweird.f32 %v3620_v46  ;;  %vm1614_vm15 = vweird.f32 %v4539_v11 }
 0x47d   : > { %3623 = vrsqrt.f32 %v1509_v30  ;;  %v1451_v32 = vmul.f32 %v4542_v42, %v4542_v42  ;;  %vm1586_vm9 = vmor %vm1584_vm8, %vm1585_vm7  ;;  %vm1594_vm11 = vweird.f32 %v1509_v30 }
 0x47e   : > { %v1580_v18 = vmul.f32 %v3620_v46, %v1579_v53 }
 0x47f   : > { %1480 = vadd.xlane.f32.xlu2 %v1451_v32 }
 0x480   : > { %v1581_v41 = vmul.f32 0.5, %v1580_v18  ;;  %v1396_v0 = vpop.xlane.xlu0 %1395  ;;  %v1471_v8 = vpop.xlane.xlu1 %1470 }
 0x481   : > { %v1420_v45 = vmul.f32 %v4309_v5, %v1396_v0  ;;  %v1494_v37 = vmul.f32 %v1471_v8, %v4309_v5 }
 0x482   : > { %v4554_v58 = vpop.eup %3621  ;;  %v1582_v61 = vsub.f32 1.5, %v1581_v41 }
 0x483   : > { %v3624_v1 = vpop.eup %3623  ;;  %v1609_v31 = vmul.f32 %v4554_v58, %v4539_v11  ;;  %v4560_v38 = vsub.f32 %v4493_v48, %v1420_v45  ;;  %v1510_v55 = vadd.f32 1e-05, %v1494_v37  ;;  %v4568_v48 = vperm.slane %v1771_v62, 0 }
 0x484   : > { %v1583_v27 = vmul.f32 %v3620_v46, %v1582_v61  ;;  %v1589_v39 = vmul.f32 %v3624_v1, %v1509_v30  ;;  %vm1595_vm10 = vweird.f32 %v3624_v1  ;;  %vm1615_vm13 = vweird.f32 %v4554_v58 }
 0x485   : > { %3625 = vrsqrt.f32 %v1510_v55  ;;  %v1452_v35 = vmul.f32 %v4560_v38, %v4560_v38  ;;  %v1610_v36 = vmul.f32 %v4554_v58, %v1609_v31  ;;  %v1865_v16 = vpop.f32.mrf.mxu1  ;;  %vm1596_vm12 = vmor %vm1594_vm11, %vm1595_vm10  ;;  %vm1604_vm2 = vweird.f32 %v1510_v55 }
 0x486   : > { %v1587_v40 = vsel %vm1586_vm9, %v3620_v46, %v1583_v27  ;;  %v1590_v34 = vmul.f32 %v3624_v1, %v1589_v39  ;;  %v4576_v51 = vadd.f32 %v1865_v16, %v4566_v54  ;;  %vm4593_vm1 = vmor %vm1614_vm15, %vm1615_vm13 }
 0x487   : > { %1482 = vadd.xlane.f32.xlu0 %v1452_v35  ;;  %v1684_v23 = vmul.f32 %v1587_v40, %v4446_v28  ;;  %v1611_v24 = vmul.f32 0.5, %v1610_v36 }
 0x488   : > { %v1591_v60 = vmul.f32 0.5, %v1590_v34  ;;  %v1398_v4 = vpop.xlane.xlu1 %1397 }
 0x489   : > { %v1421_v63 = vmul.f32 %v4309_v5, %v1398_v4  ;;  %v1701_v12 = vmul.f32 %v4442_v2, %v1684_v23  ;;  %v1612_v10 = vsub.f32 1.5, %v1611_v24 }
 0x48a   : > { %v1592_v47 = vsub.f32 1.5, %v1591_v60 }
 0x48b   : > { %v3626_v26 = vpop.eup %3625  ;;  %v4573_v50 = vsub.f32 %v4502_v20, %v1421_v63  ;;  %v1914_v21 = vpop.f32.mrf.mxu2  ;;  %v1718_v15 = vadd.f32 %v4459_v33, %v1701_v12  ;;  %v1613_v25 = vmul.f32 %v4554_v58, %v1612_v10 }
 0x48c   : > { %v1593_v13 = vmul.f32 %v3624_v1, %v1592_v47  ;;  %v1599_v29 = vmul.f32 %v3626_v26, %v1510_v55  ;;  %v4579_v9 = vadd.f32 %v1914_v21, %v4568_v48  ;;  %vm1605_vm14 = vweird.f32 %v3626_v26 }
 0x48d   : > { %v1453_v28 = vmul.f32 %v4573_v50, %v4573_v50  ;;  %v1867_v52 = vpop.f32.mrf.mxu1  ;;  %vm1606_vm3 = vmor %vm1604_vm2, %vm1605_vm14  ;;  %v1734_v0 = vmax.f32 %v1718_v15, 0.0  ;;  %v1617_v11 = vsel %vm4593_vm1, %v4554_v58, %v1613_v25 }
 0x48e   : > { %v1597_v17 = vsel %vm1596_vm12, %v3624_v1, %v1593_v13  ;;  %v1600_v43 = vmul.f32 %v3626_v26, %v1599_v29  ;;  %v1954_v20 = vadd.f32 %v4579_v9, %v4576_v51  ;;  %v4598_v18 = vadd.f32 %v1867_v52, %v4566_v54 }
 0x48f   : > { %1484 = vadd.xlane.f32.xlu1 %v1453_v28  ;;  %v1685_v56 = vmul.f32 %v1597_v17, %v4473_v22  ;;  %v1687_v7 = vmul.f32 %v1617_v11, %v4466_v14 }
 0x490   : > { %v1601_v57 = vmul.f32 0.5, %v1600_v43  ;;  %1955 = vadd.xlane.f32.xlu2 %v1954_v20 }
 0x491   : > { %v1702_v59 = vmul.f32 %v4442_v2, %v1685_v56  ;;  %v1704_v62 = vmul.f32 %v4442_v2, %v1687_v7 }
 0x492   : > { %v1602_v46 = vsub.f32 1.5, %v1601_v57 }
 0x493   : > { %v1916_v30 = vpop.f32.mrf.mxu2  ;;  %v1719_v53 = vadd.f32 %v4459_v33, %v1702_v59  ;;  %v1721_v58 = vadd.f32 %v4459_v33, %v1704_v62 }
 0x494   : > { %v1603_v32 = vmul.f32 %v3626_v26, %v1602_v46  ;;  %v4601_v41 = vadd.f32 %v1916_v30, %v4568_v48 }
 0x495   : > { %v1735_v8 = vmax.f32 %v1719_v53, 0.0  ;;  %v1737_v34 = vmax.f32 %v1721_v58, 0.0 }
 0x496   : > { %v1607_v45 = vsel %vm1606_vm3, %v3626_v26, %v1603_v32  ;;  %v1957_v37 = vadd.f32 %v4601_v41, %v4598_v18 }
 0x497   : > { %v1764_v61 = vpack.c.bf16 %v1735_v8, %v1734_v0  ;;  %v1686_v1 = vmul.f32 %v1607_v45, %v4489_v44 }
 0x498   : > { %1958 = vadd.xlane.f32.xlu0 %v1957_v37 }
 0x499   : > { %1879 = vmatmul.bf16.gmra.mxu1 %v1764_v61  ;;  %1928 = vmatmul.bf16.gmra.mxu2 %v1764_v61  ;;  %v1703_v31 = vmul.f32 %v4442_v2, %v1686_v1 }
 0x49b   : > { %v1720_v27 = vadd.f32 %v4459_v33, %v1703_v31 }
 0x49c   : > { %v1870_v55 = vpop.f32.mrf.mxu1 }
 0x49d   : > { %v4615_v35 = vadd.f32 %v1870_v55, %v4566_v54  ;;  %v1736_v40 = vmax.f32 %v1720_v27, 0.0 }
 0x49f   : > { %v1765_v16 = vpack.c.bf16 %v1737_v34, %v1736_v40 }
 0x4a2   : > { %v1919_v39 = vpop.f32.mrf.mxu2 }
 0x4a3   : > { %v4618_v44 = vadd.f32 %v1919_v39, %v4568_v48 }
 0x4a4   : > { %v1872_v36 = vpop.f32.mrf.mxu1 }
 0x4a5   : > { %v1960_v14 = vadd.f32 %v4618_v44, %v4615_v35  ;;  %v4623_v4 = vadd.f32 %v1872_v36, %v4566_v54 }
 0x4a7   : > { %1961 = vadd.xlane.f32.xlu1 %v1960_v14 }
 0x4a9   : > { %1884 = vmatmul.bf16.gmra.mxu1 %v1765_v16  ;;  %1933 = vmatmul.bf16.gmra.mxu2 %v1765_v16 }
 0x4aa   : > { %v1921_v60 = vpop.f32.mrf.mxu2 }
 0x4ab   : > { %v4626_v63 = vadd.f32 %v1921_v60, %v4568_v48 }
 0x4ac   : > { %v1875_v24 = vpop.f32.mrf.mxu1 }
 0x4ad   : > { %v1963_v23 = vadd.f32 %v4626_v63, %v4623_v4  ;;  %v4632_v13 = vadd.f32 %v1875_v24, %v4566_v54 }
 0x4af   : > { %1964 = vadd.xlane.f32.xlu2 %v1963_v23 }
 0x4b1   : > { %v1475_v47 = vpop.xlane.xlu2 %1474 }
 0x4b2   : > { %v1496_v26 = vmul.f32 %v1475_v47, %v4309_v5  ;;  %v1924_v21 = vpop.f32.mrf.mxu2 }
 0x4b3   : > { %v4635_v29 = vadd.f32 %v1924_v21, %v4568_v48 }
 0x4b4   : > { %v1512_v28 = vadd.f32 1e-05, %v1496_v26  ;;  %v1877_v10 = vpop.f32.mrf.mxu1 }
 0x4b5   : > { %v1966_v12 = vadd.f32 %v4635_v29, %v4632_v13  ;;  %v4641_v56 = vadd.f32 %v1877_v10, %v4566_v54 }
 0x4b6   : > { %3627 = vrsqrt.f32 %v1512_v28  ;;  %vm1624_vm5 = vweird.f32 %v1512_v28 }
 0x4b7   : > { %1967 = vadd.xlane.f32.xlu0 %v1966_v12 }
 0x4b9   : > { %v1477_v17 = vpop.xlane.xlu0 %1476 }
 0x4ba   : > { %v1497_v43 = vmul.f32 %v1477_v17, %v4309_v5  ;;  %v1926_v20 = vpop.f32.mrf.mxu2 }
 0x4bb   : > { %v4644_v57 = vadd.f32 %v1926_v20, %v4568_v48 }
 0x4bc   : > { %v3628_v52 = vpop.eup %3627  ;;  %v1513_v59 = vadd.f32 1e-05, %v1497_v43 }
 0x4bd   : > { %v1619_v15 = vmul.f32 %v3628_v52, %v1512_v28  ;;  %v1969_v25 = vadd.f32 %v4644_v57, %v4641_v56  ;;  %vm1625_vm4 = vweird.f32 %v3628_v52 }
 0x4be   : > { %3629 = vrsqrt.f32 %v1513_v59  ;;  %vm1626_vm0 = vmor %vm1624_vm5, %vm1625_vm4  ;;  %vm1634_vm7 = vweird.f32 %v1513_v59 }
 0x4bf   : > { %v1620_v46 = vmul.f32 %v3628_v52, %v1619_v15  ;;  %1970 = vadd.xlane.f32.xlu1 %v1969_v25 }
 0x4c1   : > { %v1621_v30 = vmul.f32 0.5, %v1620_v46 }
 0x4c3   : > { %v1622_v53 = vsub.f32 1.5, %v1621_v30 }
 0x4c4   : > { %v3630_v22 = vpop.eup %3629 }
 0x4c5   : > { %v1623_v32 = vmul.f32 %v3628_v52, %v1622_v53  ;;  %v1629_v0 = vmul.f32 %v3630_v22, %v1513_v59  ;;  %vm1635_vm6 = vweird.f32 %v3630_v22 }
 0x4c6   : > { %vm1636_vm8 = vmor %vm1634_vm7, %vm1635_vm6 }
 0x4c7   : > { %v1627_v8 = vsel %vm1626_vm0, %v3628_v52, %v1623_v32  ;;  %v1630_v11 = vmul.f32 %v3630_v22, %v1629_v0 }
 0x4c8   : > { %v1688_v37 = vmul.f32 %v1627_v8, %v4518_v3  ;;  %v3734_v3 = vmov 256.0  }
 0x4c9   : > { %v1631_v45 = vmul.f32 0.5, %v1630_v11  ;;  %3631 = vrcp.f32 %v3734_v3 }
 0x4ca   : > { %v1705_v7 = vmul.f32 %v4442_v2, %v1688_v37 }
 0x4cb   : > { %v1632_v61 = vsub.f32 1.5, %v1631_v45 }
 0x4cc   : > { %v1722_v27 = vadd.f32 %v4459_v33, %v1705_v7 }
 0x4cd   : > { %v1633_v1 = vmul.f32 %v3630_v22, %v1632_v61 }
 0x4ce   : > { %v1738_v39 = vmax.f32 %v1722_v27, 0.0 }
 0x4cf   : > { %v1637_v31 = vsel %vm1636_vm8, %v3630_v22, %v1633_v1  ;;  %v3632_v60 = vpop.eup %3631 }
 0x4d0   : > { %v1689_v55 = vmul.f32 %v1637_v31, %v4524_v19  ;;  %v2003_v19 = vmul.f32 256.0, %v3632_v60  ;;  %vm2007_vm11 = vweird.f32 %v3632_v60 }
 0x4d2   : > { %v1706_v62 = vmul.f32 %v4442_v2, %v1689_v55  ;;  %v2004_v28 = vsub.f32 1.0, %v2003_v19 }
 0x4d4   : > { %v1723_v58 = vadd.f32 %v4459_v33, %v1706_v62  ;;  %v2005_v17 = vmul.f32 %v3632_v60, %v2004_v28 }
 0x4d6   : > { %v1739_v40 = vmax.f32 %v1723_v58, 0.0  ;;  %v2006_v46 = vadd.f32 %v3632_v60, %v2005_v17 }
 0x4d8   : > { %v1766_v36 = vpack.c.bf16 %v1739_v40, %v1738_v39  ;;  %v4657_v32 = vsel %vm2007_vm11, %v3632_v60, %v2006_v46 }
 0x4da   : > { %1889 = vmatmul.bf16.gmra.mxu1 %v1766_v36  ;;  %1938 = vmatmul.bf16.gmra.mxu2 %v1766_v36 }
 0x4e9   : > { %v1479_v14 = vpop.xlane.xlu1 %1478 }
 0x4ea   : > { %v1498_v34 = vmul.f32 %v1479_v14, %v4309_v5 }
 0x4ec   : > { %v1514_v16 = vadd.f32 1e-05, %v1498_v34 }
 0x4ee   : > { %3633 = vrsqrt.f32 %v1514_v16  ;;  %vm1644_vm10 = vweird.f32 %v1514_v16 }
 0x4f2   : > { %v1481_v23 = vpop.xlane.xlu2 %1480 }
 0x4f3   : > { %v1499_v24 = vmul.f32 %v1481_v23, %v4309_v5 }
 0x4f4   : > { %v3634_v47 = vpop.eup %3633 }
 0x4f5   : > { %v1639_v26 = vmul.f32 %v3634_v47, %v1514_v16  ;;  %v1515_v21 = vadd.f32 1e-05, %v1499_v24  ;;  %vm1645_vm9 = vweird.f32 %v3634_v47 }
 0x4f6   : > { %vm1646_vm12 = vmor %vm1644_vm10, %vm1645_vm9 }
 0x4f7   : > { %v1640_v12 = vmul.f32 %v3634_v47, %v1639_v26  ;;  %3635 = vrsqrt.f32 %v1515_v21  ;;  %vm1654_vm14 = vweird.f32 %v1515_v21 }
 0x4f9   : > { %v1641_v10 = vmul.f32 0.5, %v1640_v12 }
 0x4fa   : > { %v1483_v43 = vpop.xlane.xlu0 %1482 }
 0x4fb   : > { %v1642_v20 = vsub.f32 1.5, %v1641_v10  ;;  %v1500_v52 = vmul.f32 %v1483_v43, %v4309_v5 }
 0x4fd   : > { %v3636_v59 = vpop.eup %3635  ;;  %v1643_v15 = vmul.f32 %v3634_v47, %v1642_v20  ;;  %v1516_v25 = vadd.f32 1e-05, %v1500_v52 }
 0x4fe   : > { %v1649_v30 = vmul.f32 %v3636_v59, %v1515_v21  ;;  %vm1655_vm13 = vweird.f32 %v3636_v59 }
 0x4ff   : > { %3637 = vrsqrt.f32 %v1516_v25  ;;  %v1647_v53 = vsel %vm1646_vm12, %v3634_v47, %v1643_v15  ;;  %vm1656_vm15 = vmor %vm1654_vm14, %vm1655_vm13  ;;  %vm1664_vm2 = vweird.f32 %v1516_v25 }
 0x500   : > { %v1650_v22 = vmul.f32 %v3636_v59, %v1649_v30  ;;  %v1690_v37 = vmul.f32 %v1647_v53, %v4531_v49 }
 0x502   : > { %v1651_v0 = vmul.f32 0.5, %v1650_v22  ;;  %v1485_v8 = vpop.xlane.xlu1 %1484  ;;  %v1707_v39 = vmul.f32 %v4442_v2, %v1690_v37 }
 0x503   : > { %v1501_v11 = vmul.f32 %v1485_v8, %v4309_v5  ;;  %v1956_v45 = vpop.xlane.xlu2 %1955 }
 0x504   : > { %v1652_v61 = vsub.f32 1.5, %v1651_v0  ;;  %v2009_v1 = vmul.f32 %v4657_v32, %v1956_v45  ;;  %v1724_v60 = vadd.f32 %v4459_v33, %v1707_v39 }
 0x505   : > { %v3638_v7 = vpop.eup %3637  ;;  %v1517_v31 = vadd.f32 1e-05, %v1501_v11 }
 0x506   : > { %v1653_v55 = vmul.f32 %v3636_v59, %v1652_v61  ;;  %v1659_v62 = vmul.f32 %v3638_v7, %v1516_v25  ;;  %v4663_v27 = vsub.f32 %v4576_v51, %v2009_v1  ;;  %v4666_v58 = vsub.f32 %v4579_v9, %v2009_v1 }
 0x507   : > { %3639 = vrsqrt.f32 %v1517_v31  ;;  %vm1665_vm1 = vweird.f32 %v3638_v7  ;;  %v1740_v26 = vmax.f32 %v1724_v60, 0.0  ;;  %vm1674_vm5 = vweird.f32 %v1517_v31 }
 0x508   : > { %v1657_v49 = vsel %vm1656_vm15, %v3636_v59, %v1653_v55  ;;  %v1660_v40 = vmul.f32 %v3638_v7, %v1659_v62  ;;  %v2057_v36 = vmul.f32 %v4663_v27, %v4663_v27  ;;  %v2058_v3 = vmul.f32 %v4666_v58, %v4666_v58  ;;  %vm1666_vm3 = vmor %vm1664_vm2, %vm1665_vm1 }
 0x509   : > { %v1691_v14 = vmul.f32 %v1657_v49, %v4542_v42 }
 0x50a   : > { %v1661_v34 = vmul.f32 0.5, %v1660_v40  ;;  %v2089_v51 = vadd.f32 %v2058_v3, %v2057_v36 }
 0x50b   : > { %v1708_v16 = vmul.f32 %v4442_v2, %v1691_v14  ;;  %v1959_v59 = vpop.xlane.xlu0 %1958 }
 0x50c   : > { %v1662_v9 = vsub.f32 1.5, %v1661_v34  ;;  %2090 = vadd.xlane.f32.xlu1 %v2089_v51  ;;  %v2010_v30 = vmul.f32 %v4657_v32, %v1959_v59 }
 0x50d   : > { %v3640_v19 = vpop.eup %3639  ;;  %v1725_v23 = vadd.f32 %v4459_v33, %v1708_v16 }
 0x50e   : > { %v1663_v24 = vmul.f32 %v3638_v7, %v1662_v9  ;;  %v1669_v47 = vmul.f32 %v3640_v19, %v1517_v31  ;;  %vm1675_vm4 = vweird.f32 %v3640_v19  ;;  %v4691_v45 = vsub.f32 %v4598_v18, %v2010_v30 }
 0x50f   : > { %v1741_v21 = vmax.f32 %v1725_v23, 0.0  ;;  %vm1676_vm0 = vmor %vm1674_vm5, %vm1675_vm4 }
 0x510   : > { %v1667_v28 = vsel %vm1666_vm3, %v3638_v7, %v1663_v24  ;;  %v1670_v42 = vmul.f32 %v3640_v19, %v1669_v47 }
 0x511   : > { %v1767_v12 = vpack.c.bf16 %v1741_v21, %v1740_v26  ;;  %v1692_v17 = vmul.f32 %v1667_v28, %v4560_v38 }
 0x512   : > { %v1671_v10 = vmul.f32 0.5, %v1670_v42 }
 0x513   : > { %1894 = vmatmul.bf16.gmra.mxu1 %v1767_v12  ;;  %1943 = vmatmul.bf16.gmra.mxu2 %v1767_v12  ;;  %v1709_v15 = vmul.f32 %v4442_v2, %v1692_v17 }
 0x514   : > { %v1672_v43 = vsub.f32 1.5, %v1671_v10 }
 0x515   : > { %v1726_v22 = vadd.f32 %v4459_v33, %v1709_v15 }
 0x516   : > { %v1673_v20 = vmul.f32 %v3640_v19, %v1672_v43  ;;  %v1880_v52 = vpop.f32.mrf.mxu1 }
 0x517   : > { %v4684_v38 = vadd.f32 %v1880_v52, %v4566_v54  ;;  %v1742_v61 = vmax.f32 %v1726_v22, 0.0 }
 0x518   : > { %v1677_v25 = vsel %vm1676_vm0, %v3640_v19, %v1673_v20 }
 0x519   : > { %v1693_v46 = vmul.f32 %v1677_v25, %v4573_v50  ;;  %v4694_v50 = vsub.f32 %v4601_v41, %v2010_v30 }
 0x51a   : > { %v1962_v7 = vpop.xlane.xlu1 %1961 }
 0x51b   : > { %v1710_v53 = vmul.f32 %v4442_v2, %v1693_v46  ;;  %v2011_v55 = vmul.f32 %v4657_v32, %v1962_v7  ;;  %v2060_v18 = vmul.f32 %v4694_v50, %v4694_v50 }
 0x51c   : > { %v1929_v0 = vpop.f32.mrf.mxu2 }
 0x51d   : > { %v4687_v8 = vadd.f32 %v1929_v0, %v4568_v48  ;;  %v1727_v11 = vadd.f32 %v4459_v33, %v1710_v53  ;;  %v2059_v33 = vmul.f32 %v4691_v45, %v4691_v45  ;;  %v4710_v49 = vsub.f32 %v4615_v35, %v2011_v55 }
 0x51e   : > { %v1882_v37 = vpop.f32.mrf.mxu1  ;;  %v4713_v40 = vsub.f32 %v4618_v44, %v2011_v55 }
 0x51f   : > { %v1972_v2 = vadd.f32 %v4687_v8, %v4684_v38  ;;  %v1743_v1 = vmax.f32 %v1727_v11, 0.0  ;;  %v4704_v62 = vadd.f32 %v1882_v37, %v4566_v54  ;;  %v2092_v3 = vadd.f32 %v2060_v18, %v2059_v33  ;;  %v3491_v33 = vld [vmem:[%s4790_s25 + $0x38] sm:$0xff] }
 0x520   : > { %v2061_v16 = vmul.f32 %v4710_v49, %v4710_v49  ;;  %v2062_v35 = vmul.f32 %v4713_v40, %v4713_v40  ;;  %v3499_v18 = vld [vmem:[%s4790_s25 + $0x78] sm:$0xff]  ;;  %2615 = vmatpush.bf16.msrb.mxu3 %v3491_v33 }
 0x521   : > { %1973 = vadd.xlane.f32.xlu2 %v1972_v2  ;;  %v1768_v31 = vpack.c.bf16 %v1743_v1, %v1742_v61  ;;  %2664 = vmatpush.bf16.msrb.mxu0 %v3499_v18 }
 0x522   : > { %v1965_v14 = vpop.xlane.xlu2 %1964  ;;  %v2095_v47 = vadd.f32 %v2062_v35, %v2061_v16  ;;  %v3488_v35 = vld [vmem:[%s4790_s25 + $0x20] sm:$0xff] }
 0x523   : > { %1899 = vmatmul.bf16.gmra.mxu1 %v1768_v31  ;;  %1948 = vmatmul.bf16.gmra.mxu2 %v1768_v31  ;;  %v2012_v51 = vmul.f32 %v4657_v32, %v1965_v14 }
 0x524   : > { %v1931_v41 = vpop.f32.mrf.mxu2 }
 0x525   : > { %v4707_v39 = vadd.f32 %v1931_v41, %v4568_v48  ;;  %v4729_v19 = vsub.f32 %v4623_v4, %v2012_v51  ;;  %v4732_v23 = vsub.f32 %v4626_v63, %v2012_v51  ;;  %v3497_v51 = vld [vmem:[%s4790_s25 + $0x68] sm:$0xff] }
 0x526   : > { %v1885_v34 = vpop.f32.mrf.mxu1 }
 0x527   : > { %v1975_v36 = vadd.f32 %v4707_v39, %v4704_v62  ;;  %v4723_v44 = vadd.f32 %v1885_v34, %v4566_v54  ;;  %v2063_v42 = vmul.f32 %v4729_v19, %v4729_v19  ;;  %v2064_v4 = vmul.f32 %v4732_v23, %v4732_v23  ;;  %v3489_v34 = vld [vmem:[%s4790_s25 + $0x28] sm:$0xff] }
 0x529   : > { %1976 = vadd.xlane.f32.xlu0 %v1975_v36  ;;  %2093 = vadd.xlane.f32.xlu2 %v2092_v3  ;;  %v2098_v20 = vadd.f32 %v2064_v4, %v2063_v42  ;;  %v3490_v36 = vld [vmem:[%s4790_s25 + $0x30] sm:$0xff] }
 0x52a   : > { %v1968_v26 = vpop.xlane.xlu0 %1967  ;;  %v3498_v3 = vld [vmem:[%s4790_s25 + $0x70] sm:$0xff]  ;;  %2616 = vmatpush.bf16.msrb.mxu3 %v3490_v36 }
 0x52b   : > { %v2013_v28 = vmul.f32 %v4657_v32, %v1968_v26  ;;  %2665 = vmatpush.bf16.msrb.mxu0 %v3498_v3 }
 0x52c   : > { %v1934_v60 = vpop.f32.mrf.mxu2 }
 0x52d   : > { %v4726_v9 = vadd.f32 %v1934_v60, %v4568_v48  ;;  %v4748_v17 = vsub.f32 %v4632_v13, %v2013_v28  ;;  %v4751_v43 = vsub.f32 %v4635_v29, %v2013_v28  ;;  %v3496_v60 = vld [vmem:[%s4790_s25 + $0x60] sm:$0xff]  ;;  %v3494_v28 = vld [vmem:[%s4790_s25 + $0x50] sm:$0xff] }
 0x52e   : > { %v1887_v21 = vpop.f32.mrf.mxu1  ;;  %2617 = vmatpush.bf16.msrb.mxu3 %v3489_v34 }
 0x52f   : > { %v1978_v24 = vadd.f32 %v4726_v9, %v4723_v44  ;;  %v4742_v63 = vadd.f32 %v1887_v21, %v4566_v54  ;;  %v2065_v59 = vmul.f32 %v4748_v17, %v4748_v17  ;;  %v2066_v15 = vmul.f32 %v4751_v43, %v4751_v43  ;;  %2666 = vmatpush.bf16.msrb.mxu0 %v3497_v51  ;;  %v3486_v21 = vld [vmem:[%s4790_s25 + $0x10] sm:$0xff] }
 0x531   : > { %1979 = vadd.xlane.f32.xlu0 %v1978_v24  ;;  %2096 = vadd.xlane.f32.xlu2 %v2095_v47  ;;  %v2101_v25 = vadd.f32 %v2066_v15, %v2065_v59  ;;  %v3487_v24 = vld [vmem:[%s4790_s25 + $0x18] sm:$0xff]  ;;  %v3493_v59 = vld [vmem:[%s4790_s25 + $0x48] sm:$0xff] }
 0x532   : > { %v1971_v46 = vpop.xlane.xlu1 %1970  ;;  %2618 = vmatpush.bf16.msrb.mxu3 %v3488_v35  ;;  %v3495_v47 = vld [vmem:[%s4790_s25 + $0x58] sm:$0xff] }
 0x533   : > { %v2014_v30 = vmul.f32 %v4657_v32, %v1971_v46  ;;  %2667 = vmatpush.bf16.msrb.mxu0 %v3496_v60 }
 0x534   : > { %v1936_v12 = vpop.f32.mrf.mxu2 }
 0x535   : > { %v4745_v10 = vadd.f32 %v1936_v12, %v4568_v48  ;;  %v4767_v0 = vsub.f32 %v4641_v56, %v2014_v30  ;;  %v4770_v11 = vsub.f32 %v4644_v57, %v2014_v30 }
 0x536   : > { %2619 = vmatpush.bf16.msrb.mxu3 %v3487_v24 }
 0x537   : > { %v1981_v52 = vadd.f32 %v4745_v10, %v4742_v63  ;;  %v2067_v61 = vmul.f32 %v4767_v0, %v4767_v0  ;;  %v2068_v1 = vmul.f32 %v4770_v11, %v4770_v11  ;;  %2668 = vmatpush.bf16.msrb.mxu0 %v3495_v47 }
 0x539   : > { %2099 = vadd.xlane.f32.xlu0 %v2098_v20  ;;  %1982 = vadd.xlane.f32.xlu1 %v1981_v52  ;;  %v2104_v55 = vadd.f32 %v2068_v1, %v2067_v61  ;;  %v3485_v52 = vld [vmem:[%s4790_s25 + $0x8] sm:$0xff]  ;;  %v3484_v61 = vld [vmem:[%s4790_s25] sm:$0xff] }
 0x53a   : > { %2620 = vmatpush.bf16.msrb.mxu3 %v3486_v21 }
 0x53b   : > { %2669 = vmatpush.bf16.msrb.mxu0 %v3494_v28 }
 0x53e   : > { %2621 = vmatpush.bf16.msrb.mxu3 %v3485_v52  ;;  %v2361_v52 = vperm.slane %v4550_v6, 1 }
 0x53f   : > { %2670 = vmatpush.bf16.msrb.mxu0 %v3493_v59 }
 0x541   : > { %2102 = vadd.xlane.f32.xlu0 %v2101_v25 }
 0x542   : > { %2622 = vmatpush.bf16.msrb.mxu3 %v3484_v61 }
 0x557   : > { %v1890_v13 = vpop.f32.mrf.mxu1 }
 0x558   : > { %v4761_v53 = vadd.f32 %v1890_v13, %v4566_v54 }
 0x55d   : > { %v1939_v29 = vpop.f32.mrf.mxu2 }
 0x55e   : > { %v4764_v22 = vadd.f32 %v1939_v29, %v4568_v48 }
 0x55f   : > { %v1892_v2 = vpop.f32.mrf.mxu1 }
 0x560   : > { %v1984_v37 = vadd.f32 %v4764_v22, %v4761_v53  ;;  %v4779_v31 = vadd.f32 %v1892_v2, %v4566_v54 }
 0x562   : > { %1985 = vadd.xlane.f32.xlu1 %v1984_v37 }
 0x565   : > { %v1941_v7 = vpop.f32.mrf.mxu2 }
 0x566   : > { %v4782_v56 = vadd.f32 %v1941_v7, %v4568_v48 }
 0x568   : > { %v1987_v57 = vadd.f32 %v4782_v56, %v4779_v31 }
 0x56a   : > { %1988 = vadd.xlane.f32.xlu2 %v1987_v57  ;;  %2105 = vadd.xlane.f32.xlu1 %v2104_v55 }
 0x57f   : > { %v2091_v41 = vpop.xlane.xlu1 %2090 }
 0x580   : > { %v2137_v14 = vmul.f32 %v2091_v41, %v4657_v32 }
 0x582   : > { %v4799_v16 = vadd.f32 1e-05, %v2137_v14 }
 0x584   : > { %3641 = vrsqrt.f32 %v4799_v16  ;;  %vm2175_vm7 = vweird.f32 %v4799_v16 }
 0x58a   : > { %v4808_v42 = vpop.eup %3641 }
 0x58b   : > { %v2170_v12 = vmul.f32 %v4808_v42, %v4799_v16  ;;  %vm2176_vm6 = vweird.f32 %v4808_v42 }
 0x58c   : > { %vm2177_vm8 = vmor %vm2175_vm7, %vm2176_vm6 }
 0x58d   : > { %v2171_v37 = vmul.f32 %v4808_v42, %v2170_v12 }
 0x58f   : > { %v2172_v33 = vmul.f32 0.5, %v2171_v37 }
 0x590   : > { %v1895_v26 = vpop.f32.mrf.mxu1 }
 0x591   : > { %v4822_v13 = vadd.f32 %v1895_v26, %v4566_v54  ;;  %v2173_v60 = vsub.f32 1.5, %v2172_v33 }
 0x594   : > { %v1974_v4 = vpop.xlane.xlu2 %1973 }
 0x595   : > { %v2015_v20 = vmul.f32 %v4657_v32, %v1974_v4  ;;  %v2174_v4 = vmul.f32 %v4808_v42, %v2173_v60 }
 0x596   : > { %v1944_v15 = vpop.f32.mrf.mxu2 }
 0x597   : > { %v4816_v25 = vsub.f32 %v4684_v38, %v2015_v20  ;;  %v4819_v46 = vsub.f32 %v4687_v8, %v2015_v20  ;;  %v4825_v30 = vadd.f32 %v1944_v15, %v4568_v48  ;;  %v3492_v8 = vld [vmem:[%s4790_s25 + $0x40] sm:$0xff] }
 0x598   : > { %v1897_v29 = vpop.f32.mrf.mxu1  ;;  %2671 = vmatpush.bf16.msrb.mxu0 %v3492_v8  ;;  %v2362_v8 = vperm.slane %v4550_v6, 5 }
 0x599   : > { %v2069_v2 = vmul.f32 %v4816_v25, %v4816_v25  ;;  %v2070_v38 = vmul.f32 %v4819_v46, %v4819_v46  ;;  %v1990_v1 = vadd.f32 %v4825_v30, %v4822_v13  ;;  %v4839_v36 = vadd.f32 %v1897_v29, %v4566_v54 }
 0x59b   : > { %v2107_v7 = vadd.f32 %v2070_v38, %v2069_v2  ;;  %1991 = vadd.xlane.f32.xlu2 %v1990_v1  ;;  %v2399_v1 = vperm.slane %v4550_v6, 2 }
 0x59c   : > { %v1977_v57 = vpop.xlane.xlu0 %1976  ;;  %v2094_v55 = vpop.xlane.xlu2 %2093 }
 0x59d   : > { %v2016_v18 = vmul.f32 %v4657_v32, %v1977_v57  ;;  %v2138_v41 = vmul.f32 %v2094_v55, %v4657_v32  ;;  %2108 = vadd.xlane.f32.xlu1 %v2107_v7  ;;  %v2178_v7 = vsel %vm2177_vm8, %v4808_v42, %v2174_v4 }
 0x59e   : > { %v1946_v3 = vpop.f32.mrf.mxu2  ;;  %v2329_v42 = vmul.f32 %v2178_v7, %v4663_v27 }
 0x59f   : > { %v4842_v14 = vsub.f32 %v4704_v62, %v2016_v18  ;;  %v4845_v34 = vsub.f32 %v4707_v39, %v2016_v18  ;;  %v4847_v51 = vadd.f32 1e-05, %v2138_v41  ;;  %v4850_v35 = vadd.f32 %v1946_v3, %v4568_v48 }
 0x5a0   : > { %v1900_v24 = vpop.f32.mrf.mxu1  ;;  %v4891_v18 = vperm.slane %v2361_v52, 1  ;;  %v4893_v3 = vperm.slane %v2362_v8, 1 }
 0x5a1   : > { %3643 = vrsqrt.f32 %v4847_v51  ;;  %v1993_v47 = vadd.f32 %v4850_v35, %v4839_v36  ;;  %v2071_v26 = vmul.f32 %v4842_v14, %v4842_v14  ;;  %v2072_v62 = vmul.f32 %v4845_v34, %v4845_v34 }
 0x5a2   : > { %v4866_v59 = vadd.f32 %v1900_v24, %v4566_v54  ;;  %vm2185_vm10 = vweird.f32 %v4847_v51 }
 0x5a3   : > { %1994 = vadd.xlane.f32.xlu0 %v1993_v47  ;;  %v2110_v28 = vadd.f32 %v2072_v62, %v2071_v26  ;;  %v2330_v62 = vmul.f32 %v2178_v7, %v4666_v58 }
 0x5a4   : > { %v1980_v39 = vpop.xlane.xlu0 %1979  ;;  %v2097_v21 = vpop.xlane.xlu2 %2096 }
 0x5a5   : > { %v2017_v12 = vmul.f32 %v4657_v32, %v1980_v39  ;;  %v2139_v20 = vmul.f32 %v2097_v21, %v4657_v32  ;;  %2111 = vadd.xlane.f32.xlu2 %v2110_v28 }
 0x5a6   : > { %v1949_v15 = vpop.f32.mrf.mxu2 }
 0x5a7   : > { %v3644_v29 = vpop.eup %3643  ;;  %v4869_v37 = vsub.f32 %v4723_v44, %v2017_v12  ;;  %v4872_v2 = vsub.f32 %v4726_v9, %v2017_v12  ;;  %v4874_v38 = vadd.f32 1e-05, %v2139_v20  ;;  %v4877_v61 = vadd.f32 %v1949_v15, %v4568_v48 }
 0x5a8   : > { %v2180_v16 = vmul.f32 %v3644_v29, %v4847_v51  ;;  %v2400_v9 = vperm.slane %v4550_v6, 6  ;;  %v1902_v41 = vpop.f32.mrf.mxu1  ;;  %v4896_v6 = vperm.slane %v2399_v1, 2  ;;  %vm2186_vm9 = vweird.f32 %v3644_v29 }
 0x5a9   : > { %3645 = vrsqrt.f32 %v4874_v38  ;;  %v1996_v44 = vadd.f32 %v4877_v61, %v4866_v59  ;;  %v2073_v55 = vmul.f32 %v4869_v37, %v4869_v37  ;;  %v2074_v33 = vmul.f32 %v4872_v2, %v4872_v2  ;;  %vm2187_vm11 = vmor %vm2185_vm10, %vm2186_vm9 }
 0x5aa   : > { %v2181_v57 = vmul.f32 %v3644_v29, %v2180_v16  ;;  %v4901_v28 = vperm.slane %v2400_v9, 2  ;;  %v4904_v12 = vadd.f32 %v1902_v41, %v4566_v54  ;;  %v2367_v54 = vmul.f32 %v4891_v18, %v2329_v42 }
 0x5ab   : > { %1997 = vadd.xlane.f32.xlu0 %v1996_v44  ;;  %v2113_v26 = vadd.f32 %v2074_v33, %v2073_v55  ;;  %vm2195_vm13 = vweird.f32 %v4874_v38 }
 0x5ac   : > { %v2182_v60 = vmul.f32 0.5, %v2181_v57  ;;  %v2100_v24 = vpop.xlane.xlu0 %2099  ;;  %v1983_v47 = vpop.xlane.xlu1 %1982  ;;  %v2405_v42 = vadd.f32 %v4896_v6, %v2367_v54 }
 0x5ad   : > { %v2140_v39 = vmul.f32 %v2100_v24, %v4657_v32  ;;  %v2018_v21 = vmul.f32 %v4657_v32, %v1983_v47  ;;  %2114 = vadd.xlane.f32.xlu2 %v2113_v26 }
 0x5ae   : > { %v2183_v4 = vsub.f32 1.5, %v2182_v60  ;;  %v1951_v27 = vpop.f32.mrf.mxu2 }
 0x5af   : > { %v3646_v20 = vpop.eup %3645  ;;  %v2156_v52 = vadd.f32 1e-05, %v2140_v39  ;;  %v4907_v15 = vsub.f32 %v4742_v63, %v2018_v21  ;;  %v4910_v58 = vsub.f32 %v4745_v10, %v2018_v21  ;;  %v4913_v8 = vadd.f32 %v1951_v27, %v4568_v48 }
 0x5b0   : > { %v2184_v16 = vmul.f32 %v3644_v29, %v2183_v4  ;;  %v2190_v1 = vmul.f32 %v3646_v20, %v4874_v38  ;;  %v2368_v10 = vmul.f32 %v4893_v3, %v2330_v62  ;;  %vm2196_vm12 = vweird.f32 %v3646_v20 }
 0x5b1   : > { %3647 = vrsqrt.f32 %v2156_v52  ;;  %v1999_v7 = vadd.f32 %v4913_v8, %v4904_v12  ;;  %v2075_v63 = vmul.f32 %v4907_v15, %v4907_v15  ;;  %v2076_v9 = vmul.f32 %v4910_v58, %v4910_v58  ;;  %vm2197_vm14 = vmor %vm2195_vm13, %vm2196_vm12 }
 0x5b2   : > { %v2188_v44 = vsel %vm2187_vm11, %v3644_v29, %v2184_v16  ;;  %v2191_v48 = vmul.f32 %v3646_v20, %v2190_v1  ;;  %v2406_v24 = vadd.f32 %v4901_v28, %v2368_v10  ;;  %v2437_v39 = vmax.f32 %v2405_v42, 0.0 }
 0x5b3   : > { %v2331_v51 = vmul.f32 %v2188_v44, %v4691_v45  ;;  %v2332_v57 = vmul.f32 %v2188_v44, %v4694_v50  ;;  %2000 = vadd.xlane.f32.xlu1 %v1999_v7  ;;  %v2116_v33 = vadd.f32 %v2076_v9, %v2075_v63  ;;  %vm2205_vm1 = vweird.f32 %v2156_v52 }
 0x5b4   : > { %v2192_v55 = vmul.f32 0.5, %v2191_v48  ;;  %v2438_v4 = vmax.f32 %v2406_v24, 0.0 }
 0x5b5   : > { %v2369_v41 = vmul.f32 %v4891_v18, %v2331_v51  ;;  %v2370_v60 = vmul.f32 %v4893_v3, %v2332_v57  ;;  %2117 = vadd.xlane.f32.xlu0 %v2116_v33  ;;  %v2103_v57 = vpop.xlane.xlu0 %2102 }
 0x5b6   : > { %v2193_v29 = vsub.f32 1.5, %v2192_v55 }
 0x5b7   : > { %v3648_v47 = vpop.eup %3647  ;;  %v2407_v26 = vadd.f32 %v4896_v6, %v2369_v41  ;;  %v2408_v45 = vadd.f32 %v4901_v28, %v2370_v60 }
 0x5b8   : > { %v2194_v50 = vmul.f32 %v3646_v20, %v2193_v29  ;;  %v2200_v62 = vmul.f32 %v3648_v47, %v2156_v52  ;;  %vm2206_vm15 = vweird.f32 %v3648_v47  ;;  %v2141_v52 = vmul.f32 %v2103_v57, %v4657_v32 }
 0x5b9   : > { %v2439_v21 = vmax.f32 %v2407_v26, 0.0  ;;  %v2440_v27 = vmax.f32 %v2408_v45, 0.0  ;;  %vm2207_vm2 = vmor %vm2205_vm1, %vm2206_vm15 }
 0x5ba   : > { %v2198_v16 = vsel %vm2197_vm14, %v3646_v20, %v2194_v50  ;;  %v2201_v1 = vmul.f32 %v3648_v47, %v2200_v62  ;;  %v2157_v45 = vadd.f32 1e-05, %v2141_v52 }
 0x5bb   : > { %v2502_v54 = vpack.c.bf16 %v2439_v21, %v2437_v39  ;;  %v2503_v7 = vpack.c.bf16 %v2440_v27, %v2438_v4  ;;  %v2333_v10 = vmul.f32 %v2198_v16, %v4710_v49  ;;  %v2334_v44 = vmul.f32 %v2198_v16, %v4713_v40 }
 0x5bc   : > { %v2202_v63 = vmul.f32 0.5, %v2201_v1  ;;  %3649 = vrsqrt.f32 %v2157_v45  ;;  %vm2215_vm4 = vweird.f32 %v2157_v45 }
 0x5bd   : > { %2623 = vmatmul.bf16.vlgmr.msrb.gmra.mxu3 %v2502_v54  ;;  %2672 = vmatmul.bf16.vlgmr.msrb.gmra.mxu0 %v2503_v7  ;;  %v2371_v9 = vmul.f32 %v4891_v18, %v2333_v10  ;;  %v2372_v51 = vmul.f32 %v4893_v3, %v2334_v44 }
 0x5be   : > { %v2203_v48 = vsub.f32 1.5, %v2202_v63 }
 0x5bf   : > { %v2409_v49 = vadd.f32 %v4896_v6, %v2371_v9  ;;  %v2410_v42 = vadd.f32 %v4901_v28, %v2372_v51 }
 0x5c0   : > { %v2204_v38 = vmul.f32 %v3648_v47, %v2203_v48 }
 0x5c1   : > { %v2441_v29 = vmax.f32 %v2409_v49, 0.0  ;;  %v2442_v26 = vmax.f32 %v2410_v42, 0.0 }
 0x5c2   : > { %v2208_v20 = vsel %vm2207_vm2, %v3648_v47, %v2204_v38  ;;  %v3650_v62 = vpop.eup %3649 }
 0x5c3   : > { %v2335_v55 = vmul.f32 %v2208_v20, %v4729_v19  ;;  %v2336_v33 = vmul.f32 %v2208_v20, %v4732_v23  ;;  %v2210_v4 = vmul.f32 %v3650_v62, %v2157_v45  ;;  %vm2216_vm3 = vweird.f32 %v3650_v62 }
 0x5c4   : > { %vm2217_vm5 = vmor %vm2215_vm4, %vm2216_vm3 }
 0x5c5   : > { %v2373_v41 = vmul.f32 %v4891_v18, %v2335_v55  ;;  %v2374_v40 = vmul.f32 %v4893_v3, %v2336_v33  ;;  %v2211_v7 = vmul.f32 %v3650_v62, %v2210_v4 }
 0x5c7   : > { %v2411_v60 = vadd.f32 %v4896_v6, %v2373_v41  ;;  %v2412_v24 = vadd.f32 %v4901_v28, %v2374_v40 }
 0x5c9   : > { %v2443_v47 = vmax.f32 %v2411_v60, 0.0  ;;  %v2444_v19 = vmax.f32 %v2412_v24, 0.0 }
 0x5cb   : > { %v2504_v23 = vpack.c.bf16 %v2443_v47, %v2441_v29  ;;  %v2505_v50 = vpack.c.bf16 %v2444_v19, %v2442_v26 }
 0x5cd   : > { %2628 = vmatmul.bf16.gmra.mxu3 %v2504_v23  ;;  %2677 = vmatmul.bf16.gmra.mxu0 %v2505_v50 }
 0x5d5   : > { %v1986_v39 = vpop.xlane.xlu1 %1985 }
 0x5d6   : > { %v2019_v21 = vmul.f32 %v4657_v32, %v1986_v39 }
 0x5d8   : > { %v4949_v27 = vsub.f32 %v4761_v53, %v2019_v21  ;;  %v4952_v16 = vsub.f32 %v4764_v22, %v2019_v21  ;;  %v2212_v53 = vmul.f32 0.5, %v2211_v7 }
 0x5da   : > { %v2077_v1 = vmul.f32 %v4949_v27, %v4949_v27  ;;  %v2078_v54 = vmul.f32 %v4952_v16, %v4952_v16  ;;  %v2213_v55 = vsub.f32 1.5, %v2212_v53 }
 0x5dc   : > { %v2119_v63 = vadd.f32 %v2078_v54, %v2077_v1  ;;  %v2214_v41 = vmul.f32 %v3650_v62, %v2213_v55 }
 0x5dd   : > { %v1989_v10 = vpop.xlane.xlu2 %1988  ;;  %v2106_v44 = vpop.xlane.xlu1 %2105 }
 0x5de   : > { %v2020_v48 = vmul.f32 %v4657_v32, %v1989_v10  ;;  %v2142_v38 = vmul.f32 %v2106_v44, %v4657_v32  ;;  %2120 = vadd.xlane.f32.xlu1 %v2119_v63  ;;  %v2218_v40 = vsel %vm2217_vm5, %v3650_v62, %v2214_v41 }
 0x5df   : > { %v2337_v52 = vmul.f32 %v2218_v40, %v4748_v17  ;;  %v2338_v60 = vmul.f32 %v2218_v40, %v4751_v43 }
 0x5e0   : > { %v4961_v9 = vsub.f32 %v4779_v31, %v2020_v48  ;;  %v4964_v22 = vsub.f32 %v4782_v56, %v2020_v48  ;;  %v2158_v51 = vadd.f32 1e-05, %v2142_v38 }
 0x5e1   : > { %v2375_v47 = vmul.f32 %v4891_v18, %v2337_v52  ;;  %v2376_v26 = vmul.f32 %v4893_v3, %v2338_v60 }
 0x5e2   : > { %3651 = vrsqrt.f32 %v2158_v51  ;;  %v2079_v20 = vmul.f32 %v4961_v9, %v4961_v9  ;;  %v2080_v57 = vmul.f32 %v4964_v22, %v4964_v22  ;;  %vm2225_vm6 = vweird.f32 %v2158_v51 }
 0x5e3   : > { %v2413_v17 = vadd.f32 %v4896_v6, %v2375_v47  ;;  %v2414_v62 = vadd.f32 %v4901_v28, %v2376_v26 }
 0x5e4   : > { %v2122_v33 = vadd.f32 %v2080_v57, %v2079_v20 }
 0x5e5   : > { %v2445_v4 = vmax.f32 %v2413_v17, 0.0  ;;  %v2446_v54 = vmax.f32 %v2414_v62, 0.0 }
 0x5e6   : > { %2123 = vadd.xlane.f32.xlu2 %v2122_v33 }
 0x5e8   : > { %v3652_v49 = vpop.eup %3651 }
 0x5e9   : > { %v2220_v31 = vmul.f32 %v3652_v49, %v2158_v51  ;;  %vm2226_vm0 = vweird.f32 %v3652_v49 }
 0x5ea   : > { %vm2227_vm7 = vmor %vm2225_vm6, %vm2226_vm0 }
 0x5eb   : > { %v2221_v56 = vmul.f32 %v3652_v49, %v2220_v31 }
 0x5ed   : > { %v2222_v42 = vmul.f32 0.5, %v2221_v56 }
 0x5ef   : > { %v2223_v24 = vsub.f32 1.5, %v2222_v42 }
 0x5f1   : > { %v2224_v29 = vmul.f32 %v3652_v49, %v2223_v24 }
 0x5f3   : > { %v2228_v19 = vsel %vm2227_vm7, %v3652_v49, %v2224_v29 }
 0x5f4   : > { %v2339_v45 = vmul.f32 %v2228_v19, %v4767_v0  ;;  %v2340_v23 = vmul.f32 %v2228_v19, %v4770_v11 }
 0x5f6   : > { %v2377_v50 = vmul.f32 %v4891_v18, %v2339_v45  ;;  %v2378_v43 = vmul.f32 %v4893_v3, %v2340_v23 }
 0x5f8   : > { %v2415_v39 = vadd.f32 %v4896_v6, %v2377_v50  ;;  %v2416_v21 = vadd.f32 %v4901_v28, %v2378_v43 }
 0x5fa   : > { %v2447_v1 = vmax.f32 %v2415_v39, 0.0  ;;  %v2448_v7 = vmax.f32 %v2416_v21, 0.0 }
 0x5fc   : > { %v2506_v63 = vpack.c.bf16 %v2447_v1, %v2445_v4  ;;  %v2507_v0 = vpack.c.bf16 %v2448_v7, %v2446_v54 }
 0x5fe   : > { %2633 = vmatmul.bf16.gmra.mxu3 %v2506_v63  ;;  %2682 = vmatmul.bf16.gmra.mxu0 %v2507_v0 }
 0x60e   : > { %v1992_v11 = vpop.xlane.xlu2 %1991 }
 0x60f   : > { %v2021_v10 = vmul.f32 %v4657_v32, %v1992_v11 }
 0x610   : > { %v2109_v44 = vpop.xlane.xlu1 %2108 }
 0x611   : > { %v2143_v48 = vmul.f32 %v2109_v44, %v4657_v32  ;;  %v4985_v38 = vsub.f32 %v4822_v13, %v2021_v10  ;;  %v4988_v53 = vsub.f32 %v4825_v30, %v2021_v10 }
 0x613   : > { %v2159_v51 = vadd.f32 1e-05, %v2143_v48  ;;  %v2081_v20 = vmul.f32 %v4985_v38, %v4985_v38  ;;  %v2082_v57 = vmul.f32 %v4988_v53, %v4988_v53 }
 0x615   : > { %3653 = vrsqrt.f32 %v2159_v51  ;;  %v2125_v33 = vadd.f32 %v2082_v57, %v2081_v20  ;;  %vm2235_vm9 = vweird.f32 %v2159_v51 }
 0x616   : > { %v1995_v55 = vpop.xlane.xlu0 %1994 }
 0x617   : > { %v2022_v41 = vmul.f32 %v4657_v32, %v1995_v55  ;;  %2126 = vadd.xlane.f32.xlu0 %v2125_v33 }
 0x618   : > { %v2112_v30 = vpop.xlane.xlu2 %2111 }
 0x619   : > { %v4996_v49 = vsub.f32 %v4839_v36, %v2022_v41  ;;  %v4999_v13 = vsub.f32 %v4850_v35, %v2022_v41  ;;  %v2144_v31 = vmul.f32 %v2112_v30, %v4657_v32 }
 0x61b   : > { %v3654_v40 = vpop.eup %3653  ;;  %v2083_v56 = vmul.f32 %v4996_v49, %v4996_v49  ;;  %v2084_v42 = vmul.f32 %v4999_v13, %v4999_v13  ;;  %v2160_v60 = vadd.f32 1e-05, %v2144_v31 }
 0x61c   : > { %v2230_v52 = vmul.f32 %v3654_v40, %v2159_v51  ;;  %vm2236_vm8 = vweird.f32 %v3654_v40 }
 0x61d   : > { %v2128_v24 = vadd.f32 %v2084_v42, %v2083_v56  ;;  %3655 = vrsqrt.f32 %v2160_v60  ;;  %vm2237_vm10 = vmor %vm2235_vm9, %vm2236_vm8  ;;  %vm2245_vm12 = vweird.f32 %v2160_v60 }
 0x61e   : > { %v2231_v29 = vmul.f32 %v3654_v40, %v2230_v52  ;;  %v1998_v36 = vpop.xlane.xlu0 %1997 }
 0x61f   : > { %v2023_v47 = vmul.f32 %v4657_v32, %v1998_v36  ;;  %2129 = vadd.xlane.f32.xlu1 %v2128_v24 }
 0x620   : > { %v2232_v35 = vmul.f32 0.5, %v2231_v29  ;;  %v2115_v45 = vpop.xlane.xlu2 %2114 }
 0x621   : > { %v5008_v26 = vsub.f32 %v4866_v59, %v2023_v47  ;;  %v5011_v19 = vsub.f32 %v4877_v61, %v2023_v47  ;;  %v2145_v50 = vmul.f32 %v2115_v45, %v4657_v32 }
 0x622   : > { %v2233_v23 = vsub.f32 1.5, %v2232_v35 }
 0x623   : > { %v2085_v17 = vmul.f32 %v5008_v26, %v5008_v26  ;;  %v2086_v43 = vmul.f32 %v5011_v19, %v5011_v19  ;;  %v3656_v62 = vpop.eup %3655  ;;  %v2161_v21 = vadd.f32 1e-05, %v2145_v50 }
 0x624   : > { %v2234_v39 = vmul.f32 %v3654_v40, %v2233_v23  ;;  %v2240_v59 = vmul.f32 %v3656_v62, %v2160_v60  ;;  %vm2246_vm11 = vweird.f32 %v3656_v62 }
 0x625   : > { %v2131_v4 = vadd.f32 %v2086_v43, %v2085_v17  ;;  %3657 = vrsqrt.f32 %v2161_v21  ;;  %vm2247_vm13 = vmor %vm2245_vm12, %vm2246_vm11  ;;  %vm2255_vm15 = vweird.f32 %v2161_v21 }
 0x626   : > { %v2001_v61 = vpop.xlane.xlu1 %2000  ;;  %v2238_v1 = vsel %vm2237_vm10, %v3654_v40, %v2234_v39  ;;  %v2241_v54 = vmul.f32 %v3656_v62, %v2240_v59 }
 0x627   : > { %v2024_v7 = vmul.f32 %v4657_v32, %v2001_v61  ;;  %2132 = vadd.xlane.f32.xlu2 %v2131_v4  ;;  %v2341_v48 = vmul.f32 %v2238_v1, %v4816_v25  ;;  %v2342_v51 = vmul.f32 %v2238_v1, %v4819_v46 }
 0x628   : > { %v2242_v63 = vmul.f32 0.5, %v2241_v54  ;;  %v2118_v10 = vpop.xlane.xlu0 %2117  ;;  %v5046_v54 = vld [vmem:[%s507_s27] sm:$0x7] }
 0x629   : > { %v5020_v0 = vsub.f32 %v4904_v12, %v2024_v7  ;;  %v5023_v11 = vsub.f32 %v4913_v8, %v2024_v7  ;;  %v2146_v44 = vmul.f32 %v2118_v10, %v4657_v32  ;;  %v2379_v25 = vmul.f32 %v4891_v18, %v2341_v48 }
 0x62a   : > { %v2243_v20 = vsub.f32 1.5, %v2242_v63  ;;  %v2380_v46 = vmul.f32 %v4893_v3, %v2342_v51 }
 0x62b   : > { %v2087_v57 = vmul.f32 %v5020_v0, %v5020_v0  ;;  %v2088_v55 = vmul.f32 %v5023_v11, %v5023_v11  ;;  %v3658_v12 = vpop.eup %3657  ;;  %v2162_v33 = vadd.f32 1e-05, %v2146_v44  ;;  %v2417_v60 = vadd.f32 %v4896_v6, %v2379_v25 }
 0x62c   : > { %v2244_v41 = vmul.f32 %v3656_v62, %v2243_v20  ;;  %v2250_v8 = vmul.f32 %v3658_v12, %v2161_v21  ;;  %v2418_v36 = vadd.f32 %v4901_v28, %v2380_v46  ;;  %vm2256_vm14 = vweird.f32 %v3658_v12 }
 0x62d   : > { %v2134_v30 = vadd.f32 %v2088_v55, %v2087_v57  ;;  %3659 = vrsqrt.f32 %v2162_v33  ;;  %vm2257_vm1 = vmor %vm2255_vm15, %vm2256_vm14  ;;  %v2449_v50 = vmax.f32 %v2417_v60, 0.0  ;;  %v5051_v44 = vperm.slane %v5046_v54, 0 }
 0x62e   : > { %v2248_v31 = vsel %vm2247_vm13, %v3656_v62, %v2244_v41  ;;  %v2251_v40 = vmul.f32 %v3658_v12, %v2250_v8  ;;  %v2450_v43 = vmax.f32 %v2418_v36, 0.0  ;;  %vm2265_vm3 = vweird.f32 %v2162_v33 }
 0x62f   : > { %2135 = vadd.xlane.f32.xlu0 %v2134_v30  ;;  %v2343_v56 = vmul.f32 %v2248_v31, %v4842_v14  ;;  %v2344_v42 = vmul.f32 %v2248_v31, %v4845_v34 }
 0x630   : > { %v2252_v52 = vmul.f32 0.5, %v2251_v40 }
 0x631   : > { %v2381_v24 = vmul.f32 %v4891_v18, %v2343_v56  ;;  %v2382_v29 = vmul.f32 %v4893_v3, %v2344_v42 }
 0x632   : > { %v2253_v47 = vsub.f32 1.5, %v2252_v52 }
 0x633   : > { %v3660_v35 = vpop.eup %3659  ;;  %v2419_v45 = vadd.f32 %v4896_v6, %v2381_v24  ;;  %v2420_v23 = vadd.f32 %v4901_v28, %v2382_v29 }
 0x634   : > { %v2254_v14 = vmul.f32 %v3658_v12, %v2253_v47  ;;  %v2260_v34 = vmul.f32 %v3660_v35, %v2162_v33  ;;  %vm2266_vm2 = vweird.f32 %v3660_v35 }
 0x635   : > { %v2451_v17 = vmax.f32 %v2419_v45, 0.0  ;;  %v2452_v62 = vmax.f32 %v2420_v23, 0.0  ;;  %vm2267_vm4 = vmor %vm2265_vm3, %vm2266_vm2 }
 0x636   : > { %v2258_v39 = vsel %vm2257_vm1, %v3658_v12, %v2254_v14  ;;  %v2261_v59 = vmul.f32 %v3660_v35, %v2260_v34 }
 0x637   : > { %v2508_v4 = vpack.c.bf16 %v2451_v17, %v2449_v50  ;;  %v2509_v61 = vpack.c.bf16 %v2452_v62, %v2450_v43  ;;  %v2345_v21 = vmul.f32 %v2258_v39, %v4869_v37  ;;  %v2346_v7 = vmul.f32 %v2258_v39, %v4872_v2 }
 0x638   : > { %v2262_v1 = vmul.f32 0.5, %v2261_v59 }
 0x639   : > { %2638 = vmatmul.bf16.gmra.mxu3 %v2508_v4  ;;  %2687 = vmatmul.bf16.gmra.mxu0 %v2509_v61  ;;  %v2383_v51 = vmul.f32 %v4891_v18, %v2345_v21  ;;  %v2384_v20 = vmul.f32 %v4893_v3, %v2346_v7 }
 0x63a   : > { %v2263_v63 = vsub.f32 1.5, %v2262_v1  ;;  %v2673_v10 = vpop.f32.mrf.mxu0 }
 0x63b   : > { %v2421_v8 = vadd.f32 %v4896_v6, %v2383_v51  ;;  %v2422_v33 = vadd.f32 %v4901_v28, %v2384_v20 }
 0x63c   : > { %v2264_v48 = vmul.f32 %v3660_v35, %v2263_v63 }
 0x63d   : > { %v2454_v56 = vmax.f32 %v2422_v33, 0.0 }
 0x63e   : > { %v2268_v57 = vsel %vm2267_vm4, %v3660_v35, %v2264_v48 }
 0x63f   : > { %v2347_v12 = vmul.f32 %v2268_v57, %v4907_v15  ;;  %v2348_v37 = vmul.f32 %v2268_v57, %v4910_v58  ;;  %v2453_v58 = vmax.f32 %v2421_v8, 0.0 }
 0x640   : > { %v2624_v55 = vpop.f32.mrf.mxu3 }
 0x641   : > { %v2625_v2 = vadd.f32 %v2624_v55, %v5051_v44  ;;  %v2385_v41 = vmul.f32 %v4891_v18, %v2347_v12  ;;  %v2386_v30 = vmul.f32 %v4893_v3, %v2348_v37 }
 0x642   : > { %v2675_v15 = vpop.f32.mrf.mxu0 }
 0x643   : > { %v5062_v25 = vadd.f32 %v2673_v10, %v2625_v2  ;;  %v2423_v46 = vadd.f32 %v4896_v6, %v2385_v41  ;;  %v2424_v31 = vadd.f32 %v4901_v28, %v2386_v30 }
 0x645   : > { %2713 = vadd.xlane.f32.xlu1 %v5062_v25  ;;  %v2455_v40 = vmax.f32 %v2423_v46, 0.0  ;;  %v2456_v42 = vmax.f32 %v2424_v31, 0.0 }
 0x647   : > { %v2510_v24 = vpack.c.bf16 %v2455_v40, %v2453_v58  ;;  %v2511_v60 = vpack.c.bf16 %v2456_v42, %v2454_v56 }
 0x648   : > { %v2626_v52 = vpop.f32.mrf.mxu3 }
 0x649   : > { %v2627_v29 = vadd.f32 %v2626_v52, %v5051_v44  ;;  %2643 = vmatmul.bf16.gmra.mxu3 %v2510_v24  ;;  %2692 = vmatmul.bf16.gmra.mxu0 %v2511_v60 }
 0x64a   : > { %v2678_v47 = vpop.f32.mrf.mxu0 }
 0x64b   : > { %v5068_v36 = vadd.f32 %v2675_v15, %v2627_v29 }
 0x64d   : > { %2715 = vadd.xlane.f32.xlu2 %v5068_v36 }
 0x650   : > { %v2629_v35 = vpop.f32.mrf.mxu3 }
 0x651   : > { %v2630_v45 = vadd.f32 %v2629_v35, %v5051_v44  ;;  %v2121_v23 = vpop.xlane.xlu1 %2120 }
 0x652   : > { %v2147_v14 = vmul.f32 %v2121_v23, %v4657_v32  ;;  %v2680_v39 = vpop.f32.mrf.mxu0 }
 0x653   : > { %v5073_v34 = vadd.f32 %v2678_v47, %v2630_v45 }
 0x654   : > { %v2163_v50 = vadd.f32 1e-05, %v2147_v14 }
 0x655   : > { %2717 = vadd.xlane.f32.xlu0 %v5073_v34 }
 0x656   : > { %3661 = vrsqrt.f32 %v2163_v50  ;;  %vm2275_vm0 = vweird.f32 %v2163_v50 }
 0x658   : > { %v2631_v17 = vpop.f32.mrf.mxu3 }
 0x659   : > { %v2632_v43 = vadd.f32 %v2631_v17, %v5051_v44  ;;  %v2124_v62 = vpop.xlane.xlu2 %2123 }
 0x65a   : > { %v2148_v59 = vmul.f32 %v2124_v62, %v4657_v32 }
 0x65b   : > { %v5078_v4 = vadd.f32 %v2680_v39, %v2632_v43 }
 0x65c   : > { %v3662_v61 = vpop.eup %3661  ;;  %v2164_v1 = vadd.f32 1e-05, %v2148_v59 }
 0x65d   : > { %v2270_v21 = vmul.f32 %v3662_v61, %v2163_v50  ;;  %2719 = vadd.xlane.f32.xlu1 %v5078_v4  ;;  %vm2276_vm5 = vweird.f32 %v3662_v61 }
 0x65e   : > { %3663 = vrsqrt.f32 %v2164_v1  ;;  %vm2277_vm6 = vmor %vm2275_vm0, %vm2276_vm5  ;;  %vm2285_vm8 = vweird.f32 %v2164_v1 }
 0x65f   : > { %v2271_v7 = vmul.f32 %v3662_v61, %v2270_v21 }
 0x661   : > { %v2272_v63 = vmul.f32 0.5, %v2271_v7 }
 0x663   : > { %v2273_v10 = vsub.f32 1.5, %v2272_v63 }
 0x664   : > { %v3664_v48 = vpop.eup %3663 }
 0x665   : > { %v2274_v51 = vmul.f32 %v3662_v61, %v2273_v10  ;;  %v2280_v20 = vmul.f32 %v3664_v48, %v2164_v1  ;;  %vm2286_vm7 = vweird.f32 %v3664_v48 }
 0x666   : > { %vm2287_vm9 = vmor %vm2285_vm8, %vm2286_vm7 }
 0x667   : > { %v2278_v57 = vsel %vm2277_vm6, %v3662_v61, %v2274_v51  ;;  %v2281_v55 = vmul.f32 %v3664_v48, %v2280_v20 }
 0x668   : > { %v2349_v37 = vmul.f32 %v2278_v57, %v4949_v27  ;;  %v2350_v2 = vmul.f32 %v2278_v57, %v4952_v16 }
 0x669   : > { %v2282_v12 = vmul.f32 0.5, %v2281_v55 }
 0x66a   : > { %v2387_v30 = vmul.f32 %v4891_v18, %v2349_v37  ;;  %v2388_v33 = vmul.f32 %v4893_v3, %v2350_v2 }
 0x66b   : > { %v2283_v41 = vsub.f32 1.5, %v2282_v12 }
 0x66c   : > { %v2425_v27 = vadd.f32 %v4896_v6, %v2387_v30  ;;  %v2426_v40 = vadd.f32 %v4901_v28, %v2388_v33 }
 0x66d   : > { %v2284_v8 = vmul.f32 %v3664_v48, %v2283_v41 }
 0x66e   : > { %v2457_v52 = vmax.f32 %v2425_v27, 0.0  ;;  %v2458_v60 = vmax.f32 %v2426_v40, 0.0 }
 0x66f   : > { %v2288_v46 = vsel %vm2287_vm9, %v3664_v48, %v2284_v8 }
 0x670   : > { %v2351_v31 = vmul.f32 %v2288_v46, %v4961_v9  ;;  %v2352_v15 = vmul.f32 %v2288_v46, %v4964_v22 }
 0x672   : > { %v2389_v58 = vmul.f32 %v4891_v18, %v2351_v31  ;;  %v2390_v16 = vmul.f32 %v4893_v3, %v2352_v15 }
 0x674   : > { %v2427_v56 = vadd.f32 %v4896_v6, %v2389_v58  ;;  %v2428_v42 = vadd.f32 %v4901_v28, %v2390_v16 }
 0x676   : > { %v2459_v24 = vmax.f32 %v2427_v56, 0.0  ;;  %v2460_v29 = vmax.f32 %v2428_v42, 0.0 }
 0x678   : > { %v2512_v47 = vpack.c.bf16 %v2459_v24, %v2457_v52  ;;  %v2513_v9 = vpack.c.bf16 %v2460_v29, %v2458_v60 }
 0x67a   : > { %2648 = vmatmul.bf16.gmra.mxu3 %v2512_v47  ;;  %2697 = vmatmul.bf16.gmra.mxu0 %v2513_v9 }
 0x67b   : > { %v2683_v22 = vpop.f32.mrf.mxu0 }
 0x681   : > { %v2634_v35 = vpop.f32.mrf.mxu3 }
 0x682   : > { %v2635_v45 = vadd.f32 %v2634_v35, %v5051_v44 }
 0x683   : > { %v2685_v17 = vpop.f32.mrf.mxu0 }
 0x684   : > { %v5094_v23 = vadd.f32 %v2683_v22, %v2635_v45 }
 0x686   : > { %2721 = vadd.xlane.f32.xlu2 %v5094_v23 }
 0x689   : > { %v2636_v14 = vpop.f32.mrf.mxu3 }
 0x68a   : > { %v2637_v50 = vadd.f32 %v2636_v14, %v5051_v44  ;;  %v2127_v43 = vpop.xlane.xlu0 %2126 }
 0x68b   : > { %v2149_v62 = vmul.f32 %v2127_v43, %v4657_v32 }
 0x68c   : > { %v5099_v39 = vadd.f32 %v2685_v17, %v2637_v50 }
 0x68d   : > { %v2165_v59 = vadd.f32 1e-05, %v2149_v62 }
 0x68e   : > { %2723 = vadd.xlane.f32.xlu0 %v5099_v39 }
 0x68f   : > { %3665 = vrsqrt.f32 %v2165_v59  ;;  %vm2295_vm11 = vweird.f32 %v2165_v59 }
 0x692   : > { %v2130_v61 = vpop.xlane.xlu1 %2129 }
 0x693   : > { %v2150_v1 = vmul.f32 %v2130_v61, %v4657_v32 }
 0x695   : > { %v2166_v21 = vadd.f32 1e-05, %v2150_v1  ;;  %v3666_v7 = vpop.eup %3665 }
 0x696   : > { %v2290_v63 = vmul.f32 %v3666_v7, %v2165_v59  ;;  %vm2296_vm10 = vweird.f32 %v3666_v7 }
 0x697   : > { %3667 = vrsqrt.f32 %v2166_v21  ;;  %vm2297_vm12 = vmor %vm2295_vm11, %vm2296_vm10  ;;  %vm2305_vm14 = vweird.f32 %v2166_v21 }
 0x698   : > { %v2291_v10 = vmul.f32 %v3666_v7, %v2290_v63 }
 0x69a   : > { %v2133_v48 = vpop.xlane.xlu2 %2132  ;;  %v2292_v51 = vmul.f32 0.5, %v2291_v10 }
 0x69b   : > { %v2151_v20 = vmul.f32 %v2133_v48, %v4657_v32 }
 0x69c   : > { %v2293_v55 = vsub.f32 1.5, %v2292_v51 }
 0x69d   : > { %v3668_v57 = vpop.eup %3667  ;;  %v2167_v12 = vadd.f32 1e-05, %v2151_v20 }
 0x69e   : > { %v2300_v37 = vmul.f32 %v3668_v57, %v2166_v21  ;;  %v2294_v2 = vmul.f32 %v3666_v7, %v2293_v55  ;;  %vm2306_vm13 = vweird.f32 %v3668_v57 }
 0x69f   : > { %3669 = vrsqrt.f32 %v2167_v12  ;;  %vm2307_vm15 = vmor %vm2305_vm14, %vm2306_vm13  ;;  %vm2315_vm2 = vweird.f32 %v2167_v12 }
 0x6a0   : > { %v2301_v41 = vmul.f32 %v3668_v57, %v2300_v37  ;;  %v2298_v8 = vsel %vm2297_vm12, %v3666_v7, %v2294_v2 }
 0x6a1   : > { %v2353_v31 = vmul.f32 %v2298_v8, %v4985_v38  ;;  %v2354_v15 = vmul.f32 %v2298_v8, %v4988_v53 }
 0x6a2   : > { %v2302_v30 = vmul.f32 0.5, %v2301_v41  ;;  %v2136_v33 = vpop.xlane.xlu0 %2135 }
 0x6a3   : > { %v2152_v46 = vmul.f32 %v2136_v33, %v4657_v32  ;;  %v2391_v42 = vmul.f32 %v4891_v18, %v2353_v31  ;;  %v2392_v52 = vmul.f32 %v4893_v3, %v2354_v15 }
 0x6a4   : > { %v2303_v58 = vsub.f32 1.5, %v2302_v30 }
 0x6a5   : > { %v3670_v27 = vpop.eup %3669  ;;  %v2168_v16 = vadd.f32 1e-05, %v2152_v46  ;;  %v2429_v47 = vadd.f32 %v4896_v6, %v2391_v42  ;;  %v2430_v22 = vadd.f32 %v4901_v28, %v2392_v52 }
 0x6a6   : > { %v2304_v40 = vmul.f32 %v3668_v57, %v2303_v58  ;;  %v2310_v56 = vmul.f32 %v3670_v27, %v2167_v12  ;;  %vm2316_vm1 = vweird.f32 %v3670_v27 }
 0x6a7   : > { %3671 = vrsqrt.f32 %v2168_v16  ;;  %vm2317_vm3 = vmor %vm2315_vm2, %vm2316_vm1  ;;  %v2462_v62 = vmax.f32 %v2430_v22, 0.0  ;;  %vm2325_vm5 = vweird.f32 %v2168_v16 }
 0x6a8   : > { %v2308_v24 = vsel %vm2307_vm15, %v3668_v57, %v2304_v40  ;;  %v2311_v60 = vmul.f32 %v3670_v27, %v2310_v56 }
 0x6a9   : > { %v2355_v32 = vmul.f32 %v2308_v24, %v4996_v49  ;;  %v2356_v38 = vmul.f32 %v2308_v24, %v4999_v13  ;;  %v2461_v13 = vmax.f32 %v2429_v47, 0.0 }
 0x6aa   : > { %v2312_v53 = vmul.f32 0.5, %v2311_v60 }
 0x6ab   : > { %v2393_v29 = vmul.f32 %v4891_v18, %v2355_v32  ;;  %v2394_v9 = vmul.f32 %v4893_v3, %v2356_v38 }
 0x6ac   : > { %v2313_v35 = vsub.f32 1.5, %v2312_v53 }
 0x6ad   : > { %v3672_v45 = vpop.eup %3671  ;;  %v2431_v14 = vadd.f32 %v4896_v6, %v2393_v29  ;;  %v2432_v50 = vadd.f32 %v4901_v28, %v2394_v9 }
 0x6ae   : > { %v2314_v17 = vmul.f32 %v3670_v27, %v2313_v35  ;;  %v2320_v49 = vmul.f32 %v3672_v45, %v2168_v16  ;;  %vm2326_vm4 = vweird.f32 %v3672_v45 }
 0x6af   : > { %v2463_v43 = vmax.f32 %v2431_v14, 0.0  ;;  %v2464_v59 = vmax.f32 %v2432_v50, 0.0  ;;  %vm2327_vm0 = vmor %vm2325_vm5, %vm2326_vm4 }
 0x6b0   : > { %v2318_v61 = vsel %vm2317_vm3, %v3670_v27, %v2314_v17  ;;  %v2321_v1 = vmul.f32 %v3672_v45, %v2320_v49 }
 0x6b1   : > { %v2514_v21 = vpack.c.bf16 %v2463_v43, %v2461_v13  ;;  %v2515_v7 = vpack.c.bf16 %v2464_v59, %v2462_v62  ;;  %v2357_v10 = vmul.f32 %v2318_v61, %v5008_v26  ;;  %v2358_v48 = vmul.f32 %v2318_v61, %v5011_v19 }
 0x6b2   : > { %v2322_v63 = vmul.f32 0.5, %v2321_v1 }
 0x6b3   : > { %2653 = vmatmul.bf16.gmra.mxu3 %v2514_v21  ;;  %2702 = vmatmul.bf16.gmra.mxu0 %v2515_v7  ;;  %v2395_v57 = vmul.f32 %v4891_v18, %v2357_v10  ;;  %v2396_v55 = vmul.f32 %v4893_v3, %v2358_v48 }
 0x6b4   : > { %v2323_v51 = vsub.f32 1.5, %v2322_v63 }
 0x6b5   : > { %v2433_v26 = vadd.f32 %v4896_v6, %v2395_v57  ;;  %v2434_v30 = vadd.f32 %v4901_v28, %v2396_v55 }
 0x6b6   : > { %v2324_v20 = vmul.f32 %v3672_v45, %v2323_v51  ;;  %v2688_v37 = vpop.f32.mrf.mxu0 }
 0x6b7   : > { %v2465_v58 = vmax.f32 %v2433_v26, 0.0 }
 0x6b8   : > { %v2328_v12 = vsel %vm2327_vm0, %v3672_v45, %v2324_v20  ;;  %v2714_v61 = vpop.xlane.xlu1 %2713 }
 0x6b9   : > { %v2359_v2 = vmul.f32 %v2328_v12, %v5020_v0  ;;  %v2360_v41 = vmul.f32 %v2328_v12, %v5023_v11  ;;  %v2466_v0 = vmax.f32 %v2434_v30, 0.0  ;;  %v2745_v7 = vmul.f32 %v2714_v61, %v4309_v5 }
 0x6bb   : > { %v2397_v8 = vmul.f32 %v4891_v18, %v2359_v2  ;;  %v2398_v19 = vmul.f32 %v4893_v3, %v2360_v41  ;;  %v5163_v10 = vsub.f32 %v5062_v25, %v2745_v7 }
 0x6bc   : > { %v2639_v33 = vpop.f32.mrf.mxu3 }
 0x6bd   : > { %v2435_v46 = vadd.f32 %v4896_v6, %v2397_v8  ;;  %v2436_v31 = vadd.f32 %v4901_v28, %v2398_v19  ;;  %v2640_v15 = vadd.f32 %v2639_v33, %v5051_v44  ;;  %v2777_v2 = vmul.f32 %v5163_v10, %v5163_v10 }
 0x6be   : > { %v2690_v3 = vpop.f32.mrf.mxu0 }
 0x6bf   : > { %v2467_v27 = vmax.f32 %v2435_v46, 0.0  ;;  %v2468_v16 = vmax.f32 %v2436_v31, 0.0  ;;  %v5130_v11 = vadd.f32 %v2688_v37, %v2640_v15 }
 0x6c0   : > { %v2716_v48 = vpop.xlane.xlu2 %2715 }
 0x6c1   : > { %v2516_v18 = vpack.c.bf16 %v2467_v27, %v2465_v58  ;;  %v2517_v40 = vpack.c.bf16 %v2468_v16, %v2466_v0  ;;  %2725 = vadd.xlane.f32.xlu1 %v5130_v11  ;;  %v2746_v12 = vmul.f32 %v2716_v48, %v4309_v5 }
 0x6c3   : > { %2658 = vmatmul.bf16.gmra.mxu3 %v2516_v18  ;;  %2707 = vmatmul.bf16.gmra.mxu0 %v2517_v40  ;;  %v5174_v25 = vsub.f32 %v5068_v36, %v2746_v12 }
 0x6c4   : > { %v2641_v56 = vpop.f32.mrf.mxu3 }
 0x6c5   : > { %v2642_v6 = vadd.f32 %v2641_v56, %v5051_v44  ;;  %v2778_v36 = vmul.f32 %v5174_v25, %v5174_v25 }
 0x6c6   : > { %v2693_v28 = vpop.f32.mrf.mxu0 }
 0x6c7   : > { %v5134_v42 = vadd.f32 %v2690_v3, %v2642_v6 }
 0x6c8   : > { %v2718_v8 = vpop.xlane.xlu0 %2717 }
 0x6c9   : > { %2727 = vadd.xlane.f32.xlu2 %v5134_v42  ;;  %v2747_v15 = vmul.f32 %v2718_v8, %v4309_v5 }
 0x6cc   : > { %v2644_v52 = vpop.f32.mrf.mxu3 }
 0x6cd   : > { %v2645_v24 = vadd.f32 %v2644_v52, %v5051_v44 }
 0x6ce   : > { %v2695_v53 = vpop.f32.mrf.mxu0 }
 0x6cf   : > { %v5138_v60 = vadd.f32 %v2693_v28, %v2645_v24 }
 0x6d0   : > { %v2720_v57 = vpop.xlane.xlu1 %2719 }
 0x6d1   : > { %2729 = vadd.xlane.f32.xlu0 %v5138_v60  ;;  %v2748_v41 = vmul.f32 %v2720_v57, %v4309_v5 }
 0x6d3   : > { %v5177_v26 = vsub.f32 %v5078_v4, %v2748_v41 }
 0x6d4   : > { %v2646_v32 = vpop.f32.mrf.mxu3 }
 0x6d5   : > { %v2647_v38 = vadd.f32 %v2646_v32, %v5051_v44  ;;  %v2780_v4 = vmul.f32 %v5177_v26, %v5177_v26 }
 0x6d7   : > { %v5142_v29 = vadd.f32 %v2695_v53, %v2647_v38 }
 0x6d9   : > { %2731 = vadd.xlane.f32.xlu1 %v5142_v29 }
 0x6f7   : > { %v2698_v47 = vpop.f32.mrf.mxu0 }
 0x6f9   : > { %v2722_v19 = vpop.xlane.xlu2 %2721 }
 0x6fa   : > { %v2749_v58 = vmul.f32 %v2722_v19, %v4309_v5 }
 0x6fc   : > { %v5194_v16 = vsub.f32 %v5094_v23, %v2749_v58 }
 0x6fd   : > { %v2649_v9 = vpop.f32.mrf.mxu3 }
 0x6fe   : > { %v2650_v22 = vadd.f32 %v2649_v9, %v5051_v44  ;;  %v2781_v52 = vmul.f32 %v5194_v16, %v5194_v16 }
 0x6ff   : > { %v2700_v50 = vpop.f32.mrf.mxu0 }
 0x700   : > { %v5146_v35 = vadd.f32 %v2698_v47, %v2650_v22 }
 0x701   : > { %v2724_v18 = vpop.xlane.xlu0 %2723 }
 0x702   : > { %2733 = vadd.xlane.f32.xlu2 %v5146_v35  ;;  %v2750_v6 = vmul.f32 %v2724_v18, %v4309_v5 }
 0x705   : > { %v2651_v45 = vpop.f32.mrf.mxu3 }
 0x706   : > { %v2652_v14 = vadd.f32 %v2651_v45, %v5051_v44 }
 0x708   : > { %v5150_v17 = vadd.f32 %v2700_v50, %v2652_v14 }
 0x70a   : > { %2735 = vadd.xlane.f32.xlu0 %v5150_v17 }
 0x730   : > { %v2703_v49 = vpop.f32.mrf.mxu0 }
 0x734   : > { %v2726_v33 = vpop.xlane.xlu1 %2725 }
 0x735   : > { %v2751_v0 = vmul.f32 %v2726_v33, %v4309_v5 }
 0x736   : > { %v2654_v13 = vpop.f32.mrf.mxu3 }
 0x737   : > { %v2655_v43 = vadd.f32 %v2654_v13, %v5051_v44  ;;  %v5197_v40 = vsub.f32 %v5130_v11, %v2751_v0  ;;  %v5209_v11 = vsub.f32 %v5099_v39, %v2750_v6 }
 0x738   : > { %v2705_v59 = vpop.f32.mrf.mxu0 }
 0x739   : > { %v5154_v62 = vadd.f32 %v2703_v49, %v2655_v43  ;;  %v2783_v23 = vmul.f32 %v5197_v40, %v5197_v40  ;;  %v2782_v22 = vmul.f32 %v5209_v11, %v5209_v11 }
 0x73b   : > { %2737 = vadd.xlane.f32.xlu1 %v5154_v62 }
 0x73c   : > { %v2728_v3 = vpop.xlane.xlu2 %2727 }
 0x73d   : > { %v2752_v28 = vmul.f32 %v2728_v3, %v4309_v5 }
 0x73e   : > { %v2656_v1 = vpop.f32.mrf.mxu3 }
 0x73f   : > { %v2657_v21 = vadd.f32 %v2656_v1, %v5051_v44  ;;  %v5212_v32 = vsub.f32 %v5134_v42, %v2752_v28 }
 0x740   : > { %v2708_v51 = vpop.f32.mrf.mxu0 }
 0x741   : > { %v5159_v63 = vadd.f32 %v2705_v59, %v2657_v21  ;;  %v2784_v9 = vmul.f32 %v5212_v32, %v5212_v32 }
 0x743   : > { %2739 = vadd.xlane.f32.xlu2 %v5159_v63 }
 0x744   : > { %v2730_v38 = vpop.xlane.xlu0 %2729 }
 0x745   : > { %v2753_v47 = vmul.f32 %v2730_v38, %v4309_v5 }
 0x746   : > { %v2659_v20 = vpop.f32.mrf.mxu3 }
 0x747   : > { %v2660_v55 = vadd.f32 %v2659_v20, %v5051_v44  ;;  %v5225_v39 = vsub.f32 %v5138_v60, %v2753_v47 }
 0x748   : > { %v2710_v31 = vpop.f32.mrf.mxu0 }
 0x749   : > { %v5167_v37 = vadd.f32 %v2708_v51, %v2660_v55  ;;  %v2785_v42 = vmul.f32 %v5225_v39, %v5225_v39 }
 0x74b   : > { %2741 = vadd.xlane.f32.xlu0 %v5167_v37  ;;  %2793 = vadd.xlane.f32.xlu2 %v2777_v2 }
 0x74c   : > { %v2732_v56 = vpop.xlane.xlu1 %2731 }
 0x74d   : > { %v2754_v24 = vmul.f32 %v2732_v56, %v4309_v5 }
 0x74e   : > { %v2661_v30 = vpop.f32.mrf.mxu3 }
 0x74f   : > { %v2662_v46 = vadd.f32 %v2661_v30, %v5051_v44  ;;  %v5191_v44 = vsub.f32 %v5073_v34, %v2747_v15  ;;  %v5215_v53 = vsub.f32 %v5142_v29, %v2754_v24 }
 0x751   : > { %v5182_v27 = vadd.f32 %v2710_v31, %v2662_v46  ;;  %v2779_v34 = vmul.f32 %v5191_v44, %v5191_v44  ;;  %v2786_v45 = vmul.f32 %v5215_v53, %v5215_v53 }
 0x753   : > { %2795 = vadd.xlane.f32.xlu0 %v2778_v36  ;;  %2743 = vadd.xlane.f32.xlu1 %v5182_v27 }
 0x754   : > { %2799 = vadd.xlane.f32.xlu2 %v2780_v4 }
 0x75b   : > { %2801 = vadd.xlane.f32.xlu0 %v2781_v52  ;;  %2797 = vadd.xlane.f32.xlu1 %v2779_v34 }
 0x75c   : > { %2805 = vadd.xlane.f32.xlu2 %v2783_v23 }
 0x763   : > { %2807 = vadd.xlane.f32.xlu0 %v2784_v9  ;;  %2803 = vadd.xlane.f32.xlu1 %v2782_v22 }
 0x764   : > { %2811 = vadd.xlane.f32.xlu2 %v2786_v45 }
 0x76b   : > { %2809 = vadd.xlane.f32.xlu1 %v2785_v42 }
 0x775   : > { %v2734_v29 = vpop.xlane.xlu2 %2733 }
 0x776   : > { %v2755_v14 = vmul.f32 %v2734_v29, %v4309_v5 }
 0x778   : > { %v5231_v50 = vsub.f32 %v5146_v35, %v2755_v14 }
 0x77a   : > { %v2787_v49 = vmul.f32 %v5231_v50, %v5231_v50 }
 0x77c   : > { %2813 = vadd.xlane.f32.xlu0 %v2787_v49 }
 0x77d   : > { %v2736_v13 = vpop.xlane.xlu0 %2735 }
 0x77e   : > { %v2756_v43 = vmul.f32 %v2736_v13, %v4309_v5 }
 0x780   : > { %v5237_v60 = vsub.f32 %v5150_v17, %v2756_v43 }
 0x782   : > { %v2788_v59 = vmul.f32 %v5237_v60, %v5237_v60 }
 0x784   : > { %2815 = vadd.xlane.f32.xlu1 %v2788_v59 }
 0x7ae   : > { %v2738_v61 = vpop.xlane.xlu1 %2737 }
 0x7af   : > { %v2757_v1 = vmul.f32 %v2738_v61, %v4309_v5 }
 0x7b1   : > { %v5243_v35 = vsub.f32 %v5154_v62, %v2757_v1 }
 0x7b3   : > { %v2789_v21 = vmul.f32 %v5243_v35, %v5243_v35 }
 0x7b5   : > { %2817 = vadd.xlane.f32.xlu2 %v2789_v21 }
 0x7b6   : > { %v2740_v7 = vpop.xlane.xlu2 %2739 }
 0x7b7   : > { %v2758_v48 = vmul.f32 %v2740_v7, %v4309_v5 }
 0x7b9   : > { %v5249_v17 = vsub.f32 %v5159_v63, %v2758_v48 }
 0x7bb   : > { %v2790_v51 = vmul.f32 %v5249_v17, %v5249_v17 }
 0x7bd   : > { %2819 = vadd.xlane.f32.xlu0 %v2790_v51 }
 0x7be   : > { %v2742_v20 = vpop.xlane.xlu0 %2741  ;;  %v2794_v8 = vpop.xlane.xlu2 %2793 }
 0x7bf   : > { %v2759_v57 = vmul.f32 %v2742_v20, %v4309_v5  ;;  %v2825_v30 = vmul.f32 %v2794_v8, %v4309_v5 }
 0x7c1   : > { %v5255_v62 = vsub.f32 %v5167_v37, %v2759_v57  ;;  %v2841_v37 = vadd.f32 1e-05, %v2825_v30 }
 0x7c3   : > { %v2791_v55 = vmul.f32 %v5255_v62, %v5255_v62  ;;  %3673 = vrsqrt.f32 %v2841_v37  ;;  %vm2863_vm7 = vweird.f32 %v2841_v37 }
 0x7c5   : > { %2821 = vadd.xlane.f32.xlu1 %v2791_v55 }
 0x7c6   : > { %v2744_v12 = vpop.xlane.xlu1 %2743  ;;  %v2796_v19 = vpop.xlane.xlu0 %2795 }
 0x7c7   : > { %v2760_v2 = vmul.f32 %v2744_v12, %v4309_v5  ;;  %v2800_v33 = vpop.xlane.xlu2 %2799  ;;  %v2826_v46 = vmul.f32 %v2796_v19, %v4309_v5 }
 0x7c8   : > { %v2828_v31 = vmul.f32 %v2800_v33, %v4309_v5 }
 0x7c9   : > { %v5261_v63 = vsub.f32 %v5182_v27, %v2760_v2  ;;  %v5268_v36 = vadd.f32 1e-05, %v2826_v46  ;;  %v5272_v0 = vpop.eup %3673 }
 0x7ca   : > { %v5270_v27 = vadd.f32 1e-05, %v2828_v31  ;;  %v2858_v3 = vmul.f32 %v5272_v0, %v2841_v37  ;;  %vm2864_vm6 = vweird.f32 %v5272_v0  ;;  %v5329_v31 = vperm.slane %v5046_v54, 1 }
 0x7cb   : > { %v2792_v41 = vmul.f32 %v5261_v63, %v5261_v63  ;;  %3675 = vrsqrt.f32 %v5268_v36  ;;  %vm5331_vm8 = vmor %vm2863_vm7, %vm2864_vm6  ;;  %vm2873_vm9 = vweird.f32 %v5268_v36 }
 0x7cc   : > { %3677 = vrsqrt.f32 %v5270_v27  ;;  %v2859_v24 = vmul.f32 %v5272_v0, %v2858_v3  ;;  %vm2893_vm13 = vweird.f32 %v5270_v27 }
 0x7cd   : > { %2823 = vadd.xlane.f32.xlu2 %v2792_v41 }
 0x7ce   : > { %v2802_v15 = vpop.xlane.xlu0 %2801  ;;  %v2798_v58 = vpop.xlane.xlu1 %2797  ;;  %v2860_v42 = vmul.f32 0.5, %v2859_v24 }
 0x7cf   : > { %v2829_v4 = vmul.f32 %v2802_v15, %v4309_v5  ;;  %v2806_v18 = vpop.xlane.xlu2 %2805  ;;  %v2827_v28 = vmul.f32 %v2798_v58, %v4309_v5 }
 0x7d0   : > { %v2831_v56 = vmul.f32 %v2806_v18, %v4309_v5  ;;  %v2861_v61 = vsub.f32 1.5, %v2860_v42 }
 0x7d1   : > { %v5279_v6 = vadd.f32 1e-05, %v2829_v4  ;;  %v5285_v38 = vpop.eup %3675  ;;  %v5288_v47 = vadd.f32 1e-05, %v2827_v28 }
 0x7d2   : > { %v5283_v23 = vadd.f32 1e-05, %v2831_v56  ;;  %v5291_v22 = vpop.eup %3677  ;;  %v2868_v29 = vmul.f32 %v5285_v38, %v5268_v36  ;;  %v2862_v55 = vmul.f32 %v5272_v0, %v2861_v61  ;;  %vm2874_vm10 = vweird.f32 %v5285_v38 }
 0x7d3   : > { %3679 = vrsqrt.f32 %v5279_v6  ;;  %v2888_v14 = vmul.f32 %v5291_v22, %v5270_v27  ;;  %vm2894_vm11 = vweird.f32 %v5291_v22  ;;  %vm5367_vm12 = vmor %vm2873_vm9, %vm2874_vm10  ;;  %vm2903_vm1 = vweird.f32 %v5279_v6 }
 0x7d4   : > { %3681 = vrsqrt.f32 %v5283_v23  ;;  %v2869_v1 = vmul.f32 %v5285_v38, %v2868_v29  ;;  %v2866_v3 = vsel %vm5331_vm8, %v5272_v0, %v2862_v55  ;;  %vm5380_vm14 = vmor %vm2893_vm13, %vm2894_vm11  ;;  %vm2923_vm5 = vweird.f32 %v5283_v23 }
 0x7d5   : > { %3683 = vrsqrt.f32 %v5288_v47  ;;  %v2889_v21 = vmul.f32 %v5291_v22, %v2888_v14  ;;  %v3017_v29 = vmul.f32 %v2866_v3, %v5163_v10  ;;  %vm2883_vm6 = vweird.f32 %v5288_v47 }
 0x7d6   : > { %v2808_v52 = vpop.xlane.xlu0 %2807  ;;  %v2804_v34 = vpop.xlane.xlu1 %2803  ;;  %v2870_v12 = vmul.f32 0.5, %v2869_v1 }
 0x7d7   : > { %v2832_v9 = vmul.f32 %v2808_v52, %v4309_v5  ;;  %v2830_v45 = vmul.f32 %v2804_v34, %v4309_v5  ;;  %v2812_v7 = vpop.xlane.xlu2 %2811  ;;  %v2890_v2 = vmul.f32 0.5, %v2889_v21 }
 0x7d8   : > { %v2834_v57 = vmul.f32 %v2812_v7, %v4309_v5  ;;  %v2871_v56 = vsub.f32 1.5, %v2870_v12 }
 0x7d9   : > { %v5300_v49 = vadd.f32 1e-05, %v2832_v9  ;;  %v5302_v13 = vadd.f32 1e-05, %v2830_v45  ;;  %v5304_v43 = vpop.eup %3679  ;;  %v2891_v37 = vsub.f32 1.5, %v2890_v2 }
 0x7da   : > { %v5309_v48 = vpop.eup %3681  ;;  %v2898_v51 = vmul.f32 %v5304_v43, %v5279_v6  ;;  %v5335_v58 = vadd.f32 1e-05, %v2834_v57  ;;  %v2872_v61 = vmul.f32 %v5285_v38, %v2871_v56  ;;  %vm2904_vm15 = vweird.f32 %v5304_v43 }
 0x7db   : > { %3685 = vrsqrt.f32 %v5300_v49  ;;  %v5314_v20 = vpop.eup %3683  ;;  %v2918_v8 = vmul.f32 %v5309_v48, %v5283_v23  ;;  %v2892_v1 = vmul.f32 %v5291_v22, %v2891_v37  ;;  %vm5407_vm2 = vmor %vm2903_vm1, %vm2904_vm15  ;;  %vm2924_vm3 = vweird.f32 %v5309_v48 }
 0x7dc   : > { %3687 = vrsqrt.f32 %v5302_v13  ;;  %v2899_v41 = vmul.f32 %v5304_v43, %v2898_v51  ;;  %v2878_v19 = vmul.f32 %v5314_v20, %v5288_v47  ;;  %v2876_v36 = vsel %vm5367_vm12, %v5285_v38, %v2872_v61  ;;  %vm5433_vm0 = vmor %vm2923_vm5, %vm2924_vm3 }
 0x7dd   : > { %v2919_v34 = vmul.f32 %v5309_v48, %v2918_v8  ;;  %3689 = vrsqrt.f32 %v5335_v58  ;;  %v5377_v8 = vperm.slane %v5046_v54, 2  ;;  %v2896_v27 = vsel %vm5380_vm14, %v5291_v22, %v2892_v1 }
 0x7de   : > { %v2810_v59 = vpop.xlane.xlu1 %2809  ;;  %v2900_v52 = vmul.f32 0.5, %v2899_v41  ;;  %v2879_v24 = vmul.f32 %v5314_v20, %v2878_v19  ;;  %v3034_v19 = vmul.f32 %v5329_v31, %v3017_v29  ;;  %v3018_v22 = vmul.f32 %v2876_v36, %v5174_v25 }
 0x7df   : > { %v2833_v4 = vmul.f32 %v2810_v59, %v4309_v5  ;;  %v2920_v51 = vmul.f32 0.5, %v2919_v34  ;;  %vm2884_vm4 = vweird.f32 %v5314_v20  ;;  %vm2933_vm8 = vweird.f32 %v5300_v49 }
 0x7e0   : > { %v2901_v7 = vsub.f32 1.5, %v2900_v52  ;;  %v2880_v57 = vmul.f32 0.5, %v2879_v24  ;;  %v5399_v37 = vadd.f32 %v5377_v8, %v3034_v19  ;;  %v3020_v52 = vmul.f32 %v2896_v27, %v5177_v26  ;;  %vm5445_vm7 = vmor %vm2883_vm6, %vm2884_vm4 }
 0x7e1   : > { %v5324_v33 = vpop.eup %3685  ;;  %v5353_v14 = vadd.f32 1e-05, %v2833_v4  ;;  %v2921_v4 = vsub.f32 1.5, %v2920_v51  ;;  %v3035_v1 = vmul.f32 %v5329_v31, %v3018_v22  ;;  %vm2913_vm12 = vweird.f32 %v5302_v13 }
 0x7e2   : > { %v5326_v46 = vpop.eup %3687  ;;  %v2928_v9 = vmul.f32 %v5324_v33, %v5300_v49  ;;  %v2902_v15 = vmul.f32 %v5304_v43, %v2901_v7  ;;  %v3067_v61 = vmax.f32 %v5399_v37, 0.0  ;;  %v3037_v23 = vmul.f32 %v5329_v31, %v3020_v52 }
 0x7e3   : > { %v2908_v45 = vmul.f32 %v5326_v46, %v5302_v13  ;;  %3691 = vrsqrt.f32 %v5353_v14  ;;  %v5393_v54 = vpop.eup %3689  ;;  %v2922_v26 = vmul.f32 %v5309_v48, %v2921_v4  ;;  %vm2934_vm9 = vweird.f32 %v5324_v33 }
 0x7e4   : > { %v2929_v12 = vmul.f32 %v5324_v33, %v2928_v9  ;;  %v2948_v24 = vmul.f32 %v5393_v54, %v5335_v58  ;;  %v2906_v6 = vsel %vm5407_vm2, %v5304_v43, %v2902_v15  ;;  %vm2914_vm10 = vweird.f32 %v5326_v46  ;;  %vm5479_vm11 = vmor %vm2933_vm8, %vm2934_vm9 }
 0x7e5   : > { %v2909_v2 = vmul.f32 %v5326_v46, %v2908_v45  ;;  %v3021_v51 = vmul.f32 %v2906_v6, %v5194_v16  ;;  %v2926_v47 = vsel %vm5433_vm0, %v5309_v48, %v2922_v26  ;;  %v5466_v48 = vadd.f32 %v5377_v8, %v3035_v1  ;;  %vm5490_vm13 = vmor %vm2913_vm12, %vm2914_vm10 }
 0x7e6   : > { %v2930_v3 = vmul.f32 0.5, %v2929_v12  ;;  %v2949_v10 = vmul.f32 %v5393_v54, %v2948_v24  ;;  %v5474_v4 = vadd.f32 %v5377_v8, %v3037_v23  ;;  %vm2953_vm14 = vweird.f32 %v5335_v58 }
 0x7e7   : > { %v2910_v56 = vmul.f32 0.5, %v2909_v2  ;;  %v3038_v22 = vmul.f32 %v5329_v31, %v3021_v51  ;;  %vm2954_vm15 = vweird.f32 %v5393_v54  ;;  %vm2943_vm1 = vweird.f32 %v5353_v14 }
 0x7e8   : > { %vm5538_vm2 = vmor %vm2953_vm14, %vm2954_vm15 }
 0x7e9   : > { %v5415_v25 = vpop.eup %3691  ;;  %v2911_v29 = vsub.f32 1.5, %v2910_v56  ;;  %v2950_v56 = vmul.f32 0.5, %v2949_v10  ;;  %v5517_v51 = vadd.f32 %v5377_v8, %v3038_v22 }
 0x7ea   : > { %v2938_v16 = vmul.f32 %v5415_v25, %v5353_v14  ;;  %vm2944_vm3 = vweird.f32 %v5415_v25 }
 0x7eb   : > { %v2912_v19 = vmul.f32 %v5326_v46, %v2911_v29  ;;  %v3070_v29 = vmax.f32 %v5474_v4, 0.0  ;;  %vm5555_vm0 = vmor %vm2943_vm1, %vm2944_vm3 }
 0x7ed   : > { %v2916_v34 = vsel %vm5490_vm13, %v5326_v46, %v2912_v19 }
 0x7ee   : > { %v3022_v43 = vmul.f32 %v2916_v34, %v5209_v11 }
 0x7ef   : > { %v2814_v30 = vpop.xlane.xlu0 %2813 }
 0x7f0   : > { %v2835_v28 = vmul.f32 %v2814_v30, %v4309_v5 }
 0x7f2   : > { %v5359_v21 = vadd.f32 1e-05, %v2835_v28 }
 0x7f4   : > { %3693 = vrsqrt.f32 %v5359_v21  ;;  %vm2963_vm8 = vweird.f32 %v5359_v21 }
 0x7f7   : > { %v2816_v18 = vpop.xlane.xlu1 %2815 }
 0x7f8   : > { %v2836_v0 = vmul.f32 %v2816_v18, %v4309_v5  ;;  %v2881_v18 = vsub.f32 1.5, %v2880_v57 }
 0x7fa   : > { %v5374_v41 = vadd.f32 1e-05, %v2836_v0  ;;  %v2882_v9 = vmul.f32 %v5314_v20, %v2881_v18  ;;  %v5424_v0 = vpop.eup %3693  ;;  %v3023_v18 = vmul.f32 %v2926_v47, %v5197_v40  ;;  %v2939_v40 = vmul.f32 %v5415_v25, %v2938_v16 }
 0x7fb   : > { %vm2964_vm5 = vweird.f32 %v5424_v0 }
 0x7fc   : > { %v2886_v12 = vsel %vm5445_vm7, %v5314_v20, %v2882_v9  ;;  %v2958_v20 = vmul.f32 %v5424_v0, %v5359_v21  ;;  %v3068_v9 = vmax.f32 %v5466_v48, 0.0  ;;  %v2940_v23 = vmul.f32 0.5, %v2939_v40 }
 0x7fd   : > { %vm2973_vm14 = vweird.f32 %v5374_v41 }
 0x7fe   : > { %v2959_v6 = vmul.f32 %v5424_v0, %v2958_v20 }
 0x800   : > { %v2960_v16 = vmul.f32 0.5, %v2959_v6 }
 0x802   : > { %v2961_v52 = vsub.f32 1.5, %v2960_v16 }
 0x828   : > { %v2818_v42 = vpop.xlane.xlu2 %2817 }
 0x829   : > { %v2837_v59 = vmul.f32 %v2818_v42, %v4309_v5  ;;  %v2931_v42 = vsub.f32 1.5, %v2930_v3  ;;  %v3071_v3 = vmax.f32 %v5517_v51, 0.0 }
 0x82b   : > { %v5361_v55 = vadd.f32 1e-05, %v2837_v59  ;;  %v2932_v2 = vmul.f32 %v5324_v33, %v2931_v42  ;;  %v2951_v42 = vsub.f32 1.5, %v2950_v56 }
 0x82d   : > { %3695 = vrsqrt.f32 %v5361_v55  ;;  %v2936_v13 = vsel %vm5479_vm11, %v5324_v33, %v2932_v2  ;;  %v3040_v33 = vmul.f32 %v5329_v31, %v3023_v18  ;;  %v2952_v11 = vmul.f32 %v5393_v54, %v2951_v42  ;;  %vm5572_vm11 = vmor %vm2963_vm8, %vm2964_vm5 }
 0x82e   : > { %3697 = vrsqrt.f32 %v5374_v41  ;;  %v3024_v1 = vmul.f32 %v2936_v13, %v5212_v32  ;;  %v2962_v42 = vmul.f32 %v5424_v0, %v2961_v52  ;;  %vm2983_vm12 = vweird.f32 %v5361_v55 }
 0x82f   : > { %v2956_v13 = vsel %vm5538_vm2, %v5393_v54, %v2952_v11 }
 0x830   : > { %v2820_v38 = vpop.xlane.xlu0 %2819  ;;  %v3041_v20 = vmul.f32 %v5329_v31, %v3024_v1  ;;  %v3026_v16 = vmul.f32 %v2956_v13, %v5215_v53 }
 0x831   : > { %v2838_v28 = vmul.f32 %v2820_v38, %v4309_v5 }
 0x832   : > { %v3058_v58 = vadd.f32 %v5377_v8, %v3041_v20  ;;  %v3083_v20 = vmax.f32 %v3067_v61, %v3071_v3  ;;  %v3043_v48 = vmul.f32 %v5329_v31, %v3026_v16 }
 0x833   : > { %v5422_v45 = vadd.f32 1e-05, %v2838_v28  ;;  %v5427_v59 = vpop.eup %3695  ;;  %v3019_v28 = vmul.f32 %v2886_v12, %v5191_v44 }
 0x834   : > { %v5439_v7 = vpop.eup %3697  ;;  %v2978_v30 = vmul.f32 %v5427_v59, %v5361_v55  ;;  %vm2984_vm6 = vweird.f32 %v5427_v59  ;;  %v3074_v51 = vmax.f32 %v3058_v58, 0.0 }
 0x835   : > { %3699 = vrsqrt.f32 %v5422_v45  ;;  %v2968_v27 = vmul.f32 %v5439_v7, %v5374_v41  ;;  %v3036_v57 = vmul.f32 %v5329_v31, %v3019_v28  ;;  %vm2993_vm7 = vweird.f32 %v5422_v45  ;;  %vm5584_vm15 = vmor %vm2983_vm12, %vm2984_vm6 }
 0x836   : > { %v2979_v44 = vmul.f32 %v5427_v59, %v2978_v30  ;;  %v5523_v30 = vadd.f32 %v5377_v8, %v3040_v33  ;;  %vm2974_vm9 = vweird.f32 %v5439_v7  ;;  %v3086_v53 = vmax.f32 %v3070_v29, %v3074_v51 }
 0x837   : > { %v2969_v26 = vmul.f32 %v5439_v7, %v2968_v27  ;;  %v3039_v27 = vmul.f32 %v5329_v31, %v3022_v43  ;;  %vm5588_vm1 = vmor %vm2973_vm14, %vm2974_vm9  ;;  %vm3109_vm6 = vcmask 1040384  }
 0x838   : > { %v2822_v36 = vpop.xlane.xlu1 %2821  ;;  %v2980_v10 = vmul.f32 0.5, %v2979_v44 }
 0x839   : > { %v2839_v15 = vmul.f32 %v2822_v36, %v4309_v5  ;;  %v2970_v2 = vmul.f32 0.5, %v2969_v26 }
 0x83a   : > { %v2981_v56 = vsub.f32 1.5, %v2980_v10 }
 0x83b   : > { %v5484_v38 = vpop.eup %3699  ;;  %v5495_v49 = vadd.f32 1e-05, %v2839_v15  ;;  %v2941_v15 = vsub.f32 1.5, %v2940_v23  ;;  %v2971_v40 = vsub.f32 1.5, %v2970_v2  ;;  %v3073_v23 = vmax.f32 %v5523_v30, 0.0 }
 0x83c   : > { %v2988_v24 = vmul.f32 %v5484_v38, %v5422_v45  ;;  %vm2994_vm4 = vweird.f32 %v5484_v38  ;;  %v2982_v54 = vmul.f32 %v5427_v59, %v2981_v56 }
 0x83d   : > { %3701 = vrsqrt.f32 %v5495_v49  ;;  %v2942_v6 = vmul.f32 %v5415_v25, %v2941_v15  ;;  %vm5568_vm10 = vmor %vm2993_vm7, %vm2994_vm4  ;;  %vm3003_vm2 = vweird.f32 %v5495_v49 }
 0x83e   : > { %v2989_v46 = vmul.f32 %v5484_v38, %v2988_v24  ;;  %v3056_v24 = vadd.f32 %v5377_v8, %v3039_v27 }
 0x83f   : > { %v2946_v2 = vsel %vm5555_vm0, %v5415_v25, %v2942_v6 }
 0x840   : > { %v2990_v47 = vmul.f32 0.5, %v2989_v46  ;;  %v2824_v12 = vpop.xlane.xlu2 %2823  ;;  %v2972_v46 = vmul.f32 %v5439_v7, %v2971_v40 }
 0x841   : > { %v2840_v19 = vmul.f32 %v2824_v12, %v4309_v5  ;;  %v3053_v5 = vadd.f32 %v5377_v8, %v3036_v57  ;;  %v3072_v57 = vmax.f32 %v3056_v24, 0.0 }
 0x842   : > { %v2991_v32 = vsub.f32 1.5, %v2990_v47 }
 0x843   : > { %v3702_v36 = vpop.eup %3701  ;;  %v5529_v18 = vadd.f32 1e-05, %v2840_v19  ;;  %v3069_v41 = vmax.f32 %v3053_v5, 0.0  ;;  %v3084_v25 = vmax.f32 %v3068_v9, %v3072_v57  ;;  %v3060_v5 = vadd.f32 %v5377_v8, %v3043_v48 }
 0x844   : > { %v2998_v22 = vmul.f32 %v3702_v36, %v5495_v49  ;;  %v2992_v34 = vmul.f32 %v5484_v38, %v2991_v32  ;;  %vm3004_vm13 = vweird.f32 %v3702_v36  ;;  %v2976_v49 = vsel %vm5588_vm1, %v5439_v7, %v2972_v46 }
 0x845   : > { %3703 = vrsqrt.f32 %v5529_v18  ;;  %vm3005_vm3 = vmor %vm3003_vm2, %vm3004_vm13  ;;  %v3085_v15 = vmax.f32 %v3069_v41, %v3073_v23  ;;  %v3087_v29 = vmax.f32 %v3083_v20, %v3084_v25  ;;  %vm3013_vm5 = vweird.f32 %v5529_v18 }
 0x846   : > { %v2999_v44 = vmul.f32 %v3702_v36, %v2998_v22  ;;  %v2996_v21 = vsel %vm5568_vm10, %v5484_v38, %v2992_v34  ;;  %v2986_v38 = vsel %vm5584_vm15, %v5427_v59, %v2982_v54  ;;  %v2966_v59 = vsel %vm5572_vm11, %v5424_v0, %v2962_v42 }
 0x847   : > { %v3030_v19 = vmul.f32 %v2996_v21, %v5249_v17  ;;  %v3029_v17 = vmul.f32 %v2986_v38, %v5243_v35  ;;  %v3025_v0 = vmul.f32 %v2946_v2, %v5225_v39  ;;  %v3027_v7 = vmul.f32 %v2966_v59, %v5231_v50 }
 0x848   : > { %v3000_v33 = vmul.f32 0.5, %v2999_v44  ;;  %v3088_v35 = vmax.f32 %v3085_v15, %v3086_v53  ;;  %v3076_v24 = vmax.f32 %v3060_v5, 0.0 }
 0x849   : > { %v3047_v4 = vmul.f32 %v5329_v31, %v3030_v19  ;;  %v3042_v39 = vmul.f32 %v5329_v31, %v3025_v0  ;;  %v3044_v50 = vmul.f32 %v5329_v31, %v3027_v7 }
 0x84a   : > { %v3001_v45 = vsub.f32 1.5, %v3000_v33  ;;  %v3089_v22 = vmax.f32 %v3087_v29, %v3088_v35 }
 0x84b   : > { %v3704_v43 = vpop.eup %3703  ;;  %v3064_v3 = vadd.f32 %v5377_v8, %v3047_v4  ;;  %v3059_v13 = vadd.f32 %v5377_v8, %v3042_v39 }
 0x84c   : > { %v3002_v47 = vmul.f32 %v3702_v36, %v3001_v45  ;;  %v3008_v12 = vmul.f32 %v3704_v43, %v5529_v18  ;;  %vm3014_vm4 = vweird.f32 %v3704_v43  ;;  %v3061_v18 = vadd.f32 %v5377_v8, %v3044_v50 }
 0x84d   : > { %vm3015_vm0 = vmor %vm3013_vm5, %vm3014_vm4  ;;  %v3080_v44 = vmax.f32 %v3064_v3, 0.0  ;;  %v3090_v6 = vrot.slane %v3089_v22, 4  ;;  %v3075_v42 = vmax.f32 %v3059_v13, 0.0 }
 0x84e   : > { %v3006_v30 = vsel %vm3005_vm3, %v3702_v36, %v3002_v47  ;;  %v3009_v11 = vmul.f32 %v3704_v43, %v3008_v12  ;;  %v3028_v36 = vmul.f32 %v2976_v49, %v5237_v60  ;;  %v3077_v46 = vmax.f32 %v3061_v18, 0.0 }
 0x84f   : > { %v3031_v32 = vmul.f32 %v3006_v30, %v5255_v62  ;;  %v3046_v62 = vmul.f32 %v5329_v31, %v3029_v17  ;;  %v3097_v1 = vmax.f32 %v3076_v24, %v3080_v44  ;;  %v3091_v21 = vmax.f32 %v3089_v22, %v3090_v6 }
 0x850   : > { %v3010_v27 = vmul.f32 0.5, %v3009_v11  ;;  %v3045_v60 = vmul.f32 %v5329_v31, %v3028_v36 }
 0x851   : > { %v3048_v37 = vmul.f32 %v5329_v31, %v3031_v32  ;;  %v3063_v28 = vadd.f32 %v5377_v8, %v3046_v62  ;;  %v3092_v10 = vrot.slane %v3091_v21, 2 }
 0x852   : > { %v3011_v9 = vsub.f32 1.5, %v3010_v27  ;;  %v3062_v34 = vadd.f32 %v5377_v8, %v3045_v60 }
 0x853   : > { %v3065_v52 = vadd.f32 %v5377_v8, %v3048_v37  ;;  %v3079_v26 = vmax.f32 %v3063_v28, 0.0  ;;  %v3093_v38 = vmax.f32 %v3091_v21, %v3092_v10 }
 0x854   : > { %v3012_v61 = vmul.f32 %v3704_v43, %v3011_v9  ;;  %v3078_v14 = vmax.f32 %v3062_v34, 0.0 }
 0x855   : > { %v3081_v54 = vmax.f32 %v3065_v52, 0.0  ;;  %v3096_v45 = vmax.f32 %v3075_v42, %v3079_v26  ;;  %v3094_v41 = vrot.slane %v3093_v38, 1 }
 0x856   : > { %v3016_v56 = vsel %vm3015_vm0, %v3704_v43, %v3012_v61 }
 0x857   : > { %v3032_v40 = vmul.f32 %v3016_v56, %v5261_v63  ;;  %v3098_v43 = vmax.f32 %v3077_v46, %v3081_v54  ;;  %v3100_v51 = vmax.f32 %v3096_v45, %v3097_v1  ;;  %v3095_v2 = vmax.f32 %v3093_v38, %v3094_v41 }
 0x859   : > { %v3049_v58 = vmul.f32 %v5329_v31, %v3032_v40 }
 0x85b   : > { %v3066_v33 = vadd.f32 %v5377_v8, %v3049_v58 }
 0x85d   : > { %v3082_v63 = vmax.f32 %v3066_v33, 0.0 }
 0x85f   : > { %v3099_v23 = vmax.f32 %v3078_v14, %v3082_v63 }
 0x861   : > { %v3101_v57 = vmax.f32 %v3098_v43, %v3099_v23 }
 0x863   : > { %v3102_v31 = vmax.f32 %v3100_v51, %v3101_v57 }
 0x865   : > { %v3103_v55 = vrot.slane %v3102_v31, 4 }
 0x867   : > { %v3104_v47 = vmax.f32 %v3102_v31, %v3103_v55 }
 0x869   : > { %v3105_v12 = vrot.slane %v3104_v47, 2 }
 0x86b   : > { %v3106_v8 = vmax.f32 %v3104_v47, %v3105_v12 }
 0x86d   : > { %v3107_v16 = vrot.slane %v3106_v8, 1 }
 0x86f   : > { %v3108_v19 = vmax.f32 %v3106_v8, %v3107_v16 }
 0x871   : > { %v3110_v59 = vsel %vm3109_vm6, %v3095_v2, %v3108_v19 }
 0x872   : > { %3111 = vst [vmem:[%s514_s14] sm:$0x3] %v3110_v59 }
 0x873 PF: > { %s19_s11 = sadd.s32 1, %s3727_s11   ;;  %s5691_s30 = smov %s3723_s10 }
 0x874   : > { %p16_p5 = scmp.ge.s32.totalorder %s19_s11, 4   ;;  %s5692_s10 = smov %s5694_s12 }
 0x876   :  { %18 = sbr.rel (!%p16_p5) target bundleno = 2 (0x2), region = 110 }

</bundles_post_ra>
